<compile_context>
chip_gen: v5e
topology: v5e:2x2
jax: 0.10.0
libtpu: 0.0.40
codegen_flags: <defaults>
</compile_context>

<pallas_src>
import jax
import jax.numpy as jnp
from jax import lax
from jax.experimental import pallas as pl
from jax.experimental.pallas import tpu as pltpu


_SQRT_HALF = 0.7071067811865476


def _gelu_exact(x):
    # nn.GELU() default = exact erf-based GELU (computed in f32).
    return 0.5 * x * (1.0 + lax.erf(x * jnp.float32(_SQRT_HALF)))


def dino_head_kernel(x_ref, w1_ref, b1_ref, w2_ref, b2_ref, w3_ref, b3_ref,
                     p_ref, out_ref, h_ref):
    """Grid = (batch tiles i, K tiles j). MLP runs once per batch tile (j==0)."""

    @pl.when(pl.program_id(1) == 0)
    def _mlp_and_normalize():
        x = x_ref[...]
        # Linear -> GELU -> Linear -> GELU -> Linear (bias / GELU in f32).
        h = jnp.dot(x, w1_ref[...], preferred_element_type=jnp.float32)
        h = _gelu_exact(h + b1_ref[...])
        h = jnp.dot(h.astype(w2_ref.dtype), w2_ref[...],
                    preferred_element_type=jnp.float32)
        h = _gelu_exact(h + b2_ref[...])
        h = jnp.dot(h.astype(w3_ref.dtype), w3_ref[...],
                    preferred_element_type=jnp.float32) + b3_ref[...]
        # F.normalize(h, dim=-1, p=2): h / max(||h||_2, 1e-12)
        nrm = jnp.sqrt(jnp.sum(h * h, axis=-1, keepdims=True))
        h = h / jnp.maximum(nrm, jnp.float32(1e-12))
        h_ref[...] = h.astype(h_ref.dtype)

    # Prototype matmul against the pre-normalized prototype tile (j-th K tile).
    out_ref[...] = jnp.dot(h_ref[...], p_ref[...],
                           preferred_element_type=jnp.float32
                           ).astype(out_ref.dtype)


def _vmem_limit_bytes():
    """Per-chip VMEM budget (~25% headroom); None -> keep compiler default."""
    try:
        cap = pltpu.get_tpu_info().vmem_capacity_bytes
        return int(cap * 3 // 4)
    except Exception:
        return None


def dino_head_forward(x, params, *, tm=128, tk=2048,
                      compute_dtype=jnp.bfloat16):
    """x: (B, in_dim) float32. Returns [logits] with logits: (B, K) float32."""
    w1, b1, w2, b2, w3, b3, v = params
    B, in_dim = x.shape
    hidden = w1.shape[1]
    bottleneck = w3.shape[1]
    K = v.shape[1]

    tm = min(tm, B)
    tk = min(tk, K)
    assert B % tm == 0, "batch must be divisible by the batch tile"
    assert K % tk == 0, "num_clusters must be divisible by the K tile"

    vmem_limit = _vmem_limit_bytes()

    # Rough per-step VMEM estimate; shrink the K tile until it fits the budget
    # (only matters at real DINO sizes, e.g. K = 65536, bottleneck = 256).
    itemsize = jnp.dtype(compute_dtype).itemsize
    resident = (2 * (in_dim * hidden + hidden * hidden + hidden * bottleneck)
                * itemsize                           # w1, w2, w3 (2 buffers)
                + 2 * (2 * hidden + bottleneck) * 4  # f32 biases
                + 2 * tm * in_dim * itemsize         # x tile (double-buffered)
                + tm * bottleneck * itemsize)        # h scratch
    if vmem_limit is not None:
        budget = int(vmem_limit * 0.9)
        while tk > 128 and K % (tk // 2) == 0:
            per_k = 2 * tk * (bottleneck * itemsize + tm * 4)  # v + f32 out
            if resident + per_k <= budget:
                break
            tk //= 2

    # weight_norm with g == 1: effective prototypes = v / ||v||_col,
    # precomputed once here instead of per grid step inside the kernel.
    v32 = v.astype(jnp.float32)
    w_proto = v32 / jnp.sqrt(jnp.sum(v32 * v32, axis=0, keepdims=True))

    # Cast matmul operands to the compute dtype (bf16 by default); biases and
    # all GELU / normalization math stay in f32 inside the kernel.
    x_c = x.astype(compute_dtype)
    w1_c = w1.astype(compute_dtype)
    w2_c = w2.astype(compute_dtype)
    w3_c = w3.astype(compute_dtype)
    p_c = w_proto.astype(compute_dtype)
    b1_c = b1.astype(jnp.float32)
    b2_c = b2.astype(jnp.float32)
    b3_c = b3.astype(jnp.float32)

    grid = (B // tm, K // tk)
    rep = lambda i, j: (0, 0)  # resident weights: block index never changes,
                               # so Pallas DMAs them exactly once.

    compiler_kwargs = dict(dimension_semantics=("parallel", "arbitrary"))
    if vmem_limit is not None:
        compiler_kwargs["vmem_limit_bytes"] = vmem_limit

    call = pl.pallas_call(
        dino_head_kernel,
        out_shape=jax.ShapeDtypeStruct((B, K), jnp.float32),
        grid_spec=pltpu.PrefetchScalarGridSpec(
            num_scalar_prefetch=0,
            grid=grid,
            in_specs=[
                pl.BlockSpec((tm, in_dim), lambda i, j: (i, 0)),    # x
                pl.BlockSpec((in_dim, hidden), rep),                # w1
                pl.BlockSpec((1, hidden), rep),                     # b1
                pl.BlockSpec((hidden, hidden), rep),                # w2
                pl.BlockSpec((1, hidden), rep),                     # b2
                pl.BlockSpec((hidden, bottleneck), rep),            # w3
                pl.BlockSpec((1, bottleneck), rep),                 # b3
                pl.BlockSpec((bottleneck, tk), lambda i, j: (0, j)),  # protos
            ],
            out_specs=pl.BlockSpec((tm, tk), lambda i, j: (i, j)),
            scratch_shapes=[pltpu.VMEM((tm, bottleneck), compute_dtype)],
        ),
        compiler_params=pltpu.CompilerParams(**compiler_kwargs),
    )

    out = call(x_c, w1_c, b1_c, w2_c, b2_c, w3_c, b3_c, p_c)
    return [out]


def init_params(key, in_dim, hidden_dim, bottleneck_dim, num_clusters):
    """Deterministic synthetic init mirroring DINOHead.__init__ shapes.

    Linear weights ~ trunc_normal(std=0.02), biases = 0 (per _init_weights).
    Prototypes v keeps a generic random init (weight_g fixed to 1).
    Weights are stored as (fan_in, fan_out) (transpose of PyTorch layout).
    """
    k1, k2, k3, k4 = jax.random.split(key, 4)

    def tn(k, shape, std=0.02):
        return (std * jax.random.truncated_normal(k, -2.0, 2.0, shape)
                ).astype(jnp.float32)

    w1 = tn(k1, (in_dim, hidden_dim))
    b1 = jnp.zeros((1, hidden_dim), jnp.float32)
    w2 = tn(k2, (hidden_dim, hidden_dim))
    b2 = jnp.zeros((1, hidden_dim), jnp.float32)
    w3 = tn(k3, (hidden_dim, bottleneck_dim))
    b3 = jnp.zeros((1, bottleneck_dim), jnp.float32)
    v = (0.05 * jax.random.normal(k4, (bottleneck_dim, num_clusters))
         ).astype(jnp.float32)
    return (w1, b1, w2, b2, w3, b3, v)


def reference_forward(x, params):
    """Plain-JAX f32 reference (mirrors the PyTorch forward) for verification."""
    w1, b1, w2, b2, w3, b3, v = params
    h = jax.nn.gelu(x @ w1 + b1, approximate=False)
    h = jax.nn.gelu(h @ w2 + b2, approximate=False)
    h = h @ w3 + b3
    h = h / jnp.maximum(jnp.linalg.norm(h, axis=-1, keepdims=True), 1e-12)
    w_proto = v / jnp.linalg.norm(v, axis=0, keepdims=True)
    return [h @ w_proto]


if __name__ == "__main__":
    # Small shapes consistent with the module (num_layers=3 MLP head), chosen
    # so that both grid axes (batch tiles and K tiles) are exercised.
    B, IN_DIM, HIDDEN, BOTTLENECK, K = 256, 64, 128, 64, 256

    key = jax.random.PRNGKey(0)
    kx, kp = jax.random.split(key)
    x = jax.random.normal(kx, (B, IN_DIM), dtype=jnp.float32)
    params = init_params(kp, IN_DIM, HIDDEN, BOTTLENECK, K)

    ref = reference_forward(x, params)
    ref0 = jax.block_until_ready(ref[0])

    # Exact-precision run: f32 operands, tight check against the reference.
    out_f32 = dino_head_forward(x, params, tm=128, tk=128,
                                compute_dtype=jnp.float32)
    out_f32 = [jax.block_until_ready(o) for o in out_f32]
    assert out_f32[0].shape == (B, K)
    assert jnp.allclose(out_f32[0], ref0, atol=1e-5, rtol=1e-5), \
        "f32 kernel mismatch vs reference"

    # Tuned configuration: bf16 matmul operands with f32 MXU accumulation.
    out_bf16 = dino_head_forward(x, params, tm=128, tk=128)
    out_bf16 = [jax.block_until_ready(o) for o in out_bf16]
    assert out_bf16[0].shape == (B, K)
    assert jnp.allclose(out_bf16[0], ref0, atol=3e-2, rtol=0.0), \
        "bf16 kernel mismatch vs reference"

    print("KERNEL_OK")
</pallas_src>

<mosaic_0001>
module attributes {stable_mosaic.version = 11 : i64} {
  func.func @dino_head_kernel(%arg0: i32, %arg1: i32, %arg2: memref<128x64xf32, #tpu.memory_space<vmem>>, %arg3: memref<64x128xf32, #tpu.memory_space<vmem>>, %arg4: memref<1x128xf32, #tpu.memory_space<vmem>>, %arg5: memref<128x128xf32, #tpu.memory_space<vmem>>, %arg6: memref<1x128xf32, #tpu.memory_space<vmem>>, %arg7: memref<128x64xf32, #tpu.memory_space<vmem>>, %arg8: memref<1x64xf32, #tpu.memory_space<vmem>>, %arg9: memref<64x128xf32, #tpu.memory_space<vmem>>, %arg10: memref<128x128xf32, #tpu.memory_space<vmem>>, %arg11: memref<128x64xf32, #tpu.memory_space<vmem>>) attributes {dimension_semantics = [#tpu.dimension_semantics<parallel>, #tpu.dimension_semantics<arbitrary>], iteration_bounds = array<i64: 2, 2>, scalar_prefetch = 0 : i64, scratch_operands = 1 : i64, tpu.core_type = #tpu.core_type<tc>, window_params = [{transform_indices = @transform_0, window_bounds = array<i64: 128, 64>}, {pipeline_mode = #tpu.pipeline_mode<synchronous>, transform_indices = @transform_1, window_bounds = array<i64: 64, 128>}, {pipeline_mode = #tpu.pipeline_mode<synchronous>, transform_indices = @transform_2, window_bounds = array<i64: 1, 128>}, {pipeline_mode = #tpu.pipeline_mode<synchronous>, transform_indices = @transform_3, window_bounds = array<i64: 128, 128>}, {pipeline_mode = #tpu.pipeline_mode<synchronous>, transform_indices = @transform_4, window_bounds = array<i64: 1, 128>}, {pipeline_mode = #tpu.pipeline_mode<synchronous>, transform_indices = @transform_5, window_bounds = array<i64: 128, 64>}, {pipeline_mode = #tpu.pipeline_mode<synchronous>, transform_indices = @transform_6, window_bounds = array<i64: 1, 64>}, {transform_indices = @transform_7, window_bounds = array<i64: 64, 128>}, {transform_indices = @transform_8, window_bounds = array<i64: 128, 128>}]} {
    %c0_i32 = arith.constant 0 : i32
    %0 = arith.cmpi eq, %arg1, %c0_i32 : i32
    %1 = arith.extui %0 : i1 to i32
    %c0_i32_0 = arith.constant 0 : i32
    %2 = arith.cmpi ne, %1, %c0_i32_0 : i32
    scf.if %2 {
      %c0_6 = arith.constant 0 : index
      %c0_7 = arith.constant 0 : index
      %7 = vector.load %arg2[%c0_6, %c0_7] : memref<128x64xf32, #tpu.memory_space<vmem>>, vector<128x64xf32>
      %c0_8 = arith.constant 0 : index
      %c0_9 = arith.constant 0 : index
      %8 = vector.load %arg3[%c0_8, %c0_9] : memref<64x128xf32, #tpu.memory_space<vmem>>, vector<64x128xf32>
      %cst_10 = arith.constant dense<0.000000e+00> : vector<128x128xf32>
      %9 = tpu.matmul %7, %8, %cst_10 {dimension_numbers = #tpu.dot_dimension_numbers<[1], [0], [0], [1], [0, 0, 1, 1], [], []>} : vector<128x64xf32>, vector<64x128xf32>, vector<128x128xf32> -> vector<128x128xf32>
      %c0_11 = arith.constant 0 : index
      %c0_12 = arith.constant 0 : index
      %10 = vector.load %arg4[%c0_11, %c0_12] : memref<1x128xf32, #tpu.memory_space<vmem>>, vector<1x128xf32>
      %11 = vector.broadcast %10 : vector<1x128xf32> to vector<128x128xf32>
      %12 = arith.addf %9, %11 : vector<128x128xf32>
      %cst_13 = arith.constant 5.000000e-01 : f32
      %13 = vector.broadcast %cst_13 : f32 to vector<128x128xf32>
      %14 = arith.mulf %13, %12 : vector<128x128xf32>
      %cst_14 = arith.constant 0.707106769 : f32
      %15 = vector.broadcast %cst_14 : f32 to vector<128x128xf32>
      %16 = arith.mulf %12, %15 : vector<128x128xf32>
      %17 = math.erf %16 : vector<128x128xf32>
      %cst_15 = arith.constant 1.000000e+00 : f32
      %18 = vector.broadcast %cst_15 : f32 to vector<128x128xf32>
      %19 = arith.addf %18, %17 : vector<128x128xf32>
      %20 = arith.mulf %14, %19 : vector<128x128xf32>
      %c0_16 = arith.constant 0 : index
      %c0_17 = arith.constant 0 : index
      %21 = vector.load %arg5[%c0_16, %c0_17] : memref<128x128xf32, #tpu.memory_space<vmem>>, vector<128x128xf32>
      %cst_18 = arith.constant dense<0.000000e+00> : vector<128x128xf32>
      %22 = tpu.matmul %20, %21, %cst_18 {dimension_numbers = #tpu.dot_dimension_numbers<[1], [0], [0], [1], [0, 0, 1, 1], [], []>} : vector<128x128xf32>, vector<128x128xf32>, vector<128x128xf32> -> vector<128x128xf32>
      %c0_19 = arith.constant 0 : index
      %c0_20 = arith.constant 0 : index
      %23 = vector.load %arg6[%c0_19, %c0_20] : memref<1x128xf32, #tpu.memory_space<vmem>>, vector<1x128xf32>
      %24 = vector.broadcast %23 : vector<1x128xf32> to vector<128x128xf32>
      %25 = arith.addf %22, %24 : vector<128x128xf32>
      %cst_21 = arith.constant 5.000000e-01 : f32
      %26 = vector.broadcast %cst_21 : f32 to vector<128x128xf32>
      %27 = arith.mulf %26, %25 : vector<128x128xf32>
      %cst_22 = arith.constant 0.707106769 : f32
      %28 = vector.broadcast %cst_22 : f32 to vector<128x128xf32>
      %29 = arith.mulf %25, %28 : vector<128x128xf32>
      %30 = math.erf %29 : vector<128x128xf32>
      %cst_23 = arith.constant 1.000000e+00 : f32
      %31 = vector.broadcast %cst_23 : f32 to vector<128x128xf32>
      %32 = arith.addf %31, %30 : vector<128x128xf32>
      %33 = arith.mulf %27, %32 : vector<128x128xf32>
      %c0_24 = arith.constant 0 : index
      %c0_25 = arith.constant 0 : index
      %34 = vector.load %arg7[%c0_24, %c0_25] : memref<128x64xf32, #tpu.memory_space<vmem>>, vector<128x64xf32>
      %cst_26 = arith.constant dense<0.000000e+00> : vector<128x64xf32>
      %35 = tpu.matmul %33, %34, %cst_26 {dimension_numbers = #tpu.dot_dimension_numbers<[1], [0], [0], [1], [0, 0, 1, 1], [], []>} : vector<128x128xf32>, vector<128x64xf32>, vector<128x64xf32> -> vector<128x64xf32>
      %c0_27 = arith.constant 0 : index
      %c0_28 = arith.constant 0 : index
      %36 = vector.load %arg8[%c0_27, %c0_28] : memref<1x64xf32, #tpu.memory_space<vmem>>, vector<1x64xf32>
      %37 = vector.broadcast %36 : vector<1x64xf32> to vector<128x64xf32>
      %38 = arith.addf %35, %37 : vector<128x64xf32>
      %39 = arith.mulf %38, %38 : vector<128x64xf32>
      %cst_29 = arith.constant dense<0.000000e+00> : vector<128xf32>
      %40 = vector.multi_reduction <add>, %39, %cst_29 [1] : vector<128x64xf32> to vector<128xf32>
      %41 = vector.shape_cast %40 : vector<128xf32> to vector<128x1xf32>
      %42 = math.sqrt %41 : vector<128x1xf32>
      %cst_30 = arith.constant 9.99999996E-13 : f32
      %43 = vector.broadcast %cst_30 : f32 to vector<128x1xf32>
      %44 = arith.maximumf %42, %43 : vector<128x1xf32>
      %45 = vector.broadcast %44 : vector<128x1xf32> to vector<128x64xf32>
      %46 = arith.divf %38, %45 : vector<128x64xf32>
      %c0_31 = arith.constant 0 : index
      %c0_32 = arith.constant 0 : index
      %47 = vector.load %arg11[%c0_31, %c0_32] : memref<128x64xf32, #tpu.memory_space<vmem>>, vector<128x64xf32>
      tpu.vector_store %arg11[%c0_31, %c0_32], %46 {strides = array<i32>} : memref<128x64xf32, #tpu.memory_space<vmem>>, vector<128x64xf32>,
    } else {
    }
    %c0 = arith.constant 0 : index
    %c0_1 = arith.constant 0 : index
    %3 = vector.load %arg11[%c0, %c0_1] : memref<128x64xf32, #tpu.memory_space<vmem>>, vector<128x64xf32>
    %c0_2 = arith.constant 0 : index
    %c0_3 = arith.constant 0 : index
    %4 = vector.load %arg9[%c0_2, %c0_3] : memref<64x128xf32, #tpu.memory_space<vmem>>, vector<64x128xf32>
    %cst = arith.constant dense<0.000000e+00> : vector<128x128xf32>
    %5 = tpu.matmul %3, %4, %cst {dimension_numbers = #tpu.dot_dimension_numbers<[1], [0], [0], [1], [0, 0, 1, 1], [], []>} : vector<128x64xf32>, vector<64x128xf32>, vector<128x128xf32> -> vector<128x128xf32>
    %c0_4 = arith.constant 0 : index
    %c0_5 = arith.constant 0 : index
    %6 = vector.load %arg10[%c0_4, %c0_5] : memref<128x128xf32, #tpu.memory_space<vmem>>, vector<128x128xf32>
    tpu.vector_store %arg10[%c0_4, %c0_5], %5 {strides = array<i32>} : memref<128x128xf32, #tpu.memory_space<vmem>>, vector<128x128xf32>,
    return
  }
  func.func @transform_0(%arg0: i32, %arg1: i32) -> (i32, i32) {
    %c0_i32 = arith.constant 0 : i32
    %c0_i32_0 = arith.constant 0 : i32
    return %arg0, %c0_i32 : i32, i32
  }
  func.func @transform_1(%arg0: i32, %arg1: i32) -> (i32, i32) {
    %c0_i32 = arith.constant 0 : i32
    %c0_i32_0 = arith.constant 0 : i32
    %c0_i32_1 = arith.constant 0 : i32
    return %c0_i32, %c0_i32_0 : i32, i32
  }
  func.func @transform_2(%arg0: i32, %arg1: i32) -> (i32, i32) {
    %c0_i32 = arith.constant 0 : i32
    %c0_i32_0 = arith.constant 0 : i32
    %c0_i32_1 = arith.constant 0 : i32
    return %c0_i32, %c0_i32_0 : i32, i32
  }
  func.func @transform_3(%arg0: i32, %arg1: i32) -> (i32, i32) {
    %c0_i32 = arith.constant 0 : i32
    %c0_i32_0 = arith.constant 0 : i32
    %c0_i32_1 = arith.constant 0 : i32
    return %c0_i32, %c0_i32_0 : i32, i32
  }
  func.func @transform_4(%arg0: i32, %arg1: i32) -> (i32, i32) {
    %c0_i32 = arith.constant 0 : i32
    %c0_i32_0 = arith.constant 0 : i32
    %c0_i32_1 = arith.constant 0 : i32
    return %c0_i32, %c0_i32_0 : i32, i32
  }
  func.func @transform_5(%arg0: i32, %arg1: i32) -> (i32, i32) {
    %c0_i32 = arith.constant 0 : i32
    %c0_i32_0 = arith.constant 0 : i32
    %c0_i32_1 = arith.constant 0 : i32
    return %c0_i32, %c0_i32_0 : i32, i32
  }
  func.func @transform_6(%arg0: i32, %arg1: i32) -> (i32, i32) {
    %c0_i32 = arith.constant 0 : i32
    %c0_i32_0 = arith.constant 0 : i32
    %c0_i32_1 = arith.constant 0 : i32
    return %c0_i32, %c0_i32_0 : i32, i32
  }
  func.func @transform_7(%arg0: i32, %arg1: i32) -> (i32, i32) {
    %c0_i32 = arith.constant 0 : i32
    %c0_i32_0 = arith.constant 0 : i32
    return %c0_i32, %arg1 : i32, i32
  }
  func.func @transform_8(%arg0: i32, %arg1: i32) -> (i32, i32) {
    %c0_i32 = arith.constant 0 : i32
    return %arg0, %arg1 : i32, i32
  }
}

</mosaic_0001>

<bundles_post_ra>
// kernel: tpu_custom_call.1
= control target key start
LH: loop header
LB: loop body
LE: loop exit
PB: predicated region body
PF: predicated region fallthrough
CT: control target
= control target key end

     0   :  { %s5035_s0 = inlined_call_operand.vmem [shape: f32[256,64], index: 0, kind: input, shape index: {}]   ;;  %s5036_s1 = inlined_call_operand.vmem [shape: f32[64,128], index: 1, kind: input, shape index: {}]   ;;  %s5037_s2 = inlined_call_operand.vmem [shape: f32[1,128], index: 2, kind: input, shape index: {}]   ;;  %s5038_s3 = inlined_call_operand.vmem [shape: f32[128,128], index: 3, kind: input, shape index: {}]   ;;  %s5039_s4 = inlined_call_operand.vmem [shape: f32[1,128], index: 4, kind: input, shape index: {}]   ;;  %s5040_s5 = inlined_call_operand.vmem [shape: f32[128,64], index: 5, kind: input, shape index: {}]   ;;  %s5041_s6 = inlined_call_operand.vmem [shape: f32[1,64], index: 6, kind: input, shape index: {}]   ;;  %s5042_s7 = inlined_call_operand.vmem [shape: f32[64,256], index: 7, kind: input, shape index: {}]   ;;  %s5043_s8 = inlined_call_operand.hbm [shape: f32[256,256], index: 8, kind: output, shape index: {}]  }
   0x1   :  { %5050 = sst [smem:[#allocation11_spill]] %s5042_s7 }
   0x2   :  { %5051 = sst [smem:[#allocation12_spill]] %s5043_s8 }
   0x3   :  { %13 = vsyncpa [#allocation5], 0 }
   0x4   :  { %15 = vsyncpa [#allocation5 + $0x1], 0  ;;  %s3443_s27 = smov 0   ;;  %s3445_s28 = smov 0  }
   0x5   :  { %s3447_s29 = smov 0   ;;  %s3449_s30 = smov 0  }
   0x6   :  { %s3451_s9 = smov 0   ;;  %s3453_s10 = smov 0  }
   0x7   :  { %s3455_s11 = smov 0   ;;  %s3457_s12 = smov 0  }
   0x8   :  { %s3459_s13 = smov 0   ;;  %s3461_s14 = smov 0  }
   0x9 LB: > { %5052 = sst [smem:[#allocation7_spill]] %s3385_s12  ;;  %s2921_s15 = sadd.s32 4294967295, %s3393_s14   ;;  %s3393_s14 = sphi %s3461_s14, %s21_s14   ;;  %s3389_s13 = sphi %s3459_s13, %s5071_s13   ;;  %s3385_s12 = sphi %s3457_s12, %s5070_s12   ;;  %s3381_s11 = sphi %s3455_s11, %s5069_s11   ;;  %s3377_s10 = sphi %s3453_s10, %s5068_s10   ;;  %s3373_s9 = sphi %s3451_s9, %s5076_s9   ;;  %s3369_s30 = sphi %s3449_s30, %s5075_s30   ;;  %s3365_s29 = sphi %s3447_s29, %s5074_s29   ;;  %s3361_s28 = sphi %s3445_s28, %s5073_s28   ;;  %s3357_s27 = sphi %s3443_s27, %s5072_s27  }
   0xa   : > { %5053 = sst [smem:[#allocation8_spill]] %s3389_s13  ;;  %s2922_s16 = sadd.s32 4294967294, %s3393_s14  }
   0xb   : > { %s30_s17 = sadd.s32 1, %s3385_s12  ;;  %s33_s18 = sadd.s32 1, %s3389_s13 }
   0xc   : > { %p31_p0 = scmp.ge.s32.totalorder %s30_s17, 2  ;;  %s192_s19 = sadd.s32 1, %s3373_s9 }
   0xd   : > { %p199_p1 = scmp.ne.s32.totalorder %s3373_s9, %s3369_s30  ;;  %p200_p2 = scmp.eq.s32.totalorder %s3393_s14, 0 }
   0xe   : > { %s5078_s17 = smov (%p31_p0, %s30_s17), 0  ;;  %s5080_s18 = smov (!%p31_p0, %s33_s18), %s3389_s13 }
   0xf   : > { %5054 = sst [smem:[#allocation9_spill]] %s5078_s17  ;;  %s189_s20 = ssub.s32 %s3385_s12, %s5078_s17 }
  0x10   : > { %p3506_p3 = por %p200_p2, %p199_p1  ;;  %p35_p4 = scmp.ge.s32.totalorder %s5080_s18, 2 }
  0x11   : > { %p190_p5 = scmp.eq.s32.totalorder %s189_s20, 0  ;;  %s220_s22 = sadd.s32 1, %s3365_s29 }
  0x12   : > { %p230_p6 = scmp.ne.s32.totalorder %s3365_s29, %s3361_s28  ;;  %s5082_s18 = smov (%p35_p4, %s5080_s18), 0 }
  0x13   : > { %5056 = sst [smem:[#allocation10_spill]] %s5082_s18  ;;  %s215_s24 = ssub.s32 %s3389_s13, %s5082_s18 }
  0x14   : > { %s3516_s23 = scalar_select %p190_p5, %s3373_s9, %s192_s19  }
  0x15   : > { %p231_p7 = scmp.eq.s32.totalorder %s2921_s15, 3  ;;  %s217_s25 = sor.u32 %s215_s24, %s189_s20 }
  0x16   : > { %p236_p8 = scmp.ne.s32.totalorder %s3361_s28, %s3357_s27  ;;  %p218_p9 = scmp.eq.s32.totalorder %s217_s25, 0 }
  0x17   : > { %p3522_p10 = por %p231_p7, %p230_p6  ;;  %p237_p11 = scmp.eq.s32.totalorder %s2922_s16, 3 }
  0x18   : > { %s3527_s17 = scalar_select %p218_p9, %s3365_s29, %s220_s22  }
  0x19   : > { %p3529_p12 = por %p237_p11, %p236_p8  ;;  %p2924_p13 = scmp.ge.s32.totalorder %s3393_s14, 4 }
  0x1b   : > { %271 = sbr.rel (%p2924_p13) target bundleno = 50 (0x32), region = 40 }
  0x20   : > { %283 = sbr.rel (!%p3506_p3) target bundleno = 50 (0x32), region = 48  ;;  %s285_s15 = sand.u32 (%p3506_p3), 1, %s3373_s9  }
  0x21   : > { %s2926_s19 = sshll.u32 (%p3506_p3), %s3385_s12, 3  ;;  %s2925_s20 = sshll.u32 (%p3506_p3), %s285_s15, 6 }
  0x22   : > { %s5059_s7 = sld [smem:[#allocation11_spill]] (%p3506_p3)  ;;  %s287_s22 = scalar_lea.vmem (%p3506_p3), [#allocation3], %s2925_s20 }
  0x28   : > { %s289_s16 = scalar_lea.vmem %s5059_s7, %s2926_s19 }
  0x29   : > { %v332_v0 = vld [vmem:[%s289_s16] sm:$0xff]  ;;  %v334_v1 = vld [vmem:[%s289_s16 + $0x10] sm:$0xff] }
  0x2a   : > { %v336_v2 = vld [vmem:[%s289_s16 + $0x20] sm:$0xff]  ;;  %333 = vst [vmem:[%s287_s22] sm:$0xff] %v332_v0  ;;  %v338_v3 = vld [vmem:[%s289_s16 + $0x30] sm:$0xff] }
  0x2b   : > { %335 = vst [vmem:[%s287_s22 + $0x8] sm:$0xff] %v334_v1  ;;  %v340_v4 = vld [vmem:[%s289_s16 + $0x40] sm:$0xff]  ;;  %v342_v5 = vld [vmem:[%s289_s16 + $0x50] sm:$0xff] }
  0x2c   : > { %337 = vst [vmem:[%s287_s22 + $0x10] sm:$0xff] %v336_v2  ;;  %v344_v6 = vld [vmem:[%s289_s16 + $0x60] sm:$0xff]  ;;  %v346_v7 = vld [vmem:[%s289_s16 + $0x70] sm:$0xff] }
  0x2d   : > { %339 = vst [vmem:[%s287_s22 + $0x18] sm:$0xff] %v338_v3 }
  0x2e   : > { %341 = vst [vmem:[%s287_s22 + $0x20] sm:$0xff] %v340_v4 }
  0x2f   : > { %343 = vst [vmem:[%s287_s22 + $0x28] sm:$0xff] %v342_v5 }
  0x30   : > { %345 = vst [vmem:[%s287_s22 + $0x30] sm:$0xff] %v344_v6 }
  0x31   : > { %347 = vst [vmem:[%s287_s22 + $0x38] sm:$0xff] %v346_v7 }
  0x32 PF: > { %p2927_p0 = scmp.ge.s32.totalorder %s3393_s14, 1  ;;  %p352_p1 = scmp.lt.s32.totalorder %s3393_s14, 5 }
  0x34   : > { %p353_p2 = pnand %p2927_p0, %p352_p1 }
  0x35   : > { %s359_s21 = sand.u32 (!%p353_p2), 1, %s3369_s30   ;;  %s5048_s15 = sand.u32 (!%p353_p2), 1, %s3361_s28  }
  0x36   : > { %356 = sbr.rel (%p353_p2) target bundleno = 1083 (0x43b), region = 86  ;;  %s2928_s19 = sshll.u32 (!%p353_p2), %s359_s21, 6 }
  0x37   : > { %s2929_s20 = sshll.u32 (!%p353_p2), %s5048_s15, 7  ;;  %s2930_s24 = sshll.u32 (!%p353_p2), %s3381_s11, 4 }
  0x38   : > { %p398_p3 = scmp.lt.s32.totalorder (!%p353_p2), %s2930_s24, 31  ;;  %s3553_s18 = scalar_lea.vmem (!%p353_p2), [#allocation3], %s2928_s19 }
  0x39   : > { %s3555_s13 = scalar_lea.vmem (!%p353_p2), [#allocation4], %s2929_s20  ;;  %p2932_p4 = scmp.ne.s32.totalorder (!%p353_p2), %s3377_s10, 0 }
  0x3b   : > { %s5084_s24 = smov (!%p398_p3, %s2930_s24), 31  ;;  %407 = sbr.rel (%p2932_p4) target bundleno = 905 (0x389), region = 94 }
  0x3c   : > { %s2931_s25 = sshll.u32 %s5084_s24, 3 }
  0x3d   : > { %s3551_s7 = scalar_lea.vmem %s5035_s0, %s2931_s25 }
  0x40   : > { %v431_v8 = vld [vmem:[%s5036_s1 + $0x38] sm:$0xff]  ;;  %v430_v9 = vld [vmem:[%s5036_s1 + $0x30] sm:$0xff]  ;;  %v429_v10 = vld [vmem:[%s5036_s1 + $0x28] sm:$0xff]  ;;  %vm436_vm0 = vcmask 523264  }
  0x41   : > { %493 = vmatpush.msra.mxu0 %v431_v8  ;;  %v428_v11 = vld [vmem:[%s5036_s1 + $0x20] sm:$0xff]  ;;  %v427_v12 = vld [vmem:[%s5036_s1 + $0x18] sm:$0xff]  ;;  %v426_v13 = vld [vmem:[%s5036_s1 + $0x10] sm:$0xff] }
  0x42   : > { %v425_v14 = vld [vmem:[%s5036_s1 + $0x8] sm:$0xff]  ;;  %v424_v15 = vld [vmem:[%s5036_s1] sm:$0xff]  ;;  %v410_v18 = vld [vmem:[%s3551_s7 + $0x10] sm:$0xff] }
  0x43   : > { %494 = vmatpush.msra.mxu0 %v430_v9  ;;  %v408_v16 = vld [vmem:[%s3551_s7] sm:$0xff]  ;;  %v409_v17 = vld [vmem:[%s3551_s7 + $0x8] sm:$0xff]  ;;  %v411_v19 = vld [vmem:[%s3551_s7 + $0x18] sm:$0xff] }
  0x44   : > { %v412_v20 = vld [vmem:[%s3551_s7 + $0x20] sm:$0xff]  ;;  %v413_v21 = vld [vmem:[%s3551_s7 + $0x28] sm:$0xff]  ;;  %v414_v22 = vld [vmem:[%s3551_s7 + $0x30] sm:$0xff] }
  0x45   : > { %495 = vmatpush.msra.mxu0 %v429_v10  ;;  %v415_v23 = vld [vmem:[%s3551_s7 + $0x38] sm:$0xff]  ;;  %v416_v24 = vld [vmem:[%s3551_s7 + $0x40] sm:$0xff]  ;;  %v417_v25 = vld [vmem:[%s3551_s7 + $0x48] sm:$0xff] }
  0x46   : > { %v418_v26 = vld [vmem:[%s3551_s7 + $0x50] sm:$0xff]  ;;  %v419_v27 = vld [vmem:[%s3551_s7 + $0x58] sm:$0xff]  ;;  %v420_v28 = vld [vmem:[%s3551_s7 + $0x60] sm:$0xff] }
  0x47   : > { %496 = vmatpush.msra.mxu0 %v428_v11  ;;  %v421_v29 = vld [vmem:[%s3551_s7 + $0x68] sm:$0xff]  ;;  %v422_v30 = vld [vmem:[%s3551_s7 + $0x70] sm:$0xff]  ;;  %v1269_v31 = vld [vmem:[%s5038_s3 + $0x78] sm:$0xff] }
  0x48   : > { %v423_v32 = vld [vmem:[%s3551_s7 + $0x78] sm:$0xff]  ;;  %1274 = vmatpush.msra.mxu1 %v1269_v31  ;;  %3004 = vmatpush.msra.mxu3 %v1269_v31  ;;  %v1268_v33 = vld [vmem:[%s5038_s3 + $0x70] sm:$0xff]  ;;  %v1267_v34 = vld [vmem:[%s5038_s3 + $0x68] sm:$0xff] }
  0x49   : > { %497 = vmatpush.msra.mxu0 %v427_v12  ;;  %v3626_v35 = vld [vmem:[%s5037_s2] ss:$0 sm:$0xff]  ;;  %v1265_v37 = vld [vmem:[%s5038_s3 + $0x58] sm:$0xff]  ;;  %v1264_v40 = vld [vmem:[%s5038_s3 + $0x50] sm:$0xff] }
  0x4a   : > { %1275 = vmatpush.msra.mxu1 %v1268_v33  ;;  %3005 = vmatpush.msra.mxu3 %v1268_v33  ;;  %v1266_v36 = vld [vmem:[%s5038_s3 + $0x60] sm:$0xff]  ;;  %v1263_v42 = vld [vmem:[%s5038_s3 + $0x48] sm:$0xff]  ;;  %v1261_v46 = vld [vmem:[%s5038_s3 + $0x38] sm:$0xff] }
  0x4b   : > { %498 = vmatpush.msra.mxu0 %v426_v13  ;;  %v1262_v44 = vld [vmem:[%s5038_s3 + $0x40] sm:$0xff]  ;;  %v1260_v50 = vld [vmem:[%s5038_s3 + $0x30] sm:$0xff]  ;;  %v1259_v54 = vld [vmem:[%s5038_s3 + $0x28] sm:$0xff] }
  0x4c   : > { %1276 = vmatpush.msra.mxu1 %v1267_v34  ;;  %3006 = vmatpush.msra.mxu3 %v1267_v34  ;;  %v1258_v58 = vld [vmem:[%s5038_s3 + $0x20] sm:$0xff]  ;;  %v1257_v62 = vld [vmem:[%s5038_s3 + $0x18] sm:$0xff]  ;;  %v1256_v3 = vld [vmem:[%s5038_s3 + $0x10] sm:$0xff] }
  0x4d   : > { %499 = vmatpush.msra.mxu0 %v425_v14  ;;  %v1255_v8 = vld [vmem:[%s5038_s3 + $0x8] sm:$0xff]  ;;  %v1254_v13 = vld [vmem:[%s5038_s3] sm:$0xff] }
  0x4e   : > { %1277 = vmatpush.msra.mxu1 %v1266_v36  ;;  %3007 = vmatpush.msra.mxu3 %v1266_v36 }
  0x4f   : > { %500 = vmatpush.msra.mxu0 %v424_v15 }
  0x50   : > { %2933 = vmatmul.msk.f32.vlgmr.msra.gmra.mxu0 %vm436_vm0, %v408_v16  ;;  %1278 = vmatpush.msra.mxu1 %v1265_v37 }
  0x51   : > { %3008 = vmatpush.msra.mxu3 %v1265_v37 }
  0x52   : > { %1279 = vmatpush.msra.mxu1 %v1264_v40 }
  0x53   : > { %3009 = vmatpush.msra.mxu3 %v1264_v40 }
  0x54   : > { %1280 = vmatpush.msra.mxu1 %v1263_v42 }
  0x55   : > { %3010 = vmatpush.msra.mxu3 %v1263_v42 }
  0x56   : > { %1281 = vmatpush.msra.mxu1 %v1262_v44 }
  0x57   : > { %3011 = vmatpush.msra.mxu3 %v1262_v44 }
  0x58   : > { %2934 = vmatmul.msk.f32.gmra.mxu0 %vm436_vm0, %v409_v17  ;;  %1282 = vmatpush.msra.mxu1 %v1261_v46 }
  0x59   : > { %3012 = vmatpush.msra.mxu3 %v1261_v46 }
  0x5a   : > { %1283 = vmatpush.msra.mxu1 %v1260_v50 }
  0x5b   : > { %3013 = vmatpush.msra.mxu3 %v1260_v50 }
  0x5c   : > { %1284 = vmatpush.msra.mxu1 %v1259_v54 }
  0x5d   : > { %3014 = vmatpush.msra.mxu3 %v1259_v54 }
  0x5e   : > { %1285 = vmatpush.msra.mxu1 %v1258_v58 }
  0x5f   : > { %3015 = vmatpush.msra.mxu3 %v1258_v58 }
  0x60   : > { %2935 = vmatmul.msk.f32.gmra.mxu0 %vm436_vm0, %v410_v18  ;;  %1286 = vmatpush.msra.mxu1 %v1257_v62 }
  0x61   : > { %3016 = vmatpush.msra.mxu3 %v1257_v62 }
  0x62   : > { %1287 = vmatpush.msra.mxu1 %v1256_v3 }
  0x63   : > { %3017 = vmatpush.msra.mxu3 %v1256_v3 }
  0x64   : > { %1288 = vmatpush.msra.mxu1 %v1255_v8 }
  0x65   : > { %3018 = vmatpush.msra.mxu3 %v1255_v8 }
  0x66   : > { %1289 = vmatpush.msra.mxu1 %v1254_v13 }
  0x67   : > { %3019 = vmatpush.msra.mxu3 %v1254_v13 }
  0x68   : > { %2936 = vmatmul.msk.f32.gmra.mxu0 %vm436_vm0, %v411_v19 }
  0x70   : > { %2937 = vmatmul.msk.f32.gmra.mxu0 %vm436_vm0, %v412_v20 }
  0x78   : > { %2938 = vmatmul.msk.f32.gmra.mxu0 %vm436_vm0, %v413_v21 }
  0x80   : > { %2939 = vmatmul.msk.f32.gmra.mxu0 %vm436_vm0, %v414_v22 }
  0x88   : > { %2940 = vmatmul.msk.f32.gmra.mxu0 %vm436_vm0, %v415_v23 }
  0x90   : > { %2941 = vmatmul.msk.f32.gmra.mxu0 %vm436_vm0, %v416_v24 }
  0x98   : > { %2942 = vmatmul.msk.f32.gmra.mxu0 %vm436_vm0, %v417_v25 }
  0xa0   : > { %2943 = vmatmul.msk.f32.gmra.mxu0 %vm436_vm0, %v418_v26 }
  0xa8   : > { %2944 = vmatmul.msk.f32.gmra.mxu0 %vm436_vm0, %v419_v27 }
  0xb0   : > { %2945 = vmatmul.msk.f32.gmra.mxu0 %vm436_vm0, %v420_v28 }
  0xb8   : > { %2946 = vmatmul.msk.f32.gmra.mxu0 %vm436_vm0, %v421_v29 }
  0xc0   : > { %2947 = vmatmul.msk.f32.gmra.mxu0 %vm436_vm0, %v422_v30 }
  0xc8   : > { %2948 = vmatmul.msk.f32.gmra.mxu0 %vm436_vm0, %v423_v32 }
  0xcd   : > { %v502_v38 = vpop.f32.mrf.mxu0 }
  0xce   : > { %v3635_v39 = vadd.f32 %v3626_v35, %v502_v38 }
  0xd0   : > { %v3641_v41 = vmul.f32 0.70710677, %v3635_v39 }
  0xd2   : > { %v582_v43 = vmul.f32 %v3641_v41, %v3641_v41 }
  0xd4   : > { %v3651_v45 = vmin.f32 %v582_v43, 16.0 }
  0xd5   : > { %v505_v47 = vpop.f32.mrf.mxu0 }
  0xd6   : > { %v584_v48 = vmul.f32 2.1237322e-06, %v3651_v45  ;;  %v3658_v49 = vadd.f32 %v3626_v35, %v505_v47  ;;  %v595_v51 = vmul.f32 3.8918573e-05, %v3651_v45 }
  0xd8   : > { %v585_v52 = vadd.f32 0.00028619796, %v584_v48  ;;  %v3665_v53 = vmul.f32 0.70710677, %v3658_v49  ;;  %v596_v55 = vadd.f32 0.001143296, %v595_v51 }
  0xda   : > { %v586_v56 = vmul.f32 %v585_v52, %v3651_v45  ;;  %v622_v57 = vmul.f32 %v3665_v53, %v3665_v53  ;;  %v597_v59 = vmul.f32 %v596_v55, %v3651_v45 }
  0xdc   : > { %v587_v60 = vadd.f32 0.0036580483, %v586_v56  ;;  %v3677_v61 = vmin.f32 %v622_v57, 16.0  ;;  %v598_v0 = vadd.f32 0.014752088, %v597_v59 }
  0xdd   : > { %v508_v63 = vpop.f32.mrf.mxu0 }
  0xde   : > { %v624_v1 = vmul.f32 2.1237322e-06, %v3677_v61  ;;  %v3684_v2 = vadd.f32 %v3626_v35, %v508_v63  ;;  %v635_v4 = vmul.f32 3.8918573e-05, %v3677_v61  ;;  %v599_v5 = vmul.f32 %v598_v0, %v3651_v45 }
  0xdf   : > { %v588_v6 = vmul.f32 %v587_v60, %v3651_v45 }
  0xe0   : > { %v625_v7 = vadd.f32 0.00028619796, %v624_v1  ;;  %v3696_v9 = vmul.f32 0.70710677, %v3684_v2  ;;  %v600_v10 = vadd.f32 0.112945676, %v599_v5 }
  0xe1   : > { %v636_v11 = vadd.f32 0.001143296, %v635_v4  ;;  %v589_v17 = vadd.f32 0.05243302, %v588_v6 }
  0xe2   : > { %v626_v12 = vmul.f32 %v625_v7, %v3677_v61  ;;  %v662_v14 = vmul.f32 %v3696_v9, %v3696_v9  ;;  %v601_v15 = vmul.f32 %v600_v10, %v3651_v45 }
  0xe3   : > { %v637_v16 = vmul.f32 %v636_v11, %v3677_v61  ;;  %v590_v28 = vmul.f32 %v589_v17, %v3651_v45 }
  0xe4   : > { %v627_v18 = vadd.f32 0.0036580483, %v626_v12  ;;  %v3706_v19 = vmin.f32 %v662_v14, 16.0  ;;  %v602_v21 = vadd.f32 0.4994258, %v601_v15 }
  0xe5   : > { %v511_v20 = vpop.f32.mrf.mxu0  ;;  %v638_v22 = vadd.f32 0.014752088, %v637_v16  ;;  %v591_v38 = vadd.f32 0.18741608, %v590_v28 }
  0xe6   : > { %v3709_v23 = vadd.f32 %v3626_v35, %v511_v20  ;;  %v664_v24 = vmul.f32 2.1237322e-06, %v3706_v19  ;;  %v603_v25 = vmul.f32 %v602_v21, %v3651_v45  ;;  %v675_v27 = vmul.f32 3.8918573e-05, %v3706_v19 }
  0xe7   : > { %v639_v26 = vmul.f32 %v638_v22, %v3677_v61  ;;  %v628_v29 = vmul.f32 %v627_v18, %v3677_v61  ;;  %v592_v55 = vmul.f32 %v591_v38, %v3651_v45 }
  0xe8   : > { %v665_v30 = vadd.f32 0.00028619796, %v664_v24  ;;  %v3718_v31 = vmul.f32 0.70710677, %v3709_v23  ;;  %v604_v32 = vadd.f32 1.0, %v603_v25 }
  0xe9   : > { %v640_v33 = vadd.f32 0.112945676, %v639_v26  ;;  %v676_v34 = vadd.f32 0.001143296, %v675_v27  ;;  %v629_v42 = vadd.f32 0.05243302, %v628_v29 }
  0xea   : > { %v666_v36 = vmul.f32 %v665_v30, %v3706_v19  ;;  %v702_v37 = vmul.f32 %v3718_v31, %v3718_v31  ;;  %3153 = vrcp.f32 %v604_v32  ;;  %v593_v45 = vadd.f32 1.1283791, %v592_v55 }
  0xeb   : > { %v641_v40 = vmul.f32 %v640_v33, %v3677_v61  ;;  %v677_v47 = vmul.f32 %v676_v34, %v3706_v19  ;;  %v630_v58 = vmul.f32 %v629_v42, %v3677_v61  ;;  %v616_v10 = vand.u32 2147483648, %v604_v32 }
  0xec   : > { %v667_v43 = vadd.f32 0.0036580483, %v666_v36  ;;  %v3724_v44 = vmin.f32 %v702_v37, 16.0  ;;  %v614_v13 = vand.u32 2147483647, %v604_v32  ;;  %vm610_vm2 = vweird.f32 %v604_v32 }
  0xed   : > { %v514_v46 = vpop.f32.mrf.mxu0  ;;  %v642_v52 = vadd.f32 0.4994258, %v641_v40  ;;  %v678_v54 = vadd.f32 0.014752088, %v677_v47  ;;  %v631_v6 = vadd.f32 0.18741608, %v630_v58  ;;  %v594_v21 = vmul.f32 %v593_v45, %v3641_v41 }
  0xee   : > { %v3728_v48 = vadd.f32 %v3626_v35, %v514_v46  ;;  %v668_v50 = vmul.f32 %v667_v43, %v3706_v19  ;;  %v704_v51 = vmul.f32 2.1237322e-06, %v3724_v44  ;;  %v715_v17 = vmul.f32 3.8918573e-05, %v3724_v44 }
  0xef   : > { %v643_v59 = vmul.f32 %v642_v52, %v3677_v61  ;;  %v679_v60 = vmul.f32 %v678_v54, %v3706_v19  ;;  %v632_v22 = vmul.f32 %v631_v6, %v3677_v61  ;;  %v617_v25 = vor.u32 1.1754944e-38, %v616_v10 }
  0xf0   : > { %v3734_v56 = vmul.f32 0.70710677, %v3728_v48  ;;  %v3154_v57 = vpop.eup %3153  ;;  %v669_v62 = vadd.f32 0.05243302, %v668_v50  ;;  %v705_v1 = vadd.f32 0.00028619796, %v704_v51 }
  0xf1   : > { %v606_v0 = vmul.f32 %v3154_v57, %v604_v32  ;;  %v3741_v3 = vadd.f32 1.0, %v643_v59  ;;  %v680_v4 = vadd.f32 0.112945676, %v679_v60  ;;  %vm611_vm1 = vweird.f32 %v3154_v57 }
  0xf2   : > { %v742_v63 = vmul.f32 %v3734_v56, %v3734_v56  ;;  %v670_v14 = vmul.f32 %v669_v62, %v3706_v19  ;;  %v706_v15 = vmul.f32 %v705_v1, %v3724_v44  ;;  %vm612_vm3 = vmor %vm610_vm2, %vm611_vm1  ;;  %vm615_vm4 = vcmp.eq.f32.partialorder %v614_v13, 8.507059e+37 }
  0xf3   : > { %v607_v5 = vsub.f32 1.0, %v606_v0  ;;  %3155 = vrcp.f32 %v3741_v3  ;;  %v681_v16 = vmul.f32 %v680_v4, %v3706_v19  ;;  %v716_v36 = vadd.f32 0.001143296, %v715_v17 }
  0xf4   : > { %v3743_v7 = vmin.f32 %v742_v63, 16.0  ;;  %v671_v30 = vadd.f32 0.18741608, %v670_v14  ;;  %v707_v33 = vadd.f32 0.0036580483, %v706_v15  ;;  %v550_v46 = vmul.f32 0.5, %v3635_v39 }
  0xf5   : > { %v517_v8 = vpop.f32.mrf.mxu0  ;;  %v608_v12 = vmul.f32 %v3154_v57, %v607_v5  ;;  %v682_v28 = vadd.f32 0.4994258, %v681_v16  ;;  %v633_v37 = vadd.f32 1.1283791, %v632_v22  ;;  %v717_v43 = vmul.f32 %v716_v36, %v3724_v44 }
  0xf6   : > { %v3747_v11 = vadd.f32 %v3626_v35, %v517_v8  ;;  %v744_v24 = vmul.f32 2.1237322e-06, %v3743_v7  ;;  %v654_v51 = vand.u32 2147483647, %v3741_v3  ;;  %v672_v52 = vmul.f32 %v671_v30, %v3706_v19 }
  0xf7   : > { %v609_v20 = vadd.f32 %v3154_v57, %v608_v12  ;;  %v683_v42 = vmul.f32 %v682_v28, %v3706_v19  ;;  %v708_v54 = vmul.f32 %v707_v33, %v3724_v44  ;;  %v656_v60 = vand.u32 2147483648, %v3741_v3 }
  0xf8   : > { %v3754_v18 = vmul.f32 0.70710677, %v3747_v11  ;;  %v745_v38 = vadd.f32 0.00028619796, %v744_v24  ;;  %v718_v62 = vadd.f32 0.014752088, %v717_v43  ;;  %v634_v1 = vmul.f32 %v633_v37, %v3665_v53 }
  0xf9   : > { %v613_v27 = vsel %vm612_vm3, %v3154_v57, %v609_v20  ;;  %v3156_v29 = vpop.eup %3155  ;;  %v3771_v57 = vadd.f32 1.0, %v683_v42  ;;  %vm650_vm6 = vweird.f32 %v3741_v3  ;;  %v673_v45 = vadd.f32 1.1283791, %v672_v52 }
  0xfa   : > { %v782_v26 = vmul.f32 %v3754_v18, %v3754_v18  ;;  %v618_v34 = vsel %vm615_vm4, %v617_v25, %v613_v27  ;;  %v646_v61 = vmul.f32 %v3156_v29, %v3741_v3  ;;  %v746_v39 = vmul.f32 %v745_v38, %v3743_v7 }
  0xfb   : > { %v619_v41 = vmul.f32 %v618_v34, %v594_v21  ;;  %vm651_vm5 = vweird.f32 %v3156_v29  ;;  %3157 = vrcp.f32 %v3771_v57  ;;  %v657_v6 = vor.u32 1.1754944e-38, %v656_v60 }
  0xfc   : > { %v3761_v32 = vmin.f32 %v782_v26, 16.0  ;;  %v647_v55 = vsub.f32 1.0, %v646_v61  ;;  %vm652_vm7 = vmor %vm650_vm6, %vm651_vm5  ;;  %v719_v8 = vmul.f32 %v718_v62, %v3724_v44  ;;  %v709_v10 = vadd.f32 0.05243302, %v708_v54 }
  0xfd   : > { %v520_v40 = vpop.f32.mrf.mxu0  ;;  %v2949_v50 = vclamps-f32 %v619_v41, 1.0  ;;  %v747_v12 = vadd.f32 0.0036580483, %v746_v39  ;;  %vm655_vm8 = vcmp.eq.f32.partialorder %v654_v51, 8.507059e+37  ;;  %v755_v21 = vmul.f32 3.8918573e-05, %v3743_v7 }
  0xfe   : > { %v784_v47 = vmul.f32 2.1237322e-06, %v3761_v32  ;;  %v3774_v58 = vadd.f32 %v3626_v35, %v520_v40  ;;  %v648_v63 = vmul.f32 %v3156_v29, %v647_v55  ;;  %v720_v20 = vadd.f32 0.112945676, %v719_v8 }
  0xff   : > { %v1222_v59 = vadd.f32 1.0, %v2949_v50  ;;  %v551_v22 = vmul.f32 0.5, %v3658_v49  ;;  %v674_v24 = vmul.f32 %v673_v45, %v3696_v9  ;;  %v710_v27 = vmul.f32 %v709_v10, %v3724_v44 }
 0x100   : > { %v785_v0 = vadd.f32 0.00028619796, %v784_v47  ;;  %v649_v4 = vadd.f32 %v3156_v29, %v648_v63  ;;  %v3782_v5 = vmul.f32 0.70710677, %v3774_v58  ;;  %v748_v28 = vmul.f32 %v747_v12, %v3743_v7 }
 0x101   : > { %v1238_v19 = vmul.f32 %v1222_v59, %v550_v46  ;;  %v3158_v16 = vpop.eup %3157  ;;  %v694_v36 = vand.u32 2147483647, %v3771_v57  ;;  %v721_v49 = vmul.f32 %v720_v20, %v3724_v44  ;;  %v696_v61 = vand.u32 2147483648, %v3771_v57 }
 0x102   : > { %v653_v14 = vsel %vm652_vm7, %v3156_v29, %v649_v4  ;;  %v786_v15 = vmul.f32 %v785_v0, %v3761_v32  ;;  %v822_v25 = vmul.f32 %v3782_v5, %v3782_v5  ;;  %v686_v26 = vmul.f32 %v3158_v16, %v3771_v57 }
 0x103   : > { %1290 = vmatmul.f32.vlgmr.msra.gmra.mxu1 %v1238_v19  ;;  %v658_v3 = vsel %vm655_vm8, %v657_v6, %v653_v14  ;;  %v756_v37 = vadd.f32 0.001143296, %v755_v21  ;;  %vm691_vm9 = vweird.f32 %v3158_v16  ;;  %v722_v42 = vadd.f32 0.4994258, %v721_v49 }
 0x104   : > { %v659_v17 = vmul.f32 %v658_v3, %v634_v1  ;;  %v787_v33 = vadd.f32 0.0036580483, %v786_v15  ;;  %v687_v34 = vsub.f32 1.0, %v686_v26  ;;  %v3805_v38 = vmin.f32 %v822_v25, 16.0 }
 0x105   : > { %v523_v13 = vpop.f32.mrf.mxu0  ;;  %v749_v43 = vadd.f32 0.05243302, %v748_v28  ;;  %v757_v51 = vmul.f32 %v756_v37, %v3743_v7  ;;  %vm690_vm10 = vweird.f32 %v3771_v57  ;;  %v723_v55 = vmul.f32 %v722_v42, %v3724_v44 }
 0x106   : > { %v3787_v53 = vadd.f32 %v3626_v35, %v523_v13  ;;  %v2950_v30 = vclamps-f32 %v659_v17, 1.0  ;;  %v688_v40 = vmul.f32 %v3158_v16, %v687_v34  ;;  %v788_v59 = vmul.f32 %v787_v33, %v3761_v32  ;;  %vm692_vm11 = vmor %vm690_vm10, %vm691_vm9 }
 0x107   : > { %v697_v60 = vor.u32 1.1754944e-38, %v696_v61  ;;  %v758_v62 = vadd.f32 0.014752088, %v757_v51  ;;  %v795_v39 = vmul.f32 3.8918573e-05, %v3761_v32  ;;  %vm695_vm12 = vcmp.eq.f32.partialorder %v694_v36, 8.507059e+37 }
 0x108   : > { %v3798_v29 = vmul.f32 0.70710677, %v3787_v53  ;;  %v1223_v41 = vadd.f32 1.0, %v2950_v30  ;;  %v689_v54 = vadd.f32 %v3158_v16, %v688_v40  ;;  %v824_v63 = vmul.f32 2.1237322e-06, %v3805_v38 }
 0x109   : > { %v711_v1 = vadd.f32 0.18741608, %v710_v27  ;;  %v3822_v45 = vadd.f32 1.0, %v723_v55  ;;  %v750_v6 = vmul.f32 %v749_v43, %v3743_v7  ;;  %v759_v12 = vmul.f32 %v758_v62, %v3743_v7 }
 0x10a   : > { %v862_v9 = vmul.f32 %v3798_v29, %v3798_v29  ;;  %v1239_v47 = vmul.f32 %v1223_v41, %v551_v22  ;;  %v693_v19 = vsel %vm692_vm11, %v3158_v16, %v689_v54  ;;  %v789_v13 = vadd.f32 0.05243302, %v788_v59 }
 0x10b   : > { %v698_v4 = vsel %vm695_vm12, %v697_v60, %v693_v19  ;;  %3159 = vrcp.f32 %v3822_v45  ;;  %v796_v14 = vadd.f32 0.001143296, %v795_v39  ;;  %v825_v15 = vadd.f32 0.00028619796, %v824_v63 }
 0x10c   : > { %v3807_v46 = vmin.f32 %v862_v9, 16.0  ;;  %1293 = vmatmul.f32.gmra.mxu1 %v1239_v47  ;;  %v699_v10 = vmul.f32 %v698_v4, %v674_v24  ;;  %v552_v17 = vmul.f32 0.5, %v3684_v2  ;;  %v760_v22 = vadd.f32 0.112945676, %v759_v12 }
 0x10d   : > { %v526_v50 = vpop.f32.mrf.mxu0  ;;  %v712_v25 = vmul.f32 %v711_v1, %v3724_v44  ;;  %v751_v26 = vadd.f32 0.18741608, %v750_v6  ;;  %v790_v28 = vmul.f32 %v789_v13, %v3761_v32  ;;  %v797_v34 = vmul.f32 %v796_v14, %v3761_v32 }
 0x10e   : > { %v3811_v52 = vadd.f32 %v3626_v35, %v526_v50  ;;  %v864_v57 = vmul.f32 2.1237322e-06, %v3807_v46  ;;  %v2951_v16 = vclamps-f32 %v699_v10, 1.0  ;;  %v761_v33 = vmul.f32 %v760_v22, %v3743_v7 }
 0x10f   : > { %v826_v2 = vmul.f32 %v825_v15, %v3805_v38  ;;  %v3845_v9 = vmul.f32 0.5, %v3709_v23  ;;  %v713_v37 = vadd.f32 1.1283791, %v712_v25  ;;  %v752_v40 = vmul.f32 %v751_v26, %v3743_v7 }
 0x110   : > { %v3819_v0 = vmul.f32 0.70710677, %v3811_v52  ;;  %v865_v20 = vadd.f32 0.00028619796, %v864_v57  ;;  %v1224_v27 = vadd.f32 1.0, %v2951_v16  ;;  %v736_v39 = vand.u32 2147483648, %v3822_v45 }
 0x111   : > { %v3160_v44 = vpop.eup %3159  ;;  %v762_v61 = vadd.f32 0.4994258, %v761_v33  ;;  %v791_v47 = vadd.f32 0.18741608, %v790_v28  ;;  %v798_v54 = vadd.f32 0.014752088, %v797_v34  ;;  %v714_v6 = vmul.f32 %v713_v37, %v3718_v31 }
 0x112   : > { %v902_v8 = vmul.f32 %v3819_v0, %v3819_v0  ;;  %v1240_v36 = vmul.f32 %v1224_v27, %v552_v17  ;;  %v866_v41 = vmul.f32 %v865_v20, %v3807_v46  ;;  %v726_v43 = vmul.f32 %v3160_v44, %v3822_v45 }
 0x113   : > { %v763_v51 = vmul.f32 %v762_v61, %v3743_v7  ;;  %v827_v55 = vadd.f32 0.0036580483, %v826_v2  ;;  %v734_v60 = vand.u32 2147483647, %v3822_v45  ;;  %vm731_vm13 = vweird.f32 %v3160_v44 }
 0x114   : > { %v3829_v3 = vmin.f32 %v902_v8, 16.0  ;;  %1296 = vmatmul.f32.gmra.mxu1 %v1240_v36  ;;  %v727_v59 = vsub.f32 1.0, %v726_v43  ;;  %v867_v62 = vadd.f32 0.0036580483, %v866_v41  ;;  %v799_v7 = vmul.f32 %v798_v54, %v3761_v32 }
 0x115   : > { %v529_v21 = vpop.f32.mrf.mxu0  ;;  %v3857_v19 = vadd.f32 1.0, %v763_v51  ;;  %v753_v8 = vadd.f32 1.1283791, %v752_v40  ;;  %v792_v12 = vmul.f32 %v791_v47, %v3761_v32  ;;  %vm730_vm14 = vweird.f32 %v3822_v45 }
 0x116   : > { %v3834_v24 = vadd.f32 %v3626_v35, %v529_v21  ;;  %v904_v30 = vmul.f32 2.1237322e-06, %v3829_v3  ;;  %v728_v57 = vmul.f32 %v3160_v44, %v727_v59  ;;  %v828_v15 = vmul.f32 %v827_v55, %v3805_v38  ;;  %vm732_vm15 = vmor %vm730_vm14, %vm731_vm13 }
 0x117   : > { %3161 = vrcp.f32 %v3857_v19  ;;  %vm735_vm1 = vcmp.eq.f32.partialorder %v734_v60, 8.507059e+37  ;;  %v737_v16 = vor.u32 1.1754944e-38, %v736_v39  ;;  %v868_v31 = vmul.f32 %v867_v62, %v3807_v46 }
 0x118   : > { %v3842_v49 = vmul.f32 0.70710677, %v3834_v24  ;;  %v905_v50 = vadd.f32 0.00028619796, %v904_v30  ;;  %v729_v14 = vadd.f32 %v3160_v44, %v728_v57  ;;  %v800_v22 = vadd.f32 0.112945676, %v799_v7 }
 0x119   : > { %v3877_v25 = vmul.f32 0.5, %v3728_v48  ;;  %v3882_v28 = vmul.f32 0.5, %v3747_v11  ;;  %v793_v30 = vadd.f32 1.1283791, %v792_v12  ;;  %v754_v36 = vmul.f32 %v753_v8, %v3734_v56 }
 0x11a   : > { %v942_v42 = vmul.f32 %v3842_v49, %v3842_v49  ;;  %v906_v10 = vmul.f32 %v905_v50, %v3829_v3  ;;  %v733_v21 = vsel %vm732_vm15, %v3160_v44, %v729_v14  ;;  %v801_v34 = vmul.f32 %v800_v22, %v3761_v32 }
 0x11b   : > { %v738_v45 = vsel %vm735_vm1, %v737_v16, %v733_v21  ;;  %v829_v44 = vadd.f32 0.05243302, %v828_v15  ;;  %v835_v61 = vmul.f32 3.8918573e-05, %v3805_v38  ;;  %v869_v37 = vadd.f32 0.05243302, %v868_v31 }
 0x11c   : > { %v3853_v23 = vmin.f32 %v942_v42, 16.0  ;;  %v907_v26 = vadd.f32 0.0036580483, %v906_v10  ;;  %v739_v33 = vmul.f32 %v738_v45, %v714_v6  ;;  %v802_v50 = vadd.f32 0.4994258, %v801_v34 }
 0x11d   : > { %v532_v63 = vpop.f32.mrf.mxu0  ;;  %v3162_v2 = vpop.eup %3161  ;;  %v875_v51 = vmul.f32 3.8918573e-05, %v3807_v46  ;;  %v774_v55 = vand.u32 2147483647, %v3857_v19  ;;  %v776_v59 = vand.u32 2147483648, %v3857_v19  ;;  %v830_v6 = vmul.f32 %v829_v44, %v3805_v38 }
 0x11e   : > { %v944_v1 = vmul.f32 2.1237322e-06, %v3853_v23  ;;  %v3861_v4 = vadd.f32 %v3626_v35, %v532_v63  ;;  %v2952_v42 = vclamps-f32 %v739_v33, 1.0  ;;  %v766_v43 = vmul.f32 %v3162_v2, %v3857_v19 }
 0x11f   : > { %v908_v11 = vmul.f32 %v907_v26, %v3829_v3  ;;  %v803_v39 = vmul.f32 %v802_v50, %v3761_v32  ;;  %v836_v63 = vadd.f32 0.001143296, %v835_v61  ;;  %vm771_vm2 = vweird.f32 %v3162_v2 }
 0x120   : > { %v945_v13 = vadd.f32 0.00028619796, %v944_v1  ;;  %v3872_v17 = vmul.f32 0.70710677, %v3861_v4  ;;  %v1225_v56 = vadd.f32 1.0, %v2952_v42  ;;  %v767_v54 = vsub.f32 1.0, %v766_v43 }
 0x121   : > { %v3907_v10 = vadd.f32 1.0, %v803_v39  ;;  %v876_v12 = vadd.f32 0.001143296, %v875_v51  ;;  %v909_v14 = vadd.f32 0.05243302, %v908_v11  ;;  %vm770_vm3 = vweird.f32 %v3857_v19 }
 0x122   : > { %v946_v20 = vmul.f32 %v945_v13, %v3853_v23  ;;  %v982_v27 = vmul.f32 %v3872_v17, %v3872_v17  ;;  %v1241_v57 = vmul.f32 %v1225_v56, %v3845_v9  ;;  %v768_v7 = vmul.f32 %v3162_v2, %v767_v54  ;;  %vm772_vm4 = vmor %vm770_vm3, %vm771_vm2 }
 0x123   : > { %v870_v13 = vmul.f32 %v869_v37, %v3807_v46  ;;  %v777_v9 = vor.u32 1.1754944e-38, %v776_v59  ;;  %3163 = vrcp.f32 %v3907_v10  ;;  %vm775_vm5 = vcmp.eq.f32.partialorder %v774_v55, 8.507059e+37 }
 0x124   : > { %v3886_v41 = vmin.f32 %v982_v27, 16.0  ;;  %v947_v40 = vadd.f32 0.0036580483, %v946_v20  ;;  %1299 = vmatmul.f32.gmra.mxu1 %v1241_v57  ;;  %v769_v32 = vadd.f32 %v3162_v2, %v768_v7  ;;  %v837_v22 = vmul.f32 %v836_v63, %v3805_v38 }
 0x125   : > { %v535_v48 = vpop.f32.mrf.mxu0  ;;  %v877_v27 = vmul.f32 %v876_v12, %v3807_v46  ;;  %v915_v19 = vmul.f32 3.8918573e-05, %v3829_v3  ;;  %v3921_v33 = vmul.f32 0.5, %v3774_v58  ;;  %v3924_v34 = vmul.f32 0.5, %v3787_v53 }
 0x126   : > { %v3892_v47 = vadd.f32 %v3626_v35, %v535_v48  ;;  %v984_v60 = vmul.f32 2.1237322e-06, %v3886_v41  ;;  %v948_v1 = vmul.f32 %v947_v40, %v3853_v23  ;;  %v773_v21 = vsel %vm772_vm4, %v3162_v2, %v769_v32 }
 0x127   : > { %v778_v26 = vsel %vm775_vm5, %v777_v9, %v773_v21  ;;  %v831_v48 = vadd.f32 0.18741608, %v830_v6  ;;  %v871_v61 = vadd.f32 0.18741608, %v870_v13  ;;  %v3928_v37 = vmul.f32 0.5, %v3811_v52 }
 0x128   : > { %v3899_v62 = vmul.f32 0.70710677, %v3892_v47  ;;  %v985_v15 = vadd.f32 0.00028619796, %v984_v60  ;;  %v949_v20 = vadd.f32 0.05243302, %v948_v1  ;;  %v779_v44 = vmul.f32 %v778_v26, %v754_v36 }
 0x129   : > { %v794_v42 = vmul.f32 %v793_v30, %v3754_v18  ;;  %v838_v58 = vadd.f32 0.014752088, %v837_v22  ;;  %v3164_v50 = vpop.eup %3163  ;;  %v910_v53 = vmul.f32 %v909_v14, %v3829_v3  ;;  %v878_v51 = vadd.f32 0.014752088, %v877_v27 }
 0x12a   : > { %v1022_v8 = vmul.f32 %v3899_v62, %v3899_v62  ;;  %v986_v40 = vmul.f32 %v985_v15, %v3886_v41  ;;  %v2953_v43 = vclamps-f32 %v779_v44, 1.0  ;;  %v950_v36 = vmul.f32 %v949_v20, %v3853_v23 }
 0x12b   : > { %v916_v56 = vadd.f32 0.001143296, %v915_v19  ;;  %v806_v52 = vmul.f32 %v3164_v50, %v3907_v10  ;;  %v814_v30 = vand.u32 2147483647, %v3907_v10  ;;  %v839_v60 = vmul.f32 %v838_v58, %v3805_v38 }
 0x12c   : > { %v3911_v16 = vmin.f32 %v1022_v8, 16.0  ;;  %v1226_v54 = vadd.f32 1.0, %v2953_v43  ;;  %v987_v18 = vadd.f32 0.0036580483, %v986_v40  ;;  %v879_v39 = vmul.f32 %v878_v51, %v3807_v46 }
 0x12d   : > { %v538_v31 = vpop.f32.mrf.mxu0  ;;  %v807_v1 = vsub.f32 1.0, %v806_v52  ;;  %v917_v7 = vmul.f32 %v916_v56, %v3829_v3  ;;  %v832_v6 = vmul.f32 %v831_v48, %v3805_v38  ;;  %v816_v8 = vand.u32 2147483648, %v3907_v10 }
 0x12e   : > { %v3916_v45 = vadd.f32 %v3626_v35, %v538_v31  ;;  %v1024_v2 = vmul.f32 2.1237322e-06, %v3911_v16  ;;  %v1242_v63 = vmul.f32 %v1226_v54, %v3877_v25  ;;  %v840_v12 = vadd.f32 0.112945676, %v839_v60 }
 0x12f   : > { %v880_v13 = vadd.f32 0.112945676, %v879_v39  ;;  %v808_v32 = vmul.f32 %v3164_v50, %v807_v1  ;;  %vm811_vm6 = vweird.f32 %v3164_v50  ;;  %v918_v15 = vadd.f32 0.014752088, %v917_v7 }
 0x130   : > { %v3933_v11 = vmul.f32 0.70710677, %v3916_v45  ;;  %v1025_v55 = vadd.f32 0.00028619796, %v1024_v2  ;;  %1302 = vmatmul.f32.gmra.mxu1 %v1242_v63  ;;  %v911_v9 = vadd.f32 0.18741608, %v910_v53  ;;  %v841_v25 = vmul.f32 %v840_v12, %v3805_v38 }
 0x131   : > { %v951_v31 = vadd.f32 0.18741608, %v950_v36  ;;  %v881_v20 = vmul.f32 %v880_v13, %v3807_v46  ;;  %v809_v21 = vadd.f32 %v3164_v50, %v808_v32  ;;  %vm810_vm7 = vweird.f32 %v3907_v10 }
 0x132   : > { %v1062_v59 = vmul.f32 %v3933_v11, %v3933_v11  ;;  %v1026_v14 = vmul.f32 %v1025_v55, %v3911_v16  ;;  %v919_v27 = vmul.f32 %v918_v15, %v3829_v3  ;;  %v988_v19 = vmul.f32 %v987_v18, %v3886_v41  ;;  %vm812_vm8 = vmor %vm810_vm7, %vm811_vm6 }
 0x133   : > { %v817_v44 = vor.u32 1.1754944e-38, %v816_v8  ;;  %v842_v2 = vadd.f32 0.4994258, %v841_v25  ;;  %v813_v43 = vsel %vm812_vm8, %v3164_v50, %v809_v21  ;;  %vm815_vm9 = vcmp.eq.f32.partialorder %v814_v30, 8.507059e+37 }
 0x134   : > { %v3944_v57 = vmin.f32 %v1062_v59, 16.0  ;;  %v1027_v40 = vadd.f32 0.0036580483, %v1026_v14  ;;  %v882_v58 = vadd.f32 0.4994258, %v881_v20  ;;  %v872_v59 = vmul.f32 %v871_v61, %v3807_v46 }
 0x135   : > { %v541_v26 = vpop.f32.mrf.mxu0  ;;  %v818_v53 = vsel %vm815_vm9, %v817_v44, %v813_v43  ;;  %v843_v10 = vmul.f32 %v842_v2, %v3805_v38  ;;  %v920_v36 = vadd.f32 0.112945676, %v919_v27  ;;  %v955_v51 = vmul.f32 3.8918573e-05, %v3853_v23 }
 0x136   : > { %v1064_v22 = vmul.f32 2.1237322e-06, %v3944_v57  ;;  %v3957_v48 = vadd.f32 %v3626_v35, %v541_v26  ;;  %v819_v56 = vmul.f32 %v818_v53, %v794_v42  ;;  %v883_v52 = vmul.f32 %v882_v58, %v3807_v46 }
 0x137   : > { %v912_v18 = vmul.f32 %v911_v9, %v3829_v3  ;;  %v952_v50 = vmul.f32 %v951_v31, %v3853_v23  ;;  %v3968_v30 = vadd.f32 1.0, %v843_v10  ;;  %v989_v60 = vadd.f32 0.05243302, %v988_v19 }
 0x138   : > { %v1065_v54 = vadd.f32 0.00028619796, %v1064_v22  ;;  %v3962_v55 = vmul.f32 0.70710677, %v3957_v48  ;;  %v2954_v38 = vclamps-f32 %v819_v56, 1.0  ;;  %v3972_v42 = vadd.f32 1.0, %v883_v52 }
 0x139   : > { %v833_v63 = vadd.f32 1.1283791, %v832_v6  ;;  %3165 = vrcp.f32 %v3968_v30  ;;  %v921_v1 = vmul.f32 %v920_v36, %v3829_v3  ;;  %v956_v7 = vadd.f32 0.001143296, %v955_v51 }
 0x13a   : > { %v1102_v39 = vmul.f32 %v3962_v55, %v3962_v55  ;;  %v1028_v46 = vmul.f32 %v1027_v40, %v3911_v16  ;;  %v1227_v61 = vadd.f32 1.0, %v2954_v38  ;;  %v1066_v8 = vmul.f32 %v1065_v54, %v3944_v57 }
 0x13b   : > { %v873_v14 = vadd.f32 1.1283791, %v872_v59  ;;  %v913_v32 = vadd.f32 1.1283791, %v912_v18  ;;  %v3981_v15 = vmul.f32 0.5, %v3834_v24  ;;  %3167 = vrcp.f32 %v3972_v42 }
 0x13c   : > { %v3978_v12 = vmin.f32 %v1102_v39, 16.0  ;;  %v953_v6 = vadd.f32 1.1283791, %v952_v50  ;;  %v990_v9 = vmul.f32 %v989_v60, %v3886_v41  ;;  %v1243_v31 = vmul.f32 %v1227_v61, %v3882_v28 }
 0x13d   : > { %v544_v13 = vpop.f32.mrf.mxu0  ;;  %v3988_v20 = vmul.f32 0.5, %v3861_v4  ;;  %v922_v22 = vadd.f32 0.4994258, %v921_v1  ;;  %v957_v26 = vmul.f32 %v956_v7, %v3853_v23  ;;  %v834_v24 = vmul.f32 %v833_v63, %v3782_v5 }
 0x13e   : > { %v1104_v25 = vmul.f32 2.1237322e-06, %v3978_v12  ;;  %v3991_v21 = vadd.f32 %v3626_v35, %v544_v13  ;;  %v1029_v27 = vadd.f32 0.05243302, %v1028_v46  ;;  %1305 = vmatmul.f32.gmra.mxu1 %v1243_v31  ;;  %v1067_v19 = vadd.f32 0.0036580483, %v1066_v8 }
 0x13f   : > { %v3166_v2 = vpop.eup %3165  ;;  %v874_v28 = vmul.f32 %v873_v14, %v3798_v29  ;;  %v3997_v40 = vmul.f32 %v913_v32, %v3819_v0  ;;  %v4000_v4 = vmul.f32 0.5, %v3892_v47  ;;  %v4006_v43 = vmul.f32 %v953_v6, %v3842_v49 }
 0x140   : > { %v1105_v44 = vadd.f32 0.00028619796, %v1104_v25  ;;  %v4003_v35 = vmul.f32 0.70710677, %v3991_v21  ;;  %v991_v5 = vadd.f32 0.18741608, %v990_v9  ;;  %v846_v53 = vmul.f32 %v3166_v2, %v3968_v30 }
 0x141   : > { %v4009_v58 = vmul.f32 0.5, %v3916_v45  ;;  %v3168_v10 = vpop.eup %3167  ;;  %v923_v47 = vmul.f32 %v922_v22, %v3829_v3  ;;  %v958_v36 = vadd.f32 0.014752088, %v957_v26  ;;  %v1030_v51 = vmul.f32 %v1029_v27, %v3911_v16  ;;  %v3281_v27 = vld [vmem:[%s5037_s2] ss:$0 sm:$0xff] }
 0x142   : > { %v1106_v29 = vmul.f32 %v1105_v44, %v3978_v12  ;;  %v1142_v0 = vmul.f32 %v4003_v35, %v4003_v35  ;;  %v1068_v49 = vmul.f32 %v1067_v19, %v3944_v57  ;;  %v847_v56 = vsub.f32 1.0, %v846_v53 }
 0x143   : > { %v886_v54 = vmul.f32 %v3168_v10, %v3972_v42  ;;  %vm850_vm10 = vweird.f32 %v3968_v30  ;;  %v854_v45 = vand.u32 2147483647, %v3968_v30  ;;  %v856_v52 = vand.u32 2147483648, %v3968_v30 }
 0x144   : > { %v4022_v59 = vadd.f32 1.0, %v923_v47  ;;  %v848_v18 = vmul.f32 %v3166_v2, %v847_v56  ;;  %vm851_vm11 = vweird.f32 %v3166_v2  ;;  %v896_v3 = vand.u32 2147483648, %v3972_v42 }
 0x145   : > { %v887_v50 = vsub.f32 1.0, %v886_v54  ;;  %v1107_v60 = vadd.f32 0.0036580483, %v1106_v29  ;;  %v4025_v38 = vmin.f32 %v1142_v0, 16.0  ;;  %v959_v39 = vmul.f32 %v958_v36, %v3853_v23  ;;  %vm852_vm13 = vmor %vm850_vm10, %vm851_vm11  ;;  %v547_v8 = vpop.f32.mrf.mxu0 }
 0x146   : > { %3169 = vrcp.f32 %v4022_v59  ;;  %v849_v63 = vadd.f32 %v3166_v2, %v848_v18  ;;  %vm891_vm12 = vweird.f32 %v3168_v10  ;;  %v894_v7 = vand.u32 2147483647, %v3972_v42 }
 0x147   : > { %v888_v1 = vmul.f32 %v3168_v10, %v887_v50  ;;  %v1069_v46 = vadd.f32 0.05243302, %v1068_v49  ;;  %vm855_vm14 = vcmp.eq.f32.partialorder %v854_v45, 8.507059e+37  ;;  %v857_v61 = vor.u32 1.1754944e-38, %v856_v52 }
 0x148   : > { %v995_v13 = vmul.f32 3.8918573e-05, %v3886_v41  ;;  %v853_v14 = vsel %vm852_vm13, %v3166_v2, %v849_v63  ;;  %vm890_vm15 = vweird.f32 %v3972_v42  ;;  %v897_v6 = vor.u32 1.1754944e-38, %v896_v3 }
 0x149   : > { %v889_v32 = vadd.f32 %v3168_v10, %v888_v1  ;;  %v858_v9 = vsel %vm855_vm14, %v857_v61, %v853_v14  ;;  %v1108_v31 = vmul.f32 %v1107_v60, %v3978_v12  ;;  %vm892_vm1 = vmor %vm890_vm15, %vm891_vm12  ;;  %v1144_v25 = vmul.f32 2.1237322e-06, %v4025_v38 }
 0x14a   : > { %v960_v22 = vadd.f32 0.112945676, %v959_v39  ;;  %v859_v26 = vmul.f32 %v858_v9, %v834_v24  ;;  %vm895_vm2 = vcmp.eq.f32.partialorder %v894_v7, 8.507059e+37  ;;  %v4039_v19 = vadd.f32 %v3281_v27, %v547_v8 }
 0x14b   : > { %v893_v30 = vsel %vm892_vm1, %v3168_v10, %v889_v32  ;;  %v992_v42 = vmul.f32 %v991_v5, %v3886_v41  ;;  %v996_v29 = vadd.f32 0.001143296, %v995_v13  ;;  %v1031_v0 = vadd.f32 0.18741608, %v1030_v51 }
 0x14c   : > { %v3170_v44 = vpop.eup %3169  ;;  %v898_v2 = vsel %vm895_vm2, %v897_v6, %v893_v30  ;;  %v961_v53 = vmul.f32 %v960_v22, %v3853_v23  ;;  %v2955_v47 = vclamps-f32 %v859_v26, 1.0  ;;  %v1070_v10 = vmul.f32 %v1069_v46, %v3944_v57 }
 0x14d   : > { %v899_v36 = vmul.f32 %v898_v2, %v874_v28  ;;  %v926_v24 = vmul.f32 %v3170_v44, %v4022_v59  ;;  %v1109_v49 = vadd.f32 0.05243302, %v1108_v31  ;;  %v1145_v56 = vadd.f32 0.00028619796, %v1144_v25 }
 0x14e   : > { %v962_v54 = vadd.f32 0.4994258, %v961_v53  ;;  %v1228_v45 = vadd.f32 1.0, %v2955_v47  ;;  %v4046_v50 = vmul.f32 0.70710677, %v4039_v19  ;;  %vm930_vm3 = vweird.f32 %v4022_v59 }
 0x14f   : > { %v2956_v52 = vclamps-f32 %v899_v36, 1.0  ;;  %v927_v18 = vsub.f32 1.0, %v926_v24  ;;  %v936_v5 = vand.u32 2147483648, %v4022_v59  ;;  %v997_v28 = vmul.f32 %v996_v29, %v3886_v41 }
 0x150   : > { %v963_v51 = vmul.f32 %v962_v54, %v3853_v23  ;;  %v1244_v3 = vmul.f32 %v1228_v45, %v3921_v33  ;;  %vm931_vm4 = vweird.f32 %v3170_v44  ;;  %v934_v39 = vand.u32 2147483647, %v4022_v59 }
 0x151   : > { %v928_v60 = vmul.f32 %v3170_v44, %v927_v18  ;;  %v1110_v63 = vmul.f32 %v1109_v49, %v3978_v12  ;;  %v1146_v1 = vmul.f32 %v1145_v56, %v4025_v38  ;;  %v998_v46 = vadd.f32 0.014752088, %v997_v28  ;;  %vm932_vm5 = vmor %vm930_vm3, %vm931_vm4 }
 0x152   : > { %v4056_v7 = vadd.f32 1.0, %v963_v51  ;;  %1308 = vmatmul.f32.gmra.mxu1 %v1244_v3  ;;  %v1229_v61 = vadd.f32 1.0, %v2956_v52  ;;  %v1182_v23 = vmul.f32 %v4046_v50, %v4046_v50  ;;  %v1035_v13 = vmul.f32 3.8918573e-05, %v3911_v16 }
 0x153   : > { %v929_v8 = vadd.f32 %v3170_v44, %v928_v60  ;;  %v1071_v33 = vadd.f32 0.18741608, %v1070_v10  ;;  %v937_v14 = vor.u32 1.1754944e-38, %v936_v5  ;;  %v1075_v32 = vmul.f32 3.8918573e-05, %v3944_v57 }
 0x154   : > { %3171 = vrcp.f32 %v4056_v7  ;;  %v4065_v6 = vadd.f32 1.1283791, %v992_v42  ;;  %vm935_vm6 = vcmp.eq.f32.partialorder %v934_v39, 8.507059e+37  ;;  %v999_v31 = vmul.f32 %v998_v46, %v3886_v41 }
 0x155   : > { %v933_v9 = vsel %vm932_vm5, %v3170_v44, %v929_v8  ;;  %v1111_v25 = vadd.f32 0.18741608, %v1110_v63  ;;  %v1147_v22 = vadd.f32 0.0036580483, %v1146_v1  ;;  %v1036_v30 = vadd.f32 0.001143296, %v1035_v13 }
 0x156   : > { %v938_v26 = vsel %vm935_vm6, %v937_v14, %v933_v9  ;;  %v1245_v27 = vmul.f32 %v1229_v61, %v3924_v34  ;;  %v4070_v2 = vmin.f32 %v1182_v23, 16.0  ;;  %v1000_v53 = vadd.f32 0.112945676, %v999_v31 }
 0x157   : > { %v939_v59 = vmul.f32 %v938_v26, %v3997_v40  ;;  %v1032_v29 = vmul.f32 %v1031_v0, %v3911_v16  ;;  %v4074_v42 = vmul.f32 %v1071_v33, %v3944_v57  ;;  %v1037_v44 = vmul.f32 %v1036_v30, %v3911_v16 }
 0x158   : > { %v1076_v47 = vadd.f32 0.001143296, %v1075_v32  ;;  %v1001_v24 = vmul.f32 %v1000_v53, %v3886_v41  ;;  %v1115_v10 = vmul.f32 3.8918573e-05, %v3978_v12  ;;  %v1155_v34 = vmul.f32 3.8918573e-05, %v4025_v38 }
 0x159   : > { %v2957_v36 = vclamps-f32 %v939_v59, 1.0  ;;  %v4081_v40 = vmul.f32 %v1111_v25, %v3978_v12  ;;  %v1148_v56 = vmul.f32 %v1147_v22, %v4025_v38  ;;  %v1038_v0 = vadd.f32 0.014752088, %v1037_v44 }
 0x15a   : > { %v3172_v49 = vpop.eup %3171  ;;  %v1077_v54 = vmul.f32 %v1076_v47, %v3944_v57  ;;  %1311 = vmatmul.f32.gmra.mxu1 %v1245_v27  ;;  %v1184_v52 = vmul.f32 2.1237322e-06, %v4070_v2  ;;  %v1002_v5 = vadd.f32 0.4994258, %v1001_v24  ;;  %v974_v51 = vand.u32 2147483647, %v4056_v7 }
 0x15b   : > { %v1230_v45 = vadd.f32 1.0, %v2957_v36  ;;  %v966_v18 = vmul.f32 %v3172_v49, %v4056_v7  ;;  %v1039_v28 = vmul.f32 %v1038_v0, %v3911_v16  ;;  %v1116_v60 = vadd.f32 0.001143296, %v1115_v10 }
 0x15c   : > { %v1078_v3 = vadd.f32 0.014752088, %v1077_v54  ;;  %v976_v63 = vand.u32 2147483648, %v4056_v7  ;;  %v1003_v1 = vmul.f32 %v1002_v5, %v3886_v41  ;;  %v1156_v46 = vadd.f32 0.001143296, %v1155_v34 }
 0x15d   : > { %v967_v39 = vsub.f32 1.0, %v966_v18  ;;  %vm971_vm7 = vweird.f32 %v3172_v49  ;;  %v1040_v61 = vadd.f32 0.112945676, %v1039_v28  ;;  %v1117_v23 = vmul.f32 %v1116_v60, %v3978_v12 }
 0x15e   : > { %v1079_v8 = vmul.f32 %v1078_v3, %v3944_v57  ;;  %v1246_v13 = vmul.f32 %v1230_v45, %v3928_v37  ;;  %v4094_v14 = vadd.f32 1.0, %v1003_v1  ;;  %v1157_v32 = vmul.f32 %v1156_v46, %v4025_v38 }
 0x15f   : > { %v968_v33 = vmul.f32 %v3172_v49, %v967_v39  ;;  %v1149_v9 = vadd.f32 0.05243302, %v1148_v56  ;;  %v1041_v31 = vmul.f32 %v1040_v61, %v3911_v16  ;;  %v1118_v22 = vadd.f32 0.014752088, %v1117_v23 }
 0x160   : > { %v1080_v25 = vadd.f32 0.112945676, %v1079_v8  ;;  %vm970_vm8 = vweird.f32 %v4056_v7  ;;  %3173 = vrcp.f32 %v4094_v14  ;;  %v1195_v26 = vmul.f32 3.8918573e-05, %v4070_v2 }
 0x161   : > { %v969_v41 = vadd.f32 %v3172_v49, %v968_v33  ;;  %v1185_v30 = vadd.f32 0.00028619796, %v1184_v52  ;;  %vm972_vm9 = vmor %vm970_vm8, %vm971_vm7  ;;  %v977_v37 = vor.u32 1.1754944e-38, %v976_v63  ;;  %v1042_v27 = vadd.f32 0.4994258, %v1041_v31 }
 0x162   : > { %v1081_v59 = vmul.f32 %v1080_v25, %v3944_v57  ;;  %1314 = vmatmul.f32.gmra.mxu1 %v1246_v13  ;;  %vm975_vm10 = vcmp.eq.f32.partialorder %v974_v51, 8.507059e+37  ;;  %v1119_v44 = vmul.f32 %v1118_v22, %v3978_v12  ;;  %v1158_v47 = vadd.f32 0.014752088, %v1157_v32 }
 0x163   : > { %v973_v53 = vsel %vm972_vm9, %v3172_v49, %v969_v41  ;;  %v1150_v36 = vmul.f32 %v1149_v9, %v4025_v38  ;;  %v1043_v24 = vmul.f32 %v1042_v27, %v3911_v16  ;;  %v1196_v54 = vadd.f32 0.001143296, %v1195_v26 }
 0x164   : > { %v978_v7 = vsel %vm975_vm10, %v977_v37, %v973_v53  ;;  %v1082_v10 = vadd.f32 0.4994258, %v1081_v59  ;;  %v1120_v56 = vadd.f32 0.112945676, %v1119_v44  ;;  %v1159_v0 = vmul.f32 %v1158_v47, %v4025_v38 }
 0x165   : > { %v979_v34 = vmul.f32 %v978_v7, %v4006_v43  ;;  %v994_v45 = vmul.f32 %v4065_v6, %v3872_v17  ;;  %v1033_v49 = vadd.f32 1.1283791, %v1032_v29  ;;  %v4110_v52 = vadd.f32 1.0, %v1043_v24 }
 0x166   : > { %v1083_v18 = vmul.f32 %v1082_v10, %v3944_v57  ;;  %v3174_v5 = vpop.eup %3173  ;;  %v1121_v28 = vmul.f32 %v1120_v56, %v3978_v12  ;;  %v1160_v16 = vadd.f32 0.112945676, %v1159_v0  ;;  %v1197_v3 = vmul.f32 %v1196_v54, %v4070_v2 }
 0x167   : > { %v2958_v51 = vclamps-f32 %v979_v34, 1.0  ;;  %v1073_v43 = vadd.f32 1.1283791, %v4074_v42  ;;  %v1186_v60 = vmul.f32 %v1185_v30, %v4070_v2  ;;  %v1006_v39 = vmul.f32 %v3174_v5, %v4094_v14 }
 0x168   : > { %3175 = vrcp.f32 %v4110_v52  ;;  %v1113_v17 = vadd.f32 1.1283791, %v4081_v40  ;;  %v1151_v6 = vadd.f32 0.18741608, %v1150_v36  ;;  %v4120_v57 = vadd.f32 1.0, %v1083_v18 }
 0x169   : > { %v1231_v29 = vadd.f32 1.0, %v2958_v51  ;;  %v1007_v63 = vsub.f32 1.0, %v1006_v39  ;;  %v1122_v1 = vadd.f32 0.4994258, %v1121_v28  ;;  %v1161_v46 = vmul.f32 %v1160_v16, %v4025_v38 }
 0x16a   : > { %v1198_v61 = vadd.f32 0.014752088, %v1197_v3  ;;  %v1034_v8 = vmul.f32 %v1033_v49, %v3899_v62  ;;  %v1016_v23 = vand.u32 2147483648, %v4094_v14  ;;  %3177 = vrcp.f32 %v4120_v57 }
 0x16b   : > { %v1247_v42 = vmul.f32 %v1231_v29, %v3981_v15  ;;  %v1187_v13 = vadd.f32 0.0036580483, %v1186_v60  ;;  %v1008_v33 = vmul.f32 %v3174_v5, %v1007_v63  ;;  %vm1011_vm11 = vweird.f32 %v3174_v5 }
 0x16c   : > { %v1014_v40 = vand.u32 2147483647, %v4094_v14  ;;  %v4129_v32 = vmul.f32 %v1073_v43, %v3933_v11  ;;  %v1123_v9 = vmul.f32 %v1122_v1, %v3978_v12  ;;  %v1162_v31 = vadd.f32 0.4994258, %v1161_v46 }
 0x16d   : > { %1317 = vmatmul.f32.gmra.mxu1 %v1247_v42  ;;  %v1199_v62 = vmul.f32 %v1198_v61, %v4070_v2  ;;  %v4134_v15 = vmul.f32 %v1113_v17, %v3962_v55  ;;  %v1152_v22 = vmul.f32 %v1151_v6, %v4025_v38  ;;  %v1009_v41 = vadd.f32 %v3174_v5, %v1008_v33 }
 0x16e   : > { %v3176_v25 = vpop.eup %3175  ;;  %vm1010_vm12 = vweird.f32 %v4094_v14  ;;  %v1017_v26 = vor.u32 1.1754944e-38, %v1016_v23  ;;  %v4139_v30 = vadd.f32 1.0, %v1123_v9  ;;  %v1163_v12 = vmul.f32 %v1162_v31, %v4025_v38  ;;  %v4169_v9 = vld [vmem:[%s5039_s4] ss:$0 sm:$0xff] }
 0x16f   : > { %vm1012_vm13 = vmor %vm1010_vm12, %vm1011_vm11  ;;  %v1046_v11 = vmul.f32 %v3176_v25, %v4110_v52  ;;  %v1188_v37 = vmul.f32 %v1187_v13, %v4070_v2  ;;  %vm1015_vm14 = vcmp.eq.f32.partialorder %v1014_v40, 8.507059e+37  ;;  %v1200_v59 = vadd.f32 0.112945676, %v1199_v62 }
 0x170   : > { %v1013_v27 = vsel %vm1012_vm13, %v3174_v5, %v1009_v41  ;;  %v3178_v55 = vpop.eup %3177  ;;  %v1056_v47 = vand.u32 2147483648, %v4110_v52  ;;  %3179 = vrcp.f32 %v4139_v30  ;;  %v4145_v14 = vadd.f32 1.1283791, %v1152_v22 }
 0x171   : > { %v1018_v53 = vsel %vm1015_vm14, %v1017_v26, %v1013_v27  ;;  %v1047_v44 = vsub.f32 1.0, %v1046_v11  ;;  %v1054_v7 = vand.u32 2147483647, %v4110_v52  ;;  %v1086_v24 = vmul.f32 %v3178_v55, %v4120_v57 }
 0x172   : > { %v1019_v36 = vmul.f32 %v1018_v53, %v994_v45  ;;  %vm1051_vm15 = vweird.f32 %v3176_v25  ;;  %v4149_v10 = vadd.f32 1.0, %v1163_v12  ;;  %v1201_v34 = vmul.f32 %v1200_v59, %v4070_v2 }
 0x173   : > { %v1048_v38 = vmul.f32 %v3176_v25, %v1047_v44  ;;  %v1189_v56 = vadd.f32 0.05243302, %v1188_v37  ;;  %vm1050_vm1 = vweird.f32 %v4110_v52  ;;  %v1087_v54 = vsub.f32 1.0, %v1086_v24 }
 0x174   : > { %v2959_v0 = vclamps-f32 %v1019_v36, 1.0  ;;  %v1057_v18 = vor.u32 1.1754944e-38, %v1056_v47  ;;  %v1096_v5 = vand.u32 2147483648, %v4120_v57  ;;  %3181 = vrcp.f32 %v4149_v10  ;;  %vm1052_vm2 = vmor %vm1050_vm1, %vm1051_vm15 }
 0x175   : > { %v1049_v49 = vadd.f32 %v3176_v25, %v1048_v38  ;;  %v1088_v51 = vmul.f32 %v3178_v55, %v1087_v54  ;;  %vm1091_vm3 = vweird.f32 %v3178_v55  ;;  %v1094_v28 = vand.u32 2147483647, %v4120_v57 }
 0x176   : > { %v1232_v45 = vadd.f32 1.0, %v2959_v0  ;;  %v3180_v16 = vpop.eup %3179  ;;  %vm1055_vm4 = vcmp.eq.f32.partialorder %v1054_v7, 8.507059e+37  ;;  %vm1090_vm5 = vweird.f32 %v4120_v57  ;;  %v1202_v43 = vadd.f32 0.4994258, %v1201_v34 }
 0x177   : > { %v1053_v3 = vsel %vm1052_vm2, %v3176_v25, %v1049_v49  ;;  %v1089_v39 = vadd.f32 %v3178_v55, %v1088_v51  ;;  %v1126_v17 = vmul.f32 %v3180_v16, %v4139_v30  ;;  %vm1092_vm6 = vmor %vm1090_vm5, %vm1091_vm3  ;;  %v1097_v29 = vor.u32 1.1754944e-38, %v1096_v5 }
 0x178   : > { %v1248_v52 = vmul.f32 %v1232_v45, %v3988_v20  ;;  %v1058_v60 = vsel %vm1055_vm4, %v1057_v18, %v1053_v3  ;;  %v1134_v63 = vand.u32 2147483647, %v4139_v30  ;;  %v1136_v1 = vand.u32 2147483648, %v4139_v30 }
 0x179   : > { %v1059_v6 = vmul.f32 %v1058_v60, %v1034_v8  ;;  %v1093_v46 = vsel %vm1092_vm6, %v3178_v55, %v1089_v39  ;;  %vm1095_vm7 = vcmp.eq.f32.partialorder %v1094_v28, 8.507059e+37  ;;  %v1127_v61 = vsub.f32 1.0, %v1126_v17 }
 0x17a   : > { %1320 = vmatmul.f32.gmra.mxu1 %v1248_v52  ;;  %v1203_v57 = vmul.f32 %v1202_v43, %v4070_v2  ;;  %v3182_v42 = vpop.eup %3181  ;;  %v1190_v20 = vmul.f32 %v1189_v56, %v4070_v2  ;;  %v1098_v13 = vsel %vm1095_vm7, %v1097_v29, %v1093_v46  ;;  %vm1130_vm8 = vweird.f32 %v4139_v30 }
 0x17b   : > { %v2960_v23 = vclamps-f32 %v1059_v6, 1.0  ;;  %v1099_v8 = vmul.f32 %v1098_v13, %v4129_v32  ;;  %v1128_v33 = vmul.f32 %v3180_v16, %v1127_v61  ;;  %vm1131_vm9 = vweird.f32 %v3180_v16 }
 0x17c   : > { %v1166_v40 = vmul.f32 %v3182_v42, %v4149_v10  ;;  %vm4171_vm10 = vcmp.eq.f32.partialorder %v1134_v63, 8.507059e+37  ;;  %v1137_v22 = vor.u32 1.1754944e-38, %v1136_v1  ;;  %v1204_v41 = vadd.f32 1.0, %v1203_v57  ;;  %vm1132_vm11 = vmor %vm1130_vm8, %vm1131_vm9  ;;  %v2058_v1 = vld [vmem:[%s5040_s5 + $0x78] sm:$0xff] }
 0x17d   : > { %v1233_v62 = vadd.f32 1.0, %v2960_v23  ;;  %v2961_v26 = vclamps-f32 %v1099_v8, 1.0  ;;  %v1129_v11 = vadd.f32 %v3180_v16, %v1128_v33  ;;  %v1174_v27 = vand.u32 2147483647, %v4149_v10  ;;  %2063 = vmatpush.msra.mxu2 %v2058_v1  ;;  %3020 = vmatpush.msrb.mxu3 %v2058_v1 }
 0x17e   : > { %v1167_v32 = vsub.f32 1.0, %v1166_v40  ;;  %v1176_v59 = vand.u32 2147483648, %v4149_v10  ;;  %3183 = vrcp.f32 %v1204_v41  ;;  %vm1171_vm12 = vweird.f32 %v3182_v42 }
 0x17f   : > { %v1249_v37 = vmul.f32 %v1233_v62, %v4000_v4  ;;  %v1234_v55 = vadd.f32 1.0, %v2961_v26  ;;  %v1133_v53 = vsel %vm1132_vm11, %v3180_v16, %v1129_v11  ;;  %v1191_v47 = vadd.f32 0.18741608, %v1190_v20 }
 0x180   : > { %v1291_v31 = vpop.f32.mrf.mxu1  ;;  %v1168_v44 = vmul.f32 %v3182_v42, %v1167_v32  ;;  %v1138_v36 = vsel %vm4171_vm10, %v1137_v22, %v1133_v53  ;;  %vm1170_vm13 = vweird.f32 %v4149_v10  ;;  %v1177_v38 = vor.u32 1.1754944e-38, %v1176_v59 }
 0x181   : > { %v4176_v12 = vadd.f32 %v4169_v9, %v1291_v31  ;;  %v1250_v4 = vmul.f32 %v1234_v55, %v4009_v58  ;;  %v1139_v30 = vmul.f32 %v1138_v36, %v4134_v15  ;;  %vm1172_vm14 = vmor %vm1170_vm13, %vm1171_vm12  ;;  %v1154_v56 = vmul.f32 %v4145_v14, %v4003_v35 }
 0x182   : > { %1323 = vmatmul.f32.gmra.mxu1 %v1249_v37  ;;  %v1169_v24 = vadd.f32 %v3182_v42, %v1168_v44  ;;  %vm1175_vm15 = vcmp.eq.f32.partialorder %v1174_v27, 8.507059e+37  ;;  %v563_v58 = vmul.f32 0.5, %v3957_v48  ;;  %v1192_v5 = vmul.f32 %v1191_v47, %v4070_v2 }
 0x183   : > { %v4186_v7 = vmul.f32 0.70710677, %v4176_v12  ;;  %1326 = vmatmul.f32.vlgmr.msra.gmra.mxu3 %v1250_v4  ;;  %v2962_v0 = vclamps-f32 %v1139_v30, 1.0  ;;  %v1216_v43 = vand.u32 2147483648, %v1204_v41  ;;  %v1214_v39 = vand.u32 2147483647, %v1204_v41 }
 0x184   : > { %v1173_v54 = vsel %vm1172_vm14, %v3182_v42, %v1169_v24  ;;  %v3184_v49 = vpop.eup %3183  ;;  %v1193_v48 = vadd.f32 1.1283791, %v1192_v5  ;;  %vm1210_vm2 = vweird.f32 %v1204_v41  ;;  %v564_v46 = vmul.f32 0.5, %v3991_v21  ;;  %v2055_v5 = vld [vmem:[%s5040_s5 + $0x60] sm:$0xff] }
 0x185   : > { %v1371_v34 = vmul.f32 %v4186_v7, %v4186_v7  ;;  %v1178_v18 = vsel %vm1175_vm15, %v1177_v38, %v1173_v54  ;;  %v1235_v10 = vadd.f32 1.0, %v2962_v0  ;;  %v1206_v51 = vmul.f32 %v3184_v49, %v1204_v41  ;;  %v2057_v54 = vld [vmem:[%s5040_s5 + $0x70] sm:$0xff] }
 0x186   : > { %v1179_v45 = vmul.f32 %v1178_v18, %v1154_v56  ;;  %vm1211_vm1 = vweird.f32 %v3184_v49  ;;  %v1217_v63 = vor.u32 1.1754944e-38, %v1216_v43  ;;  %v1194_v61 = vmul.f32 %v1193_v48, %v4046_v50  ;;  %2064 = vmatpush.msra.mxu2 %v2057_v54  ;;  %3021 = vmatpush.msrb.mxu3 %v2057_v54  ;;  %v2054_v43 = vld [vmem:[%s5040_s5 + $0x58] sm:$0xff] }
 0x187   : > { %v4197_v28 = vmin.f32 %v1371_v34, 16.0  ;;  %v1251_v35 = vmul.f32 %v1235_v10, %v563_v58  ;;  %v1207_v3 = vsub.f32 1.0, %v1206_v51  ;;  %vm1212_vm3 = vmor %vm1210_vm2, %vm1211_vm1  ;;  %vm1215_vm4 = vcmp.eq.f32.partialorder %v1214_v39, 8.507059e+37 }
 0x188   : > { %v2963_v14 = vclamps-f32 %v1179_v45, 1.0  ;;  %v565_v11 = vmul.f32 0.5, %v4039_v19 }
 0x189   : > { %v1294_v15 = vpop.f32.mrf.mxu1  ;;  %v1208_v60 = vmul.f32 %v3184_v49, %v1207_v3  ;;  %v1373_v2 = vmul.f32 2.1237322e-06, %v4197_v28  ;;  %v1384_v31 = vmul.f32 3.8918573e-05, %v4197_v28 }
 0x18a   : > { %v4200_v16 = vadd.f32 %v4169_v9, %v1294_v15  ;;  %v1236_v17 = vadd.f32 1.0, %v2963_v14 }
 0x18b   : > { %1329 = vmatmul.f32.gmra.mxu3 %v1251_v35  ;;  %v1209_v6 = vadd.f32 %v3184_v49, %v1208_v60  ;;  %v1374_v20 = vadd.f32 0.00028619796, %v1373_v2  ;;  %v1385_v41 = vadd.f32 0.001143296, %v1384_v31  ;;  %v2052_v31 = vld [vmem:[%s5040_s5 + $0x48] sm:$0xff] }
 0x18c   : > { %v4203_v52 = vmul.f32 0.70710677, %v4200_v16  ;;  %v1252_v23 = vmul.f32 %v1236_v17, %v564_v46 }
 0x18d   : > { %v1213_v57 = vsel %vm1212_vm3, %v3184_v49, %v1209_v6  ;;  %v1375_v21 = vmul.f32 %v1374_v20, %v4197_v28  ;;  %v1386_v32 = vmul.f32 %v1385_v41, %v4197_v28  ;;  %v2056_v49 = vld [vmem:[%s5040_s5 + $0x68] sm:$0xff]  ;;  %v2053_v20 = vld [vmem:[%s5040_s5 + $0x50] sm:$0xff] }
 0x18e   : > { %v1411_v29 = vmul.f32 %v4203_v52, %v4203_v52  ;;  %v1218_v42 = vsel %vm1215_vm4, %v1217_v63, %v1213_v57  ;;  %2065 = vmatpush.msra.mxu2 %v2056_v49  ;;  %3022 = vmatpush.msrb.mxu3 %v2056_v49 }
 0x18f   : > { %v1219_v13 = vmul.f32 %v1218_v42, %v1194_v61  ;;  %v1376_v37 = vadd.f32 0.0036580483, %v1375_v21  ;;  %v1387_v53 = vadd.f32 0.014752088, %v1386_v32  ;;  %v2050_v32 = vld [vmem:[%s5040_s5 + $0x38] sm:$0xff] }
 0x190   : > { %v4213_v8 = vmin.f32 %v1411_v29, 16.0  ;;  %2066 = vmatpush.msra.mxu2 %v2055_v5  ;;  %3023 = vmatpush.msrb.mxu3 %v2055_v5 }
 0x191   : > { %v1297_v33 = vpop.f32.mrf.mxu1  ;;  %v2964_v62 = vclamps-f32 %v1219_v13, 1.0  ;;  %v1388_v44 = vmul.f32 %v1387_v53, %v4197_v28  ;;  %v1377_v36 = vmul.f32 %v1376_v37, %v4197_v28 }
 0x192   : > { %v4216_v40 = vadd.f32 %v4169_v9, %v1297_v33  ;;  %v1413_v22 = vmul.f32 2.1237322e-06, %v4213_v8  ;;  %v1424_v47 = vmul.f32 3.8918573e-05, %v4213_v8  ;;  %2067 = vmatpush.msra.mxu2 %v2054_v43  ;;  %3024 = vmatpush.msrb.mxu3 %v2054_v43 }
 0x193   : > { %1332 = vmatmul.f32.gmra.mxu3 %v1252_v23  ;;  %v1237_v25 = vadd.f32 1.0, %v2964_v62  ;;  %v1389_v19 = vadd.f32 0.112945676, %v1388_v44  ;;  %v1378_v56 = vadd.f32 0.05243302, %v1377_v36 }
 0x194   : > { %v4221_v50 = vmul.f32 0.70710677, %v4216_v40  ;;  %v1414_v55 = vadd.f32 0.00028619796, %v1413_v22  ;;  %v1425_v24 = vadd.f32 0.001143296, %v1424_v47  ;;  %2068 = vmatpush.msra.mxu2 %v2053_v20  ;;  %3025 = vmatpush.msrb.mxu3 %v2053_v20 }
 0x195   : > { %v1253_v59 = vmul.f32 %v1237_v25, %v565_v11  ;;  %v1390_v38 = vmul.f32 %v1389_v19, %v4197_v28  ;;  %v1379_v60 = vmul.f32 %v1378_v56, %v4197_v28  ;;  %v2051_v25 = vld [vmem:[%s5040_s5 + $0x40] sm:$0xff]  ;;  %v2045_v20 = vld [vmem:[%s5040_s5 + $0x10] sm:$0xff] }
 0x196   : > { %v1451_v26 = vmul.f32 %v4221_v50, %v4221_v50  ;;  %v1415_v30 = vmul.f32 %v1414_v55, %v4213_v8  ;;  %v1426_v34 = vmul.f32 %v1425_v24, %v4213_v8  ;;  %2069 = vmatpush.msra.mxu2 %v2052_v31  ;;  %3026 = vmatpush.msrb.mxu3 %v2052_v31 }
 0x197   : > { %v1391_v18 = vadd.f32 0.4994258, %v1390_v38  ;;  %v1380_v57 = vadd.f32 0.18741608, %v1379_v60 }
 0x198   : > { %v4228_v27 = vmin.f32 %v1451_v26, 16.0  ;;  %v1416_v58 = vadd.f32 0.0036580483, %v1415_v30  ;;  %v1427_v15 = vadd.f32 0.014752088, %v1426_v34  ;;  %2070 = vmatpush.msra.mxu2 %v2051_v25  ;;  %3027 = vmatpush.msrb.mxu3 %v2051_v25  ;;  %v2049_v34 = vld [vmem:[%s5040_s5 + $0x30] sm:$0xff] }
 0x199   : > { %v1392_v51 = vmul.f32 %v1391_v18, %v4197_v28  ;;  %v1381_v26 = vmul.f32 %v1380_v57, %v4197_v28  ;;  %v2048_v18 = vld [vmem:[%s5040_s5 + $0x28] sm:$0xff] }
 0x19a   : > { %v1453_v4 = vmul.f32 2.1237322e-06, %v4228_v27  ;;  %v1464_v10 = vmul.f32 3.8918573e-05, %v4228_v27  ;;  %v1428_v35 = vmul.f32 %v1427_v15, %v4213_v8  ;;  %v1417_v39 = vmul.f32 %v1416_v58, %v4213_v8  ;;  %2071 = vmatpush.msra.mxu2 %v2050_v32  ;;  %3028 = vmatpush.msrb.mxu3 %v2050_v32 }
 0x19b   : > { %1335 = vmatmul.f32.gmra.mxu3 %v1253_v59  ;;  %v4258_v2 = vadd.f32 1.0, %v1392_v51  ;;  %v1382_v24 = vadd.f32 1.1283791, %v1381_v26 }
 0x19c   : > { %v1454_v0 = vadd.f32 0.00028619796, %v1453_v4  ;;  %v1465_v48 = vadd.f32 0.001143296, %v1464_v10  ;;  %v1429_v17 = vadd.f32 0.112945676, %v1428_v35  ;;  %2072 = vmatpush.msra.mxu2 %v2049_v34  ;;  %3029 = vmatpush.msrb.mxu3 %v2049_v34 }
 0x19d   : > { %3185 = vrcp.f32 %v4258_v2  ;;  %v1418_v42 = vadd.f32 0.05243302, %v1417_v39  ;;  %v1405_v56 = vand.u32 2147483648, %v4258_v2  ;;  %v1403_v49 = vand.u32 2147483647, %v4258_v2 }
 0x19e   : > { %v1455_v14 = vmul.f32 %v1454_v0, %v4228_v27  ;;  %v1466_v29 = vmul.f32 %v1465_v48, %v4228_v27  ;;  %v1430_v46 = vmul.f32 %v1429_v17, %v4213_v8  ;;  %2073 = vmatpush.msra.mxu2 %v2048_v18  ;;  %vm1399_vm6 = vweird.f32 %v4258_v2  ;;  %3030 = vmatpush.msrb.mxu3 %v2048_v18 }
 0x19f   : > { %v1419_v11 = vmul.f32 %v1418_v42, %v4213_v8  ;;  %v1383_v35 = vmul.f32 %v1382_v24, %v4186_v7  ;;  %v1406_v43 = vor.u32 1.1754944e-38, %v1405_v56  ;;  %vm1404_vm8 = vcmp.eq.f32.partialorder %v1403_v49, 8.507059e+37 }
 0x1a0   : > { %v1456_v63 = vadd.f32 0.0036580483, %v1455_v14  ;;  %v1467_v61 = vadd.f32 0.014752088, %v1466_v29  ;;  %v1431_v13 = vadd.f32 0.4994258, %v1430_v46 }
 0x1a1   : > { %v1300_v45 = vpop.f32.mrf.mxu1  ;;  %v1420_v38 = vadd.f32 0.18741608, %v1419_v11  ;;  %v2047_v14 = vld [vmem:[%s5040_s5 + $0x20] sm:$0xff] }
 0x1a2   : > { %v4251_v3 = vadd.f32 %v4169_v9, %v1300_v45  ;;  %v1468_v33 = vmul.f32 %v1467_v61, %v4228_v27  ;;  %v1457_v62 = vmul.f32 %v1456_v63, %v4228_v27  ;;  %v1432_v22 = vmul.f32 %v1431_v13, %v4213_v8  ;;  %2074 = vmatpush.msra.mxu2 %v2047_v14  ;;  %v2046_v63 = vld [vmem:[%s5040_s5 + $0x18] sm:$0xff] }
 0x1a3   : > { %v3186_v41 = vpop.eup %3185  ;;  %v1421_v39 = vmul.f32 %v1420_v38, %v4213_v8  ;;  %3031 = vmatpush.msrb.mxu3 %v2047_v14  ;;  %v1339_v13 = vmul.f32 0.5, %v4176_v12 }
 0x1a4   : > { %v4261_v6 = vmul.f32 0.70710677, %v4251_v3  ;;  %v1469_v37 = vadd.f32 0.112945676, %v1468_v33  ;;  %v1395_v55 = vmul.f32 %v3186_v41, %v4258_v2  ;;  %v4290_v47 = vadd.f32 1.0, %v1432_v22  ;;  %2075 = vmatpush.msra.mxu2 %v2046_v63 }
 0x1a5   : > { %v1458_v4 = vadd.f32 0.05243302, %v1457_v62  ;;  %vm1400_vm5 = vweird.f32 %v3186_v41  ;;  %3032 = vmatpush.msrb.mxu3 %v2046_v63  ;;  %v1422_v25 = vadd.f32 1.1283791, %v1421_v39 }
 0x1a6   : > { %v1491_v1 = vmul.f32 %v4261_v6, %v4261_v6  ;;  %v1470_v36 = vmul.f32 %v1469_v37, %v4228_v27  ;;  %v1396_v19 = vsub.f32 1.0, %v1395_v55  ;;  %3187 = vrcp.f32 %v4290_v47  ;;  %vm1401_vm7 = vmor %vm1399_vm6, %vm1400_vm5  ;;  %2076 = vmatpush.msra.mxu2 %v2045_v20 }
 0x1a7   : > { %v1459_v10 = vmul.f32 %v1458_v4, %v4228_v27  ;;  %3033 = vmatpush.msrb.mxu3 %v2045_v20  ;;  %v1445_v37 = vand.u32 2147483648, %v4290_v47  ;;  %v1443_v55 = vand.u32 2147483647, %v4290_v47  ;;  %vm1439_vm10 = vweird.f32 %v4290_v47 }
 0x1a8   : > { %v4271_v23 = vmin.f32 %v1491_v1, 16.0  ;;  %v1397_v54 = vmul.f32 %v3186_v41, %v1396_v19  ;;  %v1471_v15 = vadd.f32 0.4994258, %v1470_v36  ;;  %v1423_v56 = vmul.f32 %v1422_v25, %v4203_v52 }
 0x1a9   : > { %v1460_v57 = vadd.f32 0.18741608, %v1459_v10  ;;  %vm1444_vm12 = vcmp.eq.f32.partialorder %v1443_v55, 8.507059e+37 }
 0x1aa   : > { %v1493_v21 = vmul.f32 2.1237322e-06, %v4271_v23  ;;  %v1504_v59 = vmul.f32 3.8918573e-05, %v4271_v23  ;;  %v1398_v51 = vadd.f32 %v3186_v41, %v1397_v54  ;;  %v1472_v48 = vmul.f32 %v1471_v15, %v4228_v27 }
 0x1ab   : > { %v1461_v11 = vmul.f32 %v1460_v57, %v4228_v27 }
 0x1ac   : > { %v1494_v53 = vadd.f32 0.00028619796, %v1493_v21  ;;  %v1505_v28 = vadd.f32 0.001143296, %v1504_v59  ;;  %v1402_v29 = vsel %vm1401_vm7, %v3186_v41, %v1398_v51  ;;  %v3188_v2 = vpop.eup %3187  ;;  %v4326_v46 = vadd.f32 1.0, %v1472_v48  ;;  %v2044_v41 = vld [vmem:[%s5040_s5 + $0x8] sm:$0xff] }
 0x1ad   : > { %v1303_v44 = vpop.f32.mrf.mxu1  ;;  %v1407_v1 = vsel %vm1404_vm8, %v1406_v43, %v1402_v29  ;;  %v1435_v42 = vmul.f32 %v3188_v2, %v4290_v47  ;;  %v4337_v21 = vmul.f32 0.5, %v4200_v16  ;;  %2077 = vmatpush.msra.mxu2 %v2044_v41  ;;  %3034 = vmatpush.msrb.mxu3 %v2044_v41  ;;  %v2043_v16 = vld [vmem:[%s5040_s5] sm:$0xff]  ;;  %vm1440_vm9 = vweird.f32 %v3188_v2 }
 0x1ae   : > { %v4294_v30 = vadd.f32 %v4169_v9, %v1303_v44  ;;  %v1495_v58 = vmul.f32 %v1494_v53, %v4271_v23  ;;  %v1506_v5 = vmul.f32 %v1505_v28, %v4271_v23  ;;  %v1408_v8 = vmul.f32 %v1407_v1, %v1383_v35  ;;  %vm1441_vm11 = vmor %vm1439_vm10, %vm1440_vm9 }
 0x1af   : > { %3189 = vrcp.f32 %v4326_v46  ;;  %v1436_v62 = vsub.f32 1.0, %v1435_v42  ;;  %2078 = vmatpush.msra.mxu2 %v2043_v16  ;;  %3035 = vmatpush.msrb.mxu3 %v2043_v16  ;;  %v1462_v54 = vadd.f32 1.1283791, %v1461_v11  ;;  %v1485_v39 = vand.u32 2147483648, %v4326_v46 }
 0x1b0   : > { %v4302_v0 = vmul.f32 0.70710677, %v4294_v30  ;;  %v1507_v60 = vadd.f32 0.014752088, %v1506_v5  ;;  %v1496_v7 = vadd.f32 0.0036580483, %v1495_v58  ;;  %vm1479_vm14 = vweird.f32 %v4326_v46 }
 0x1b1   : > { %v2965_v31 = vclamps-f32 %v1408_v8, 1.0  ;;  %v1437_v32 = vmul.f32 %v3188_v2, %v1436_v62  ;;  %v1446_v58 = vor.u32 1.1754944e-38, %v1445_v37 }
 0x1b2   : > { %v1531_v45 = vmul.f32 %v4302_v0, %v4302_v0  ;;  %v1508_v61 = vmul.f32 %v1507_v60, %v4271_v23  ;;  %v1497_v22 = vmul.f32 %v1496_v7, %v4271_v23  ;;  %v1483_v60 = vand.u32 2147483647, %v4326_v46 }
 0x1b3   : > { %v2011_v12 = vadd.f32 1.0, %v2965_v31  ;;  %v1438_v24 = vadd.f32 %v3188_v2, %v1437_v32  ;;  %v1486_v31 = vor.u32 1.1754944e-38, %v1485_v39 }
 0x1b4   : > { %v4321_v17 = vmin.f32 %v1531_v45, 16.0  ;;  %v1509_v26 = vadd.f32 0.112945676, %v1508_v61  ;;  %v1498_v19 = vadd.f32 0.05243302, %v1497_v22  ;;  %vm1484_vm1 = vcmp.eq.f32.partialorder %v1483_v60, 8.507059e+37 }
 0x1b5   : > { %v2027_v28 = vmul.f32 %v2011_v12, %v1339_v13  ;;  %v3190_v4 = vpop.eup %3189  ;;  %v1442_v18 = vsel %vm1441_vm11, %v3188_v2, %v1438_v24  ;;  %v1463_v13 = vmul.f32 %v1462_v54, %v4221_v50 }
 0x1b6   : > { %v1533_v33 = vmul.f32 2.1237322e-06, %v4321_v17  ;;  %v1510_v53 = vmul.f32 %v1509_v26, %v4271_v23  ;;  %v1544_v44 = vmul.f32 3.8918573e-05, %v4321_v17  ;;  %v1475_v47 = vmul.f32 %v3190_v4, %v4326_v46 }
 0x1b7   : > { %2079 = vmatmul.f32.vlgmr.msra.gmra.mxu2 %v2027_v28  ;;  %v1447_v52 = vsel %vm1444_vm12, %v1446_v58, %v1442_v18  ;;  %v1499_v51 = vmul.f32 %v1498_v19, %v4271_v23  ;;  %vm1480_vm13 = vweird.f32 %v3190_v4 }
 0x1b8   : > { %v1534_v36 = vadd.f32 0.00028619796, %v1533_v33  ;;  %v1511_v38 = vadd.f32 0.4994258, %v1510_v53  ;;  %v1545_v34 = vadd.f32 0.001143296, %v1544_v44  ;;  %v1448_v35 = vmul.f32 %v1447_v52, %v1423_v56  ;;  %vm1481_vm15 = vmor %vm1479_vm14, %vm1480_vm13 }
 0x1b9   : > { %v1476_v14 = vsub.f32 1.0, %v1475_v47  ;;  %v1500_v57 = vadd.f32 0.18741608, %v1499_v51  ;;  %v1341_v44 = vmul.f32 0.5, %v4216_v40 }
 0x1ba   : > { %v1512_v15 = vmul.f32 %v1511_v38, %v4271_v23  ;;  %v1535_v5 = vmul.f32 %v1534_v36, %v4321_v17  ;;  %v1546_v45 = vmul.f32 %v1545_v34, %v4321_v17  ;;  %v2966_v2 = vclamps-f32 %v1448_v35, 1.0 }
 0x1bb   : > { %v1306_v59 = vpop.f32.mrf.mxu1  ;;  %v1477_v7 = vmul.f32 %v3190_v4, %v1476_v14 }
 0x1bc   : > { %v4352_v27 = vadd.f32 %v4169_v9, %v1306_v59  ;;  %v4367_v43 = vadd.f32 1.0, %v1512_v15  ;;  %v1547_v29 = vadd.f32 0.014752088, %v1546_v45  ;;  %v1536_v63 = vadd.f32 0.0036580483, %v1535_v5 }
 0x1bd   : > { %v2012_v8 = vadd.f32 1.0, %v2966_v2  ;;  %v1478_v42 = vadd.f32 %v3190_v4, %v1477_v7  ;;  %v1501_v59 = vmul.f32 %v1500_v57, %v4271_v23 }
 0x1be   : > { %v4357_v49 = vmul.f32 0.70710677, %v4352_v27  ;;  %3191 = vrcp.f32 %v4367_v43  ;;  %v1548_v61 = vmul.f32 %v1547_v29, %v4321_v17  ;;  %v1537_v46 = vmul.f32 %v1536_v63, %v4321_v17 }
 0x1bf   : > { %v2028_v25 = vmul.f32 %v2012_v8, %v4337_v21  ;;  %v1482_v22 = vsel %vm1481_vm15, %v3190_v4, %v1478_v42  ;;  %v1525_v24 = vand.u32 2147483648, %v4367_v43  ;;  %v1502_v56 = vadd.f32 1.1283791, %v1501_v59 }
 0x1c0   : > { %v1571_v10 = vmul.f32 %v4357_v49, %v4357_v49  ;;  %v1549_v62 = vadd.f32 0.112945676, %v1548_v61  ;;  %v1487_v11 = vsel %vm1484_vm1, %v1486_v31, %v1482_v22  ;;  %v1538_v36 = vadd.f32 0.05243302, %v1537_v46 }
 0x1c1   : > { %2082 = vmatmul.f32.gmra.mxu2 %v2028_v25  ;;  %v1488_v37 = vmul.f32 %v1487_v11, %v1463_v13  ;;  %v1523_v23 = vand.u32 2147483647, %v4367_v43  ;;  %vm1519_vm3 = vweird.f32 %v4367_v43  ;;  %v1526_v45 = vor.u32 1.1754944e-38, %v1525_v24 }
 0x1c2   : > { %v4369_v48 = vmin.f32 %v1571_v10, 16.0  ;;  %v1550_v12 = vmul.f32 %v1549_v62, %v4321_v17  ;;  %v1539_v52 = vmul.f32 %v1538_v36, %v4321_v17  ;;  %v1503_v51 = vmul.f32 %v1502_v56, %v4261_v6 }
 0x1c3   : > { %v2967_v21 = vclamps-f32 %v1488_v37, 1.0  ;;  %vm1524_vm5 = vcmp.eq.f32.partialorder %v1523_v23, 8.507059e+37  ;;  %v1342_v6 = vmul.f32 0.5, %v4251_v3 }
 0x1c4   : > { %v1573_v1 = vmul.f32 2.1237322e-06, %v4369_v48  ;;  %v1584_v20 = vmul.f32 3.8918573e-05, %v4369_v48  ;;  %v3192_v32 = vpop.eup %3191  ;;  %v1551_v55 = vadd.f32 0.4994258, %v1550_v12 }
 0x1c5   : > { %v1515_v16 = vmul.f32 %v3192_v32, %v4367_v43  ;;  %v2013_v19 = vadd.f32 1.0, %v2967_v21  ;;  %vm1520_vm2 = vweird.f32 %v3192_v32  ;;  %v1540_v7 = vadd.f32 0.18741608, %v1539_v52 }
 0x1c6   : > { %v1574_v33 = vadd.f32 0.00028619796, %v1573_v1  ;;  %v1585_v41 = vadd.f32 0.001143296, %v1584_v20  ;;  %v1552_v38 = vmul.f32 %v1551_v55, %v4321_v17  ;;  %vm1521_vm4 = vmor %vm1519_vm3, %vm1520_vm2 }
 0x1c7   : > { %v1516_v4 = vsub.f32 1.0, %v1515_v16  ;;  %v2029_v18 = vmul.f32 %v2013_v19, %v1341_v44  ;;  %v1541_v62 = vmul.f32 %v1540_v7, %v4321_v17 }
 0x1c8   : > { %v1575_v26 = vmul.f32 %v1574_v33, %v4369_v48  ;;  %v1586_v50 = vmul.f32 %v1585_v41, %v4369_v48  ;;  %v4391_v47 = vadd.f32 1.0, %v1552_v38 }
 0x1c9   : > { %v1517_v54 = vmul.f32 %v3192_v32, %v1516_v4  ;;  %2085 = vmatmul.f32.gmra.mxu2 %v2029_v18 }
 0x1ca   : > { %v1587_v53 = vadd.f32 0.014752088, %v1586_v50  ;;  %v1576_v28 = vadd.f32 0.0036580483, %v1575_v26  ;;  %3193 = vrcp.f32 %v4391_v47  ;;  %v1565_v12 = vand.u32 2147483648, %v4391_v47 }
 0x1cb   : > { %v1518_v10 = vadd.f32 %v3192_v32, %v1517_v54  ;;  %v1542_v50 = vadd.f32 1.1283791, %v1541_v62  ;;  %v1563_v16 = vand.u32 2147483647, %v4391_v47  ;;  %vm1559_vm7 = vweird.f32 %v4391_v47 }
 0x1cc   : > { %v1588_v34 = vmul.f32 %v1587_v53, %v4369_v48  ;;  %v1577_v15 = vmul.f32 %v1576_v28, %v4369_v48  ;;  %v1566_v28 = vor.u32 1.1754944e-38, %v1565_v12 }
 0x1cd   : > { %v1522_v14 = vsel %vm1521_vm4, %v3192_v32, %v1518_v10  ;;  %v1543_v56 = vmul.f32 %v1542_v50, %v4302_v0  ;;  %vm1564_vm9 = vcmp.eq.f32.partialorder %v1563_v16, 8.507059e+37 }
 0x1ce   : > { %v1589_v40 = vadd.f32 0.112945676, %v1588_v34  ;;  %v1527_v60 = vsel %vm1524_vm5, %v1526_v45, %v1522_v14  ;;  %v1578_v29 = vadd.f32 0.05243302, %v1577_v15 }
 0x1cf   : > { %v1309_v58 = vpop.f32.mrf.mxu1  ;;  %v1528_v2 = vmul.f32 %v1527_v60, %v1503_v51 }
 0x1d0   : > { %v4395_v5 = vadd.f32 %v4169_v9, %v1309_v58  ;;  %v1590_v39 = vmul.f32 %v1589_v40, %v4369_v48  ;;  %v3194_v57 = vpop.eup %3193  ;;  %v1579_v20 = vmul.f32 %v1578_v29, %v4369_v48  ;;  %v1343_v40 = vmul.f32 0.5, %v4294_v30 }
 0x1d1   : > { %v2968_v61 = vclamps-f32 %v1528_v2, 1.0  ;;  %v1555_v25 = vmul.f32 %v3194_v57, %v4391_v47  ;;  %vm1560_vm6 = vweird.f32 %v3194_v57 }
 0x1d2   : > { %v4402_v35 = vmul.f32 0.70710677, %v4395_v5  ;;  %v1591_v63 = vadd.f32 0.4994258, %v1590_v39  ;;  %v1580_v32 = vadd.f32 0.18741608, %v1579_v20  ;;  %vm1561_vm8 = vmor %vm1559_vm7, %vm1560_vm6 }
 0x1d3   : > { %v2014_v31 = vadd.f32 1.0, %v2968_v61  ;;  %v1556_v11 = vsub.f32 1.0, %v1555_v25 }
 0x1d4   : > { %v1611_v43 = vmul.f32 %v4402_v35, %v4402_v35  ;;  %v1592_v42 = vmul.f32 %v1591_v63, %v4369_v48  ;;  %v1581_v4 = vmul.f32 %v1580_v32, %v4369_v48 }
 0x1d5   : > { %v2030_v26 = vmul.f32 %v2014_v31, %v1342_v6  ;;  %v1557_v59 = vmul.f32 %v3194_v57, %v1556_v11 }
 0x1d6   : > { %v4407_v1 = vmin.f32 %v1611_v43, 16.0  ;;  %v4418_v22 = vadd.f32 1.0, %v1592_v42  ;;  %v1582_v52 = vadd.f32 1.1283791, %v1581_v4 }
 0x1d7   : > { %v1312_v8 = vpop.f32.mrf.mxu1  ;;  %2088 = vmatmul.f32.gmra.mxu2 %v2030_v26  ;;  %v1558_v36 = vadd.f32 %v3194_v57, %v1557_v59 }
 0x1d8   : > { %v1613_v13 = vmul.f32 2.1237322e-06, %v4407_v1  ;;  %v4414_v33 = vadd.f32 %v4169_v9, %v1312_v8  ;;  %v1624_v41 = vmul.f32 3.8918573e-05, %v4407_v1  ;;  %3195 = vrcp.f32 %v4418_v22 }
 0x1d9   : > { %v1562_v54 = vsel %vm1561_vm8, %v3194_v57, %v1558_v36  ;;  %vm1599_vm10 = vweird.f32 %v4418_v22  ;;  %v1605_v29 = vand.u32 2147483648, %v4418_v22  ;;  %v1603_v6 = vand.u32 2147483647, %v4418_v22 }
 0x1da   : > { %v1614_v3 = vadd.f32 0.00028619796, %v1613_v13  ;;  %v4422_v46 = vmul.f32 0.70710677, %v4414_v33  ;;  %v1625_v37 = vadd.f32 0.001143296, %v1624_v41  ;;  %v1567_v47 = vsel %vm1564_vm9, %v1566_v28, %v1562_v54 }
 0x1db   : > { %v1568_v15 = vmul.f32 %v1567_v47, %v1543_v56  ;;  %v1606_v26 = vor.u32 1.1754944e-38, %v1605_v29  ;;  %v1583_v50 = vmul.f32 %v1582_v52, %v4357_v49  ;;  %vm1604_vm13 = vcmp.eq.f32.partialorder %v1603_v6, 8.507059e+37 }
 0x1dc   : > { %v1651_v17 = vmul.f32 %v4422_v46, %v4422_v46  ;;  %v1615_v21 = vmul.f32 %v1614_v3, %v4407_v1  ;;  %v1626_v53 = vmul.f32 %v1625_v37, %v4407_v1 }
 0x1dd   : > { %v2969_v60 = vclamps-f32 %v1568_v15, 1.0 }
 0x1de   : > { %v4430_v55 = vmin.f32 %v1651_v17, 16.0  ;;  %v1627_v38 = vadd.f32 0.014752088, %v1626_v53  ;;  %v3196_v34 = vpop.eup %3195  ;;  %v1616_v58 = vadd.f32 0.0036580483, %v1615_v21 }
 0x1df   : > { %v1315_v44 = vpop.f32.mrf.mxu1  ;;  %v1595_v10 = vmul.f32 %v3196_v34, %v4418_v22  ;;  %v2015_v63 = vadd.f32 1.0, %v2969_v60  ;;  %vm1600_vm11 = vweird.f32 %v3196_v34 }
 0x1e0   : > { %v1653_v19 = vmul.f32 2.1237322e-06, %v4430_v55  ;;  %v4437_v24 = vadd.f32 %v4169_v9, %v1315_v44  ;;  %v1664_v23 = vmul.f32 3.8918573e-05, %v4430_v55  ;;  %v1628_v0 = vmul.f32 %v1627_v38, %v4407_v1  ;;  %vm1601_vm12 = vmor %vm1599_vm10, %vm1600_vm11 }
 0x1e1   : > { %v1596_v39 = vsub.f32 1.0, %v1595_v10  ;;  %v1617_v30 = vmul.f32 %v1616_v58, %v4407_v1  ;;  %v2031_v31 = vmul.f32 %v2015_v63, %v1343_v40 }
 0x1e2   : > { %v1654_v18 = vadd.f32 0.00028619796, %v1653_v19  ;;  %v4443_v48 = vmul.f32 0.70710677, %v4437_v24  ;;  %v1665_v51 = vadd.f32 0.001143296, %v1664_v23 }
 0x1e3   : > { %v1629_v43 = vadd.f32 0.112945676, %v1628_v0  ;;  %v1597_v61 = vmul.f32 %v3196_v34, %v1596_v39  ;;  %v1618_v41 = vadd.f32 0.05243302, %v1617_v30  ;;  %2091 = vmatmul.f32.gmra.mxu2 %v2031_v31 }
 0x1e4   : > { %v1655_v45 = vmul.f32 %v1654_v18, %v4430_v55  ;;  %v1691_v14 = vmul.f32 %v4443_v48, %v4443_v48  ;;  %v1666_v2 = vmul.f32 %v1665_v51, %v4430_v55  ;;  %v1344_v18 = vmul.f32 0.5, %v4352_v27 }
 0x1e5   : > { %v1630_v8 = vmul.f32 %v1629_v43, %v4407_v1  ;;  %v1598_v62 = vadd.f32 %v3196_v34, %v1597_v61  ;;  %v1619_v36 = vmul.f32 %v1618_v41, %v4407_v1 }
 0x1e6   : > { %v4454_v7 = vmin.f32 %v1691_v14, 16.0  ;;  %v1656_v57 = vadd.f32 0.0036580483, %v1655_v45  ;;  %v1667_v42 = vadd.f32 0.014752088, %v1666_v2 }
 0x1e7   : > { %v1631_v11 = vadd.f32 0.4994258, %v1630_v8  ;;  %v1602_v32 = vsel %vm1601_vm12, %v3196_v34, %v1598_v62  ;;  %v1620_v47 = vadd.f32 0.18741608, %v1619_v36 }
 0x1e8   : > { %v1693_v20 = vmul.f32 2.1237322e-06, %v4454_v7  ;;  %v1704_v25 = vmul.f32 3.8918573e-05, %v4454_v7  ;;  %v1668_v17 = vmul.f32 %v1667_v42, %v4430_v55  ;;  %v1657_v59 = vmul.f32 %v1656_v57, %v4430_v55 }
 0x1e9   : > { %v1607_v22 = vsel %vm1604_vm13, %v1606_v26, %v1602_v32  ;;  %v1632_v53 = vmul.f32 %v1631_v11, %v4407_v1  ;;  %v1621_v30 = vmul.f32 %v1620_v47, %v4407_v1 }
 0x1ea   : > { %v1318_v13 = vpop.f32.mrf.mxu1  ;;  %v1694_v12 = vadd.f32 0.00028619796, %v1693_v20  ;;  %v1705_v37 = vadd.f32 0.001143296, %v1704_v25  ;;  %v1669_v44 = vadd.f32 0.112945676, %v1668_v17  ;;  %v1608_v4 = vmul.f32 %v1607_v22, %v1583_v50 }
 0x1eb   : > { %v4461_v3 = vadd.f32 %v4169_v9, %v1318_v13  ;;  %v1633_v38 = vadd.f32 1.0, %v1632_v53  ;;  %v1658_v58 = vadd.f32 0.05243302, %v1657_v59  ;;  %v1622_v20 = vadd.f32 1.1283791, %v1621_v30 }
 0x1ec   : > { %v1695_v21 = vmul.f32 %v1694_v12, %v4454_v7  ;;  %v1706_v49 = vmul.f32 %v1705_v37, %v4454_v7  ;;  %v1670_v34 = vmul.f32 %v1669_v44, %v4430_v55  ;;  %v2970_v54 = vclamps-f32 %v1608_v4, 1.0 }
 0x1ed   : > { %v4469_v16 = vmul.f32 0.70710677, %v4461_v3  ;;  %3197 = vrcp.f32 %v1633_v38  ;;  %v1659_v51 = vmul.f32 %v1658_v58, %v4430_v55  ;;  %v1645_v41 = vand.u32 2147483648, %v1633_v38 }
 0x1ee   : > { %v1696_v19 = vadd.f32 0.0036580483, %v1695_v21  ;;  %v1707_v23 = vadd.f32 0.014752088, %v1706_v49  ;;  %v2016_v15 = vadd.f32 1.0, %v2970_v54  ;;  %v1623_v59 = vmul.f32 %v1622_v20, %v4402_v35 }
 0x1ef   : > { %v1731_v28 = vmul.f32 %v4469_v16, %v4469_v16  ;;  %v1671_v52 = vadd.f32 0.4994258, %v1670_v34  ;;  %v1660_v8 = vadd.f32 0.18741608, %v1659_v51  ;;  %v1643_v12 = vand.u32 2147483647, %v1633_v38 }
 0x1f0   : > { %v1697_v40 = vmul.f32 %v1696_v19, %v4454_v7  ;;  %v1708_v45 = vmul.f32 %v1707_v23, %v4454_v7  ;;  %v2032_v0 = vmul.f32 %v2016_v15, %v1344_v18  ;;  %vm1639_vm15 = vweird.f32 %v1633_v38 }
 0x1f1   : > { %v4478_v56 = vmin.f32 %v1731_v28, 16.0  ;;  %v1672_v14 = vmul.f32 %v1671_v52, %v4430_v55  ;;  %v1661_v32 = vmul.f32 %v1660_v8, %v4430_v55  ;;  %v1646_v4 = vor.u32 1.1754944e-38, %v1645_v41 }
 0x1f2   : > { %v1709_v60 = vadd.f32 0.112945676, %v1708_v45  ;;  %v1698_v27 = vadd.f32 0.05243302, %v1697_v40  ;;  %2094 = vmatmul.f32.gmra.mxu2 %v2032_v0  ;;  %vm1644_vm2 = vcmp.eq.f32.partialorder %v1643_v12, 8.507059e+37  ;;  %v1345_v51 = vmul.f32 0.5, %v4395_v5 }
 0x1f3   : > { %v1733_v10 = vmul.f32 2.1237322e-06, %v4478_v56  ;;  %v1744_v39 = vmul.f32 3.8918573e-05, %v4478_v56  ;;  %v3198_v43 = vpop.eup %3197  ;;  %v4491_v61 = vadd.f32 1.0, %v1672_v14 }
 0x1f4   : > { %v1710_v57 = vmul.f32 %v1709_v60, %v4454_v7  ;;  %v1635_v6 = vmul.f32 %v3198_v43, %v1633_v38  ;;  %v1699_v13 = vmul.f32 %v1698_v27, %v4454_v7  ;;  %vm1640_vm14 = vweird.f32 %v3198_v43 }
 0x1f5   : > { %v1734_v2 = vadd.f32 0.00028619796, %v1733_v10  ;;  %3199 = vrcp.f32 %v4491_v61  ;;  %v1745_v1 = vadd.f32 0.001143296, %v1744_v39  ;;  %vm1641_vm1 = vmor %vm1639_vm15, %vm1640_vm14  ;;  %v1662_v35 = vadd.f32 1.1283791, %v1661_v32 }
 0x1f6   : > { %v1636_v31 = vsub.f32 1.0, %v1635_v6  ;;  %v1711_v26 = vadd.f32 0.4994258, %v1710_v57  ;;  %v1700_v21 = vadd.f32 0.18741608, %v1699_v13  ;;  %v1685_v10 = vand.u32 2147483648, %v4491_v61 }
 0x1f7   : > { %v1321_v29 = vpop.f32.mrf.mxu1  ;;  %v1735_v62 = vmul.f32 %v1734_v2, %v4478_v56  ;;  %v1746_v50 = vmul.f32 %v1745_v1, %v4478_v56  ;;  %v1683_v15 = vand.u32 2147483647, %v4491_v61  ;;  %vm1679_vm4 = vweird.f32 %v4491_v61  ;;  %v4534_v2 = vld [vmem:[%s5039_s4] ss:$0 sm:$0xff] }
 0x1f8   : > { %v4489_v63 = vadd.f32 %v4169_v9, %v1321_v29  ;;  %v1637_v11 = vmul.f32 %v3198_v43, %v1636_v31  ;;  %v1712_v37 = vmul.f32 %v1711_v26, %v4454_v7  ;;  %v1701_v58 = vmul.f32 %v1700_v21, %v4454_v7 }
 0x1f9   : > { %v1736_v36 = vadd.f32 0.0036580483, %v1735_v62  ;;  %v1747_v23 = vadd.f32 0.014752088, %v1746_v50  ;;  %v1663_v7 = vmul.f32 %v1662_v35, %v4422_v46  ;;  %v1686_v46 = vor.u32 1.1754944e-38, %v1685_v10 }
 0x1fa   : > { %v4495_v42 = vmul.f32 0.70710677, %v4489_v63  ;;  %v1638_v53 = vadd.f32 %v3198_v43, %v1637_v11  ;;  %v4511_v55 = vadd.f32 1.0, %v1712_v37  ;;  %v1702_v39 = vadd.f32 1.1283791, %v1701_v58 }
 0x1fb   : > { %v3200_v44 = vpop.eup %3199  ;;  %v1737_v47 = vmul.f32 %v1736_v36, %v4478_v56  ;;  %v1748_v60 = vmul.f32 %v1747_v23, %v4478_v56  ;;  %vm1684_vm6 = vcmp.eq.f32.partialorder %v1683_v15, 8.507059e+37 }
 0x1fc   : > { %v1771_v25 = vmul.f32 %v4495_v42, %v4495_v42  ;;  %v1642_v19 = vsel %vm1641_vm1, %v3198_v43, %v1638_v53  ;;  %v1675_v34 = vmul.f32 %v3200_v44, %v4491_v61  ;;  %3201 = vrcp.f32 %v4511_v55 }
 0x1fd   : > { %v1647_v38 = vsel %vm1644_vm2, %v1646_v4, %v1642_v19  ;;  %vm1680_vm3 = vweird.f32 %v3200_v44  ;;  %v1738_v43 = vadd.f32 0.05243302, %v1737_v47  ;;  %v1749_v57 = vadd.f32 0.112945676, %v1748_v60 }
 0x1fe   : > { %v4503_v17 = vmin.f32 %v1771_v25, 16.0  ;;  %v1676_v18 = vsub.f32 1.0, %v1675_v34  ;;  %vm1681_vm5 = vmor %vm1679_vm4, %vm1680_vm3  ;;  %v1346_v61 = vmul.f32 0.5, %v4414_v33  ;;  %v1703_v25 = vmul.f32 %v1702_v39, %v4443_v48 }
 0x1ff   : > { %v1324_v22 = vpop.f32.mrf.mxu1  ;;  %v1739_v12 = vmul.f32 %v1738_v43, %v4478_v56  ;;  %v1723_v32 = vand.u32 2147483647, %v4511_v55  ;;  %v1725_v33 = vand.u32 2147483648, %v4511_v55  ;;  %v1750_v37 = vmul.f32 %v1749_v57, %v4478_v56 }
 0x200   : > { %v4509_v28 = vadd.f32 %v4169_v9, %v1324_v22  ;;  %v1773_v49 = vmul.f32 2.1237322e-06, %v4503_v17  ;;  %v1648_v9 = vmul.f32 %v1647_v38, %v1623_v59  ;;  %v1677_v0 = vmul.f32 %v3200_v44, %v1676_v18 }
 0x201   : > { %v1784_v62 = vmul.f32 3.8918573e-05, %v4503_v17  ;;  %vm1719_vm7 = vweird.f32 %v4511_v55  ;;  %v1751_v53 = vadd.f32 0.4994258, %v1750_v37  ;;  %vm4560_vm9 = vcmp.eq.f32.partialorder %v1723_v32, 8.507059e+37 }
 0x202   : > { %v4516_v54 = vmul.f32 0.70710677, %v4509_v28  ;;  %v1774_v52 = vadd.f32 0.00028619796, %v1773_v49  ;;  %v2971_v45 = vclamps-f32 %v1648_v9, 1.0  ;;  %v1678_v29 = vadd.f32 %v3200_v44, %v1677_v0  ;;  %v3202_v6 = vpop.eup %3201 }
 0x203   : > { %v1715_v11 = vmul.f32 %v3202_v6, %v4511_v55  ;;  %vm1720_vm8 = vweird.f32 %v3202_v6  ;;  %v1726_v38 = vor.u32 1.1754944e-38, %v1725_v33  ;;  %v1752_v23 = vmul.f32 %v1751_v53, %v4478_v56 }
 0x204   : > { %v1811_v40 = vmul.f32 %v4516_v54, %v4516_v54  ;;  %v2017_v27 = vadd.f32 1.0, %v2971_v45  ;;  %v1775_v8 = vmul.f32 %v1774_v52, %v4503_v17  ;;  %v1682_v20 = vsel %vm1681_vm5, %v3200_v44, %v1678_v29  ;;  %vm1721_vm10 = vmor %vm1719_vm7, %vm1720_vm8 }
 0x205   : > { %v1687_v31 = vsel %vm1684_vm6, %v1686_v46, %v1682_v20  ;;  %v1716_v21 = vsub.f32 1.0, %v1715_v11  ;;  %v1785_v44 = vadd.f32 0.001143296, %v1784_v62  ;;  %v4571_v10 = vadd.f32 1.0, %v1752_v23 }
 0x206   : > { %v4527_v14 = vmin.f32 %v1811_v40, 16.0  ;;  %v1327_v30 = vpop.f32.mrf.mxu3  ;;  %v2033_v1 = vmul.f32 %v2017_v27, %v1345_v51  ;;  %v1688_v26 = vmul.f32 %v1687_v31, %v1663_v7  ;;  %v1776_v50 = vadd.f32 0.0036580483, %v1775_v8 }
 0x207   : > { %v4537_v5 = vadd.f32 %v4534_v2, %v1327_v30  ;;  %v1717_v19 = vmul.f32 %v3202_v6, %v1716_v21  ;;  %v1786_v52 = vmul.f32 %v1785_v44, %v4503_v17  ;;  %v1740_v60 = vadd.f32 0.18741608, %v1739_v12 }
 0x208   : > { %v1813_v13 = vmul.f32 2.1237322e-06, %v4527_v14  ;;  %2097 = vmatmul.f32.gmra.mxu2 %v2033_v1  ;;  %v2972_v48 = vclamps-f32 %v1688_v26, 1.0  ;;  %v1777_v40 = vmul.f32 %v1776_v50, %v4503_v17  ;;  %3203 = vrcp.f32 %v4571_v10 }
 0x209   : > { %v4545_v41 = vmul.f32 0.70710677, %v4537_v5  ;;  %v1718_v47 = vadd.f32 %v3202_v6, %v1717_v19  ;;  %v1824_v55 = vmul.f32 3.8918573e-05, %v4527_v14  ;;  %v1787_v8 = vadd.f32 0.014752088, %v1786_v52 }
 0x20a   : > { %v1814_v22 = vadd.f32 0.00028619796, %v1813_v13  ;;  %v2018_v49 = vadd.f32 1.0, %v2972_v48  ;;  %v1778_v46 = vadd.f32 0.05243302, %v1777_v40  ;;  %v1347_v13 = vmul.f32 0.5, %v4437_v24 }
 0x20b   : > { %v1851_v59 = vmul.f32 %v4545_v41, %v4545_v41  ;;  %v1722_v7 = vsel %vm1721_vm10, %v3202_v6, %v1718_v47  ;;  %v1741_v31 = vmul.f32 %v1740_v60, %v4478_v56  ;;  %v1788_v24 = vmul.f32 %v1787_v8, %v4503_v17 }
 0x20c   : > { %v2034_v18 = vmul.f32 %v2018_v49, %v1346_v61  ;;  %v1815_v15 = vmul.f32 %v1814_v22, %v4527_v14  ;;  %v1727_v39 = vsel %vm4560_vm9, %v1726_v38, %v1722_v7  ;;  %v1779_v33 = vmul.f32 %v1778_v46, %v4503_v17 }
 0x20d   : > { %v4555_v36 = vmin.f32 %v1851_v59, 16.0  ;;  %v1728_v43 = vmul.f32 %v1727_v39, %v1703_v25  ;;  %v1825_v50 = vadd.f32 0.001143296, %v1824_v55  ;;  %v1742_v53 = vadd.f32 1.1283791, %v1741_v31 }
 0x20e   : > { %v1330_v4 = vpop.f32.mrf.mxu3  ;;  %v1816_v57 = vadd.f32 0.0036580483, %v1815_v15  ;;  %v3204_v32 = vpop.eup %3203  ;;  %v1789_v49 = vadd.f32 0.112945676, %v1788_v24  ;;  %v1780_v19 = vadd.f32 0.18741608, %v1779_v33  ;;  %vm1759_vm12 = vweird.f32 %v4571_v10 }
 0x20f   : > { %v4558_v34 = vadd.f32 %v4534_v2, %v1330_v4  ;;  %v1853_v58 = vmul.f32 2.1237322e-06, %v4555_v36  ;;  %v1864_v9 = vmul.f32 3.8918573e-05, %v4555_v36  ;;  %v2973_v61 = vclamps-f32 %v1728_v43, 1.0 }
 0x210   : > { %2100 = vmatmul.f32.gmra.mxu2 %v2034_v18  ;;  %v1817_v56 = vmul.f32 %v1816_v57, %v4527_v14  ;;  %v1755_v22 = vmul.f32 %v3204_v32, %v4571_v10  ;;  %v1826_v23 = vmul.f32 %v1825_v50, %v4527_v14  ;;  %vm1760_vm11 = vweird.f32 %v3204_v32 }
 0x211   : > { %v1854_v45 = vadd.f32 0.00028619796, %v1853_v58  ;;  %v1865_v0 = vadd.f32 0.001143296, %v1864_v9  ;;  %v4575_v51 = vmul.f32 0.70710677, %v4558_v34  ;;  %v1790_v47 = vmul.f32 %v1789_v49, %v4503_v17  ;;  %vm1761_vm13 = vmor %vm1759_vm12, %vm1760_vm11 }
 0x212   : > { %v2019_v25 = vadd.f32 1.0, %v2973_v61  ;;  %v1756_v38 = vsub.f32 1.0, %v1755_v22  ;;  %v1818_v58 = vadd.f32 0.05243302, %v1817_v56  ;;  %v1765_v60 = vand.u32 2147483648, %v4571_v10 }
 0x213   : > { %v1855_v30 = vmul.f32 %v1854_v45, %v4555_v36  ;;  %v1866_v27 = vmul.f32 %v1865_v0, %v4555_v36  ;;  %v1891_v29 = vmul.f32 %v4575_v51, %v4575_v51  ;;  %v1827_v45 = vadd.f32 0.014752088, %v1826_v23 }
 0x214   : > { %v2035_v48 = vmul.f32 %v2019_v25, %v1347_v13  ;;  %v1757_v52 = vmul.f32 %v3204_v32, %v1756_v38  ;;  %v1791_v39 = vadd.f32 0.4994258, %v1790_v47  ;;  %v1819_v57 = vmul.f32 %v1818_v58, %v4527_v14 }
 0x215   : > { %v1856_v6 = vadd.f32 0.0036580483, %v1855_v30  ;;  %v1867_v1 = vadd.f32 0.014752088, %v1866_v27  ;;  %v4592_v12 = vmin.f32 %v1891_v29, 16.0  ;;  %v1781_v29 = vmul.f32 %v1780_v19, %v4503_v17 }
 0x216   : > { %v1333_v20 = vpop.f32.mrf.mxu3  ;;  %v1758_v30 = vadd.f32 %v3204_v32, %v1757_v52  ;;  %v1763_v27 = vand.u32 2147483647, %v4571_v10  ;;  %v1792_v46 = vmul.f32 %v1791_v39, %v4503_v17  ;;  %v1743_v61 = vmul.f32 %v1742_v53, %v4469_v16 }
 0x217   : > { %v4588_v62 = vadd.f32 %v4534_v2, %v1333_v20  ;;  %v1857_v26 = vmul.f32 %v1856_v6, %v4555_v36  ;;  %v1868_v11 = vmul.f32 %v1867_v1, %v4555_v36  ;;  %v1893_v4 = vmul.f32 2.1237322e-06, %v4592_v12 }
 0x218   : > { %2103 = vmatmul.f32.gmra.mxu2 %v2035_v48  ;;  %v1762_v6 = vsel %vm1761_vm13, %v3204_v32, %v1758_v30  ;;  %v1828_v1 = vmul.f32 %v1827_v45, %v4527_v14  ;;  %v1766_v20 = vor.u32 1.1754944e-38, %v1765_v60  ;;  %vm1764_vm14 = vcmp.eq.f32.partialorder %v1763_v27, 8.507059e+37 }
 0x219   : > { %v4596_v37 = vmul.f32 0.70710677, %v4588_v62  ;;  %v1869_v59 = vadd.f32 0.112945676, %v1868_v11  ;;  %v1858_v21 = vadd.f32 0.05243302, %v1857_v26 }
 0x21a   : > { %v1894_v7 = vadd.f32 0.00028619796, %v1893_v4  ;;  %v1904_v31 = vmul.f32 3.8918573e-05, %v4592_v12  ;;  %v1767_v26 = vsel %vm1764_vm14, %v1766_v20, %v1762_v6  ;;  %v4634_v11 = vadd.f32 1.0, %v1792_v46 }
 0x21b   : > { %v1870_v44 = vmul.f32 %v1869_v59, %v4555_v36  ;;  %v1931_v35 = vmul.f32 %v4596_v37, %v4596_v37  ;;  %v1859_v40 = vmul.f32 %v1858_v21, %v4555_v36  ;;  %v1829_v25 = vadd.f32 0.112945676, %v1828_v1 }
 0x21c   : > { %v1895_v10 = vmul.f32 %v1894_v7, %v4592_v12  ;;  %v1782_v32 = vadd.f32 1.1283791, %v1781_v29  ;;  %v1820_v33 = vadd.f32 0.18741608, %v1819_v57  ;;  %v1768_v56 = vmul.f32 %v1767_v26, %v1743_v61 }
 0x21d   : > { %v1871_v9 = vadd.f32 0.4994258, %v1870_v44  ;;  %v4613_v55 = vmin.f32 %v1931_v35, 16.0  ;;  %v1860_v8 = vadd.f32 0.18741608, %v1859_v40  ;;  %v1348_v16 = vmul.f32 0.5, %v4461_v3 }
 0x21e   : > { %v1336_v18 = vpop.f32.mrf.mxu3  ;;  %v1896_v50 = vadd.f32 0.0036580483, %v1895_v10  ;;  %v4640_v59 = vmul.f32 0.5, %v4489_v63  ;;  %v4643_v48 = vmul.f32 0.5, %v4537_v5  ;;  %v2974_v44 = vclamps-f32 %v1768_v56, 1.0 }
 0x21f   : > { %v4609_v15 = vadd.f32 %v4534_v2, %v1336_v18  ;;  %v1872_v0 = vmul.f32 %v1871_v9, %v4555_v36  ;;  %v1933_v13 = vmul.f32 2.1237322e-06, %v4613_v55  ;;  %v1861_v24 = vmul.f32 %v1860_v8, %v4555_v36 }
 0x220   : > { %v1830_v4 = vmul.f32 %v1829_v25, %v4527_v14  ;;  %v1905_v36 = vadd.f32 0.001143296, %v1904_v31  ;;  %v1783_v49 = vmul.f32 %v1782_v32, %v4495_v42  ;;  %v1821_v19 = vmul.f32 %v1820_v33, %v4527_v14 }
 0x221   : > { %v4618_v43 = vadd.f32 1.0, %v1872_v0  ;;  %v4621_v2 = vmul.f32 0.70710677, %v4609_v15  ;;  %v1934_v21 = vadd.f32 0.00028619796, %v1933_v13  ;;  %v1897_v5 = vmul.f32 %v1896_v50, %v4592_v12 }
 0x222   : > { %v1862_v35 = vadd.f32 1.1283791, %v1861_v24  ;;  %v2020_v38 = vadd.f32 1.0, %v2974_v44  ;;  %v1831_v23 = vadd.f32 0.4994258, %v1830_v4  ;;  %v1906_v47 = vmul.f32 %v1905_v36, %v4592_v12 }
 0x223   : > { %3205 = vrcp.f32 %v4618_v43  ;;  %v1971_v17 = vmul.f32 %v4621_v2, %v4621_v2  ;;  %v1883_v63 = vand.u32 2147483647, %v4618_v43  ;;  %v1885_v9 = vand.u32 2147483648, %v4618_v43 }
 0x224   : > { %3207 = vrcp.f32 %v4634_v11  ;;  %v1935_v18 = vmul.f32 %v1934_v21, %v4613_v55  ;;  %v2036_v52 = vmul.f32 %v2020_v38, %v1348_v16  ;;  %v1832_v45 = vmul.f32 %v1831_v23, %v4527_v14 }
 0x225   : > { %v4645_v53 = vmin.f32 %v1971_v17, 16.0  ;;  %v1944_v0 = vmul.f32 3.8918573e-05, %v4613_v55  ;;  %v1863_v7 = vmul.f32 %v1862_v35, %v4545_v41  ;;  %vm1879_vm1 = vweird.f32 %v4618_v43 }
 0x226   : > { %vm4662_vm2 = vcmp.eq.f32.partialorder %v1883_v63, 8.507059e+37  ;;  %2106 = vmatmul.f32.gmra.mxu2 %v2036_v52  ;;  %v4666_v27 = vadd.f32 1.0, %v1832_v45  ;;  %v1907_v29 = vadd.f32 0.014752088, %v1906_v47  ;;  %v1886_v14 = vor.u32 1.1754944e-38, %v1885_v9 }
 0x227   : > { %v1973_v42 = vmul.f32 2.1237322e-06, %v4645_v53  ;;  %v1945_v8 = vadd.f32 0.001143296, %v1944_v0  ;;  %v1805_v6 = vand.u32 2147483648, %v4634_v11  ;;  %vm1799_vm5 = vweird.f32 %v4634_v11 }
 0x228   : > { %3209 = vrcp.f32 %v4666_v27  ;;  %v1803_v20 = vand.u32 2147483647, %v4634_v11  ;;  %v1898_v13 = vadd.f32 0.05243302, %v1897_v5  ;;  %v1936_v31 = vadd.f32 0.0036580483, %v1935_v18 }
 0x229   : > { %v3206_v22 = vpop.eup %3205  ;;  %v1974_v41 = vadd.f32 0.00028619796, %v1973_v42  ;;  %v1908_v17 = vmul.f32 %v1907_v29, %v4592_v12  ;;  %v1946_v32 = vmul.f32 %v1945_v8, %v4613_v55  ;;  %v1806_v24 = vor.u32 1.1754944e-38, %v1805_v6 }
 0x22a   : > { %v1875_v3 = vmul.f32 %v3206_v22, %v4618_v43  ;;  %v3208_v40 = vpop.eup %3207  ;;  %vm1880_vm15 = vweird.f32 %v3206_v22  ;;  %v1984_v43 = vmul.f32 3.8918573e-05, %v4645_v53  ;;  %vm1804_vm7 = vcmp.eq.f32.partialorder %v1803_v20, 8.507059e+37 }
 0x22b   : > { %v1795_v39 = vmul.f32 %v3208_v40, %v4634_v11  ;;  %vm1881_vm3 = vmor %vm1879_vm1, %vm1880_vm15  ;;  %vm1800_vm4 = vweird.f32 %v3208_v40  ;;  %v1975_v33 = vmul.f32 %v1974_v41, %v4645_v53  ;;  %v1909_v50 = vadd.f32 0.112945676, %v1908_v17 }
 0x22c   : > { %v1876_v58 = vsub.f32 1.0, %v1875_v3  ;;  %vm1801_vm6 = vmor %vm1799_vm5, %vm1800_vm4  ;;  %v1985_v56 = vadd.f32 0.001143296, %v1984_v43  ;;  %v1822_v4 = vadd.f32 1.1283791, %v1821_v19  ;;  %v1899_v11 = vmul.f32 %v1898_v13, %v4592_v12 }
 0x22d   : > { %v1796_v57 = vsub.f32 1.0, %v1795_v39  ;;  %v1910_v35 = vmul.f32 %v1909_v50, %v4592_v12  ;;  %v1976_v23 = vadd.f32 0.0036580483, %v1975_v33  ;;  %v1937_v47 = vmul.f32 %v1936_v31, %v4613_v55 }
 0x22e   : > { %v1877_v60 = vmul.f32 %v3206_v22, %v1876_v58  ;;  %v3210_v44 = vpop.eup %3209  ;;  %v1986_v3 = vmul.f32 %v1985_v56, %v4645_v53  ;;  %v1845_v52 = vand.u32 2147483648, %v4666_v27  ;;  %v1843_v39 = vand.u32 2147483647, %v4666_v27 }
 0x22f   : > { %v1797_v10 = vmul.f32 %v3208_v40, %v1796_v57  ;;  %v1835_v5 = vmul.f32 %v3210_v44, %v4666_v27  ;;  %v1911_v58 = vadd.f32 0.4994258, %v1910_v35  ;;  %vm1840_vm8 = vweird.f32 %v3210_v44 }
 0x230   : > { %v1878_v46 = vadd.f32 %v3206_v22, %v1877_v60  ;;  %v1987_v18 = vadd.f32 0.014752088, %v1986_v3  ;;  %v1977_v30 = vmul.f32 %v1976_v23, %v4645_v53  ;;  %vm1839_vm9 = vweird.f32 %v4666_v27 }
 0x231   : > { %v1798_v25 = vadd.f32 %v3208_v40, %v1797_v10  ;;  %v1836_v19 = vsub.f32 1.0, %v1835_v5  ;;  %v1912_v45 = vmul.f32 %v1911_v58, %v4592_v12  ;;  %v1823_v8 = vmul.f32 %v1822_v4, %v4516_v54  ;;  %vm1841_vm10 = vmor %vm1839_vm9, %vm1840_vm8 }
 0x232   : > { %v1882_v1 = vsel %vm1881_vm3, %v3206_v22, %v1878_v46  ;;  %v1947_v22 = vadd.f32 0.014752088, %v1946_v32  ;;  %v1938_v41 = vadd.f32 0.05243302, %v1937_v47  ;;  %v1846_v6 = vor.u32 1.1754944e-38, %v1845_v52 }
 0x233   : > { %v1887_v61 = vsel %vm4662_vm2, %v1886_v14, %v1882_v1  ;;  %v1802_v16 = vsel %vm1801_vm6, %v3208_v40, %v1798_v25  ;;  %v1837_v60 = vmul.f32 %v3210_v44, %v1836_v19  ;;  %v1913_v29 = vadd.f32 1.0, %v1912_v45 }
 0x234   : > { %v1888_v26 = vmul.f32 %v1887_v61, %v1863_v7  ;;  %v1807_v36 = vsel %vm1804_vm7, %v1806_v24, %v1802_v16  ;;  %v1948_v9 = vmul.f32 %v1947_v22, %v4613_v55  ;;  %vm1844_vm11 = vcmp.eq.f32.partialorder %v1843_v39, 8.507059e+37 }
 0x235   : > { %v1808_v63 = vmul.f32 %v1807_v36, %v1783_v49  ;;  %v1988_v49 = vmul.f32 %v1987_v18, %v4645_v53  ;;  %v1838_v57 = vadd.f32 %v3210_v44, %v1837_v60  ;;  %3211 = vrcp.f32 %v1913_v29  ;;  %v4709_v36 = vld [vmem:[%s5041_s6] ss:$0 sm:$0xff] }
 0x236   : > { %v2977_v21 = vclamps-f32 %v1888_v26, 1.0  ;;  %v1949_v0 = vadd.f32 0.112945676, %v1948_v9  ;;  %v1900_v20 = vadd.f32 0.18741608, %v1899_v11  ;;  %v1939_v27 = vmul.f32 %v1938_v41, %v4613_v55 }
 0x237   : > { %v2975_v40 = vclamps-f32 %v1808_v63, 1.0  ;;  %v1989_v14 = vadd.f32 0.112945676, %v1988_v49  ;;  %v1842_v43 = vsel %vm1841_vm10, %v3210_v44, %v1838_v57  ;;  %v1978_v61 = vadd.f32 0.05243302, %v1977_v30 }
 0x238   : > { %v2023_v38 = vadd.f32 1.0, %v2977_v21  ;;  %v1950_v46 = vmul.f32 %v1949_v0, %v4613_v55  ;;  %v1847_v13 = vsel %vm1844_vm11, %v1846_v6, %v1842_v43  ;;  %v1901_v33 = vmul.f32 %v1900_v20, %v4592_v12 }
 0x239   : > { %v2021_v7 = vadd.f32 1.0, %v2975_v40  ;;  %v1990_v10 = vmul.f32 %v1989_v14, %v4645_v53  ;;  %v1848_v31 = vmul.f32 %v1847_v13, %v1823_v8  ;;  %v1979_v24 = vmul.f32 %v1978_v61, %v4645_v53 }
 0x23a   : > { %v2039_v42 = vmul.f32 %v2023_v38, %v4643_v48  ;;  %v1951_v1 = vadd.f32 0.4994258, %v1950_v46  ;;  %v1350_v50 = vmul.f32 0.5, %v4509_v28  ;;  %v1940_v22 = vadd.f32 0.18741608, %v1939_v27  ;;  %v2080_v35 = vpop.f32.mrf.mxu2 }
 0x23b   : > { %v2037_v48 = vmul.f32 %v2021_v7, %v4640_v59  ;;  %v1991_v17 = vadd.f32 0.4994258, %v1990_v10  ;;  %v2976_v54 = vclamps-f32 %v1848_v31, 1.0  ;;  %v3212_v32 = vpop.eup %3211  ;;  %v1902_v12 = vadd.f32 1.1283791, %v1901_v33 }
 0x23c   : > { %2115 = vmatmul.f32.vlgmr.msrb.gmra.mxu3 %v2039_v42  ;;  %v1952_v59 = vmul.f32 %v1951_v1, %v4613_v55  ;;  %v1915_v16 = vmul.f32 %v3212_v32, %v1913_v29  ;;  %v1980_v3 = vadd.f32 0.18741608, %v1979_v24  ;;  %v1925_v11 = vand.u32 2147483648, %v1913_v29 }
 0x23d   : > { %2109 = vmatmul.f32.gmra.mxu2 %v2037_v48  ;;  %v1992_v25 = vmul.f32 %v1991_v17, %v4645_v53  ;;  %v2022_v56 = vadd.f32 1.0, %v2976_v54  ;;  %vm1920_vm12 = vweird.f32 %v3212_v32  ;;  %v1923_v63 = vand.u32 2147483647, %v1913_v29 }
 0x23e   : > { %v4697_v26 = vadd.f32 1.0, %v1952_v59  ;;  %v1916_v4 = vsub.f32 1.0, %v1915_v16  ;;  %v4713_v5 = vadd.f32 %v4709_v36, %v2080_v35  ;;  %v1941_v23 = vmul.f32 %v1940_v22, %v4613_v55 }
 0x23f   : > { %v4704_v21 = vadd.f32 1.0, %v1992_v25  ;;  %v2038_v44 = vmul.f32 %v2022_v56, %v1350_v50  ;;  %vm1919_vm13 = vweird.f32 %v1913_v29  ;;  %v1903_v18 = vmul.f32 %v1902_v12, %v4575_v51 }
 0x240   : > { %3213 = vrcp.f32 %v4697_v26  ;;  %v1917_v28 = vmul.f32 %v3212_v32, %v1916_v4  ;;  %v2128_v9 = vmul.f32 %v4713_v5, %v4713_v5  ;;  %vm1921_vm14 = vmor %vm1919_vm13, %vm1920_vm12  ;;  %v1926_v47 = vor.u32 1.1754944e-38, %v1925_v11 }
 0x241   : > { %3215 = vrcp.f32 %v4704_v21  ;;  %v1981_v19 = vmul.f32 %v1980_v3, %v4645_v53  ;;  %vm1924_vm15 = vcmp.eq.f32.partialorder %v1923_v63, 8.507059e+37  ;;  %v1965_v49 = vand.u32 2147483648, %v4697_v26 }
 0x242   : > { %v1918_v58 = vadd.f32 %v3212_v32, %v1917_v28  ;;  %v2144_v52 = vsel %vm436_vm0, %v2128_v9, 0.0  ;;  %v1352_v7 = vmul.f32 0.5, %v4558_v34  ;;  %v1942_v60 = vadd.f32 1.1283791, %v1941_v23 }
 0x243   : > { %2145 = vadd.xlane.f32.xlu0 %v2144_v52  ;;  %v1963_v53 = vand.u32 2147483647, %v4697_v26  ;;  %v1982_v14 = vadd.f32 1.1283791, %v1981_v19  ;;  %vm1959_vm2 = vweird.f32 %v4697_v26  ;;  %v1966_v41 = vor.u32 1.1754944e-38, %v1965_v49 }
 0x244   : > { %v1922_v42 = vsel %vm1921_vm14, %v3212_v32, %v1918_v58  ;;  %v2083_v30 = vpop.f32.mrf.mxu2  ;;  %v2005_v34 = vand.u32 2147483648, %v4704_v21  ;;  %v2003_v10 = vand.u32 2147483647, %v4704_v21  ;;  %v1943_v20 = vmul.f32 %v1942_v60, %v4596_v37 }
 0x245   : > { %2112 = vmatmul.f32.gmra.mxu2 %v2038_v44  ;;  %v1927_v0 = vsel %vm1924_vm15, %v1926_v47, %v1922_v42  ;;  %v4727_v46 = vadd.f32 %v4709_v36, %v2083_v30  ;;  %vm1964_vm5 = vcmp.eq.f32.partialorder %v1963_v53, 8.507059e+37  ;;  %vm1999_vm6 = vweird.f32 %v4704_v21 }
 0x246   : > { %v3214_v38 = vpop.eup %3213  ;;  %v1928_v51 = vmul.f32 %v1927_v0, %v1903_v18  ;;  %v2006_v54 = vor.u32 1.1754944e-38, %v2005_v34  ;;  %vm2004_vm8 = vcmp.eq.f32.partialorder %v2003_v10, 8.507059e+37  ;;  %v1353_v56 = vmul.f32 0.5, %v4588_v62 }
 0x247   : > { %v1955_v40 = vmul.f32 %v3214_v38, %v4697_v26  ;;  %v3216_v45 = vpop.eup %3215  ;;  %vm1960_vm1 = vweird.f32 %v3214_v38  ;;  %v2129_v6 = vmul.f32 %v4727_v46, %v4727_v46  ;;  %v1983_v26 = vmul.f32 %v1982_v14, %v4621_v2 }
 0x248   : > { %v1995_v39 = vmul.f32 %v3216_v45, %v4704_v21  ;;  %v2978_v48 = vclamps-f32 %v1928_v51, 1.0  ;;  %vm1961_vm3 = vmor %vm1959_vm2, %vm1960_vm1  ;;  %vm2000_vm4 = vweird.f32 %v3216_v45  ;;  %v1354_v3 = vmul.f32 0.5, %v4609_v15 }
 0x249   : > { %v1956_v55 = vsub.f32 1.0, %v1955_v40  ;;  %v2147_v13 = vsel %vm436_vm0, %v2129_v6, 0.0  ;;  %vm2001_vm7 = vmor %vm1999_vm6, %vm2000_vm4 }
 0x24a   : > { %v1996_v57 = vsub.f32 1.0, %v1995_v39  ;;  %v2024_v43 = vadd.f32 1.0, %v2978_v48 }
 0x24b   : > { %v1957_v29 = vmul.f32 %v3214_v38, %v1956_v55  ;;  %2148 = vadd.xlane.f32.xlu0 %v2147_v13 }
 0x24c   : > { %v1997_v1 = vmul.f32 %v3216_v45, %v1996_v57  ;;  %v2040_v31 = vmul.f32 %v2024_v43, %v1352_v7  ;;  %v2086_v32 = vpop.f32.mrf.mxu2 }
 0x24d   : > { %v1958_v8 = vadd.f32 %v3214_v38, %v1957_v29  ;;  %v4739_v24 = vadd.f32 %v4709_v36, %v2086_v32 }
 0x24e   : > { %v1998_v17 = vadd.f32 %v3216_v45, %v1997_v1  ;;  %2118 = vmatmul.f32.gmra.mxu3 %v2040_v31 }
 0x24f   : > { %v1962_v61 = vsel %vm1961_vm3, %v3214_v38, %v1958_v8  ;;  %v2130_v21 = vmul.f32 %v4739_v24, %v4739_v24 }
 0x250   : > { %v1967_v59 = vsel %vm1964_vm5, %v1966_v41, %v1962_v61  ;;  %v2002_v25 = vsel %vm2001_vm7, %v3216_v45, %v1998_v17 }
 0x251   : > { %v1968_v27 = vmul.f32 %v1967_v59, %v1943_v20  ;;  %v2007_v33 = vsel %vm2004_vm8, %v2006_v54, %v2002_v25  ;;  %v2150_v2 = vsel %vm436_vm0, %v2130_v21, 0.0 }
 0x252   : > { %v2008_v50 = vmul.f32 %v2007_v33, %v1983_v26  ;;  %2151 = vadd.xlane.f32.xlu1 %v2150_v2 }
 0x253   : > { %v2979_v37 = vclamps-f32 %v1968_v27, 1.0 }
 0x254   : > { %v2980_v22 = vclamps-f32 %v2008_v50, 1.0 }
 0x255   : > { %v2025_v16 = vadd.f32 1.0, %v2979_v37 }
 0x256   : > { %v2026_v4 = vadd.f32 1.0, %v2980_v22 }
 0x257   : > { %v2041_v44 = vmul.f32 %v2025_v16, %v1353_v56 }
 0x258   : > { %v2042_v11 = vmul.f32 %v2026_v4, %v1354_v3 }
 0x259   : > { %2121 = vmatmul.f32.gmra.mxu3 %v2041_v44 }
 0x25a   : > { %v2089_v35 = vpop.f32.mrf.mxu2 }
 0x25b   : > { %v4746_v12 = vadd.f32 %v4709_v36, %v2089_v35 }
 0x25d   : > { %v2131_v62 = vmul.f32 %v4746_v12, %v4746_v12 }
 0x25f   : > { %v2153_v28 = vsel %vm436_vm0, %v2131_v62, 0.0 }
 0x260   : > { %2154 = vadd.xlane.f32.xlu1 %v2153_v28 }
 0x261   : > { %2124 = vmatmul.f32.gmra.mxu3 %v2042_v11 }
 0x266   : > { %v2092_v63 = vpop.f32.mrf.mxu2 }
 0x267   : > { %v4753_v38 = vadd.f32 %v4709_v36, %v2092_v63 }
 0x269   : > { %v2132_v23 = vmul.f32 %v4753_v38, %v4753_v38 }
 0x26b   : > { %v2156_v58 = vsel %vm436_vm0, %v2132_v23, 0.0 }
 0x26c   : > { %2157 = vadd.xlane.f32.xlu2 %v2156_v58 }
 0x275   : > { %v2095_v9 = vpop.f32.mrf.mxu2 }
 0x276   : > { %v4759_v15 = vadd.f32 %v4709_v36, %v2095_v9 }
 0x278   : > { %v2133_v18 = vmul.f32 %v4759_v15, %v4759_v15 }
 0x27a   : > { %v2159_v47 = vsel %vm436_vm0, %v2133_v18, 0.0 }
 0x27b   : > { %2160 = vadd.xlane.f32.xlu2 %v2159_v47 }
 0x28b   : > { %v2098_v40 = vpop.f32.mrf.mxu2 }
 0x28c   : > { %v4765_v19 = vadd.f32 %v4709_v36, %v2098_v40 }
 0x28e   : > { %v2134_v42 = vmul.f32 %v4765_v19, %v4765_v19 }
 0x290   : > { %v2162_v52 = vsel %vm436_vm0, %v2134_v42, 0.0 }
 0x291   : > { %2163 = vadd.xlane.f32.xlu0 %v2162_v52 }
 0x293   : > { %v2101_v45 = vpop.f32.mrf.mxu2 }
 0x294   : > { %v4771_v0 = vadd.f32 %v4709_v36, %v2101_v45 }
 0x296   : > { %v2135_v55 = vmul.f32 %v4771_v0, %v4771_v0 }
 0x298   : > { %v2165_v49 = vsel %vm436_vm0, %v2135_v55, 0.0 }
 0x299   : > { %2166 = vadd.xlane.f32.xlu1 %v2165_v49 }
 0x29b   : > { %v2104_v7 = vpop.f32.mrf.mxu2 }
 0x29c   : > { %v4777_v60 = vadd.f32 %v4709_v36, %v2104_v7 }
 0x29e   : > { %v2136_v51 = vmul.f32 %v4777_v60, %v4777_v60 }
 0x2a0   : > { %v2168_v39 = vsel %vm436_vm0, %v2136_v51, 0.0 }
 0x2a1   : > { %2169 = vadd.xlane.f32.xlu2 %v2168_v39 }
 0x2a9   : > { %v2107_v30 = vpop.f32.mrf.mxu2 }
 0x2aa   : > { %v4783_v29 = vadd.f32 %v4709_v36, %v2107_v30 }
 0x2ac   : > { %v2137_v53 = vmul.f32 %v4783_v29, %v4783_v29 }
 0x2ae   : > { %v2171_v14 = vsel %vm436_vm0, %v2137_v53, 0.0 }
 0x2af   : > { %2172 = vadd.xlane.f32.xlu0 %v2171_v14 }
 0x2b6   : > { %v2146_v43 = vpop.xlane.xlu0 %2145 }
 0x2b7   : > { %3217 = vrsqrt.f32 %v2146_v43  ;;  %vm2199_vm9 = vcmp.eq.f32.partialorder %v2146_v43, inf  ;;  %v2202_v50 = vand.u32 2147483648, %v2146_v43  ;;  %vm2201_vm10 = vcmp.eq.f32.partialorder %v2146_v43, 0.0 }
 0x2bd   : > { %v3218_v20 = vpop.eup %3217 }
 0x2be   : > { %v2193_v61 = vmul.f32 %v3218_v20, %v2146_v43  ;;  %v2149_v17 = vpop.xlane.xlu0 %2148 }
 0x2bf   : > { %v2116_v48 = vpop.f32.mrf.mxu3  ;;  %3219 = vrsqrt.f32 %v2149_v17  ;;  %vm2211_vm11 = vcmp.eq.f32.partialorder %v2149_v17, inf  ;;  %v2214_v18 = vand.u32 2147483648, %v2149_v17  ;;  %vm2213_vm12 = vcmp.eq.f32.partialorder %v2149_v17, 0.0 }
 0x2c0   : > { %v4789_v57 = vadd.f32 %v4709_v36, %v2116_v48  ;;  %v2110_v41 = vpop.f32.mrf.mxu2  ;;  %v2194_v59 = vmul.f32 %v3218_v20, %v2193_v61 }
 0x2c1   : > { %v4794_v34 = vadd.f32 %v4709_v36, %v2110_v41 }
 0x2c2   : > { %v2140_v8 = vmul.f32 %v4789_v57, %v4789_v57  ;;  %v2195_v54 = vmul.f32 0.5, %v2194_v59 }
 0x2c3   : > { %v2138_v1 = vmul.f32 %v4794_v34, %v4794_v34 }
 0x2c4   : > { %v2180_v6 = vsel %vm436_vm0, %v2140_v8, 0.0  ;;  %v2196_v25 = vsub.f32 1.5, %v2195_v54 }
 0x2c5   : > { %2181 = vadd.xlane.f32.xlu0 %v2180_v6  ;;  %v2174_v10 = vsel %vm436_vm0, %v2138_v1, 0.0  ;;  %v3220_v37 = vpop.eup %3219  ;;  %v2152_v2 = vpop.xlane.xlu1 %2151 }
 0x2c6   : > { %2175 = vadd.xlane.f32.xlu1 %v2174_v10  ;;  %v2197_v32 = vmul.f32 %v3218_v20, %v2196_v25  ;;  %v2205_v56 = vmul.f32 %v3220_v37, %v2149_v17  ;;  %3221 = vrsqrt.f32 %v2152_v2  ;;  %vm2223_vm2 = vcmp.eq.f32.partialorder %v2152_v2, inf }
 0x2c7   : > { %v2226_v25 = vand.u32 2147483648, %v2152_v2  ;;  %vm2225_vm3 = vcmp.eq.f32.partialorder %v2152_v2, 0.0 }
 0x2c8   : > { %v2113_v13 = vpop.f32.mrf.mxu2  ;;  %v2198_v33 = vmul.f32 %v2197_v32, %v2146_v43  ;;  %v2206_v22 = vmul.f32 %v3220_v37, %v2205_v56 }
 0x2c9   : > { %v4801_v31 = vadd.f32 %v4709_v36, %v2113_v13 }
 0x2ca   : > { %v2200_v16 = vsel %vm2199_vm9, %v2146_v43, %v2198_v33  ;;  %v2207_v35 = vmul.f32 0.5, %v2206_v22 }
 0x2cb   : > { %v2139_v27 = vmul.f32 %v4801_v31, %v4801_v31  ;;  %v2203_v21 = vsel %vm2201_vm10, %v2202_v50, %v2200_v16 }
 0x2cc   : > { %v2384_v44 = vmax.f32 %v2203_v21, 1e-12  ;;  %v2208_v62 = vsub.f32 1.5, %v2207_v35  ;;  %v3222_v23 = vpop.eup %3221 }
 0x2cd   : > { %v2177_v26 = vsel %vm436_vm0, %v2139_v27, 0.0  ;;  %v2217_v47 = vmul.f32 %v3222_v23, %v2152_v2 }
 0x2ce   : > { %2178 = vadd.xlane.f32.xlu2 %v2177_v26  ;;  %3223 = vrcp.f32 %v2384_v44  ;;  %v2209_v28 = vmul.f32 %v3220_v37, %v2208_v62  ;;  %v2411_v30 = vand.u32 2147483648, %v2384_v44  ;;  %v2409_v8 = vand.u32 2147483647, %v2384_v44 }
 0x2cf   : > { %v2218_v49 = vmul.f32 %v3222_v23, %v2217_v47  ;;  %vm2405_vm14 = vweird.f32 %v2384_v44 }
 0x2d0   : > { %v2210_v58 = vmul.f32 %v2209_v28, %v2149_v17  ;;  %v2412_v1 = vor.u32 1.1754944e-38, %v2411_v30  ;;  %vm2410_vm1 = vcmp.eq.f32.partialorder %v2409_v8, 8.507059e+37 }
 0x2d1   : > { %v2119_v4 = vpop.f32.mrf.mxu3  ;;  %v2219_v14 = vmul.f32 0.5, %v2218_v49 }
 0x2d2   : > { %v4807_v3 = vadd.f32 %v4709_v36, %v2119_v4  ;;  %v2212_v52 = vsel %vm2211_vm11, %v2149_v17, %v2210_v58 }
 0x2d3   : > { %v2215_v55 = vsel %vm2213_vm12, %v2214_v18, %v2212_v52  ;;  %v4815_v39 = vpop.xlane.xlu1 %2154  ;;  %v2220_v6 = vsub.f32 1.5, %v2219_v14 }
 0x2d4   : > { %v2141_v11 = vmul.f32 %v4807_v3, %v4807_v3  ;;  %v3224_v9 = vpop.eup %3223  ;;  %v2385_v51 = vmax.f32 %v2215_v55, 1e-12  ;;  %3225 = vrsqrt.f32 %v4815_v39  ;;  %vm2235_vm8 = vcmp.eq.f32.partialorder %v4815_v39, inf }
 0x2d5   : > { %v2401_v42 = vmul.f32 %v3224_v9, %v2384_v44  ;;  %vm2406_vm13 = vweird.f32 %v3224_v9  ;;  %v2221_v10 = vmul.f32 %v3222_v23, %v2220_v6  ;;  %v2238_v55 = vand.u32 2147483648, %v4815_v39 }
 0x2d6   : > { %v2183_v63 = vsel %vm436_vm0, %v2141_v11, 0.0  ;;  %3227 = vrcp.f32 %v2385_v51  ;;  %vm2407_vm15 = vmor %vm2405_vm14, %vm2406_vm13  ;;  %v2426_v44 = vand.u32 2147483648, %v2385_v51  ;;  %v2424_v62 = vand.u32 2147483647, %v2385_v51 }
 0x2d7   : > { %2184 = vadd.xlane.f32.xlu1 %v2183_v63  ;;  %v2402_v7 = vsub.f32 1.0, %v2401_v42  ;;  %v2222_v27 = vmul.f32 %v2221_v10, %v2152_v2  ;;  %vm2420_vm5 = vweird.f32 %v2385_v51  ;;  %vm2237_vm9 = vcmp.eq.f32.partialorder %v4815_v39, 0.0 }
 0x2d8   : > { %v2427_v28 = vor.u32 1.1754944e-38, %v2426_v44  ;;  %vm2425_vm7 = vcmp.eq.f32.partialorder %v2424_v62, 8.507059e+37 }
 0x2d9   : > { %v2403_v48 = vmul.f32 %v3224_v9, %v2402_v7  ;;  %v2224_v50 = vsel %vm2223_vm2, %v2152_v2, %v2222_v27 }
 0x2da   : > { %v3226_v13 = vpop.eup %3225  ;;  %v2227_v56 = vsel %vm2225_vm3, %v2226_v25, %v2224_v50 }
 0x2db   : > { %v2404_v43 = vadd.f32 %v3224_v9, %v2403_v48  ;;  %v2229_v32 = vmul.f32 %v3226_v13, %v4815_v39 }
 0x2dc   : > { %v2122_v40 = vpop.f32.mrf.mxu3  ;;  %v3228_v54 = vpop.eup %3227 }
 0x2dd   : > { %v4813_v45 = vadd.f32 %v4709_v36, %v2122_v40  ;;  %v2408_v20 = vsel %vm2407_vm15, %v3224_v9, %v2404_v43  ;;  %v2416_v37 = vmul.f32 %v3228_v54, %v2385_v51  ;;  %v2230_v16 = vmul.f32 %v3226_v13, %v2229_v32 }
 0x2de   : > { %v2413_v59 = vsel %vm2410_vm1, %v2412_v1, %v2408_v20  ;;  %vm2421_vm4 = vweird.f32 %v3228_v54 }
 0x2df   : > { %v2142_v53 = vmul.f32 %v4813_v45, %v4813_v45  ;;  %v2414_v26 = vmul.f32 %v2413_v59, %v4713_v5  ;;  %v2417_v21 = vsub.f32 1.0, %v2416_v37  ;;  %v2386_v5 = vmax.f32 %v2227_v56, 1e-12  ;;  %vm2422_vm6 = vmor %vm2420_vm5, %vm2421_vm4 }
 0x2e0   : > { %v2231_v4 = vmul.f32 0.5, %v2230_v16 }
 0x2e1   : > { %v2186_v41 = vsel %vm436_vm0, %v2142_v53, 0.0  ;;  %2640 = vst.msk [vmem:[#allocation2] sm:$0xff] %vm436_vm0, %v2414_v26  ;;  %v2418_v35 = vmul.f32 %v3228_v54, %v2417_v21  ;;  %v2441_v8 = vand.u32 2147483648, %v2386_v5  ;;  %vm2435_vm11 = vweird.f32 %v2386_v5 }
 0x2e2   : > { %2187 = vadd.xlane.f32.xlu2 %v2186_v41  ;;  %v2232_v2 = vsub.f32 1.5, %v2231_v4  ;;  %v2439_v41 = vand.u32 2147483647, %v2386_v5 }
 0x2e3   : > { %v2419_v11 = vadd.f32 %v3228_v54, %v2418_v35 }
 0x2e4   : > { %v2125_v61 = vpop.f32.mrf.mxu3  ;;  %v2233_v63 = vmul.f32 %v3226_v13, %v2232_v2  ;;  %vm2440_vm13 = vcmp.eq.f32.partialorder %v2439_v41, 8.507059e+37 }
 0x2e5   : > { %v4822_v17 = vadd.f32 %v4709_v36, %v2125_v61  ;;  %v4829_v36 = vpop.xlane.xlu2 %2157  ;;  %v2423_v58 = vsel %vm2422_vm6, %v3228_v54, %v2419_v11 }
 0x2e6   : > { %3229 = vrsqrt.f32 %v4829_v36  ;;  %v2428_v9 = vsel %vm2425_vm7, %v2427_v28, %v2423_v58  ;;  %v2234_v18 = vmul.f32 %v2233_v63, %v4815_v39  ;;  %vm2247_vm14 = vcmp.eq.f32.partialorder %v4829_v36, inf }
 0x2e7   : > { %v2143_v33 = vmul.f32 %v4822_v17, %v4822_v17  ;;  %3231 = vrcp.f32 %v2386_v5  ;;  %v2429_v52 = vmul.f32 %v2428_v9, %v4727_v46  ;;  %v2250_v25 = vand.u32 2147483648, %v4829_v36 }
 0x2e8   : > { %v2236_v7 = vsel %vm2235_vm8, %v4815_v39, %v2234_v18  ;;  %v2442_v39 = vor.u32 1.1754944e-38, %v2441_v8  ;;  %vm2249_vm15 = vcmp.eq.f32.partialorder %v4829_v36, 0.0 }
 0x2e9   : > { %v2189_v22 = vsel %vm436_vm0, %v2143_v33, 0.0  ;;  %2641 = vst.msk [vmem:[#allocation2 + $0x8] sm:$0xff] %vm436_vm0, %v2429_v52  ;;  %v2239_v30 = vsel %vm2237_vm9, %v2238_v55, %v2236_v7 }
 0x2ea   : > { %2190 = vadd.xlane.f32.xlu0 %v2189_v22  ;;  %v2387_v14 = vmax.f32 %v2239_v30, 1e-12 }
 0x2ec   : > { %v3230_v23 = vpop.eup %3229  ;;  %v2454_v4 = vand.u32 2147483647, %v2387_v14  ;;  %vm2450_vm2 = vweird.f32 %v2387_v14 }
 0x2ed   : > { %v2241_v47 = vmul.f32 %v3230_v23, %v4829_v36  ;;  %v3232_v42 = vpop.eup %3231 }
 0x2ee   : > { %v4835_v40 = vpop.xlane.xlu2 %2160  ;;  %v2431_v49 = vmul.f32 %v3232_v42, %v2386_v5  ;;  %vm2436_vm10 = vweird.f32 %v3232_v42  ;;  %vm2455_vm6 = vcmp.eq.f32.partialorder %v2454_v4, 8.507059e+37 }
 0x2ef   : > { %3233 = vrsqrt.f32 %v4835_v40  ;;  %v2242_v51 = vmul.f32 %v3230_v23, %v2241_v47  ;;  %vm2437_vm12 = vmor %vm2435_vm11, %vm2436_vm10  ;;  %vm2259_vm3 = vcmp.eq.f32.partialorder %v4835_v40, inf  ;;  %vm2261_vm5 = vcmp.eq.f32.partialorder %v4835_v40, 0.0 }
 0x2f0   : > { %v2432_v53 = vsub.f32 1.0, %v2431_v49  ;;  %3235 = vrcp.f32 %v2387_v14 }
 0x2f1   : > { %v2243_v48 = vmul.f32 0.5, %v2242_v51 }
 0x2f2   : > { %v2433_v46 = vmul.f32 %v3232_v42, %v2432_v53 }
 0x2f3   : > { %v2244_v43 = vsub.f32 1.5, %v2243_v48 }
 0x2f4   : > { %v2434_v1 = vadd.f32 %v3232_v42, %v2433_v46 }
 0x2f5   : > { %v3234_v6 = vpop.eup %3233  ;;  %v2245_v20 = vmul.f32 %v3230_v23, %v2244_v43 }
 0x2f6   : > { %v2253_v10 = vmul.f32 %v3234_v6, %v4835_v40  ;;  %v2438_v61 = vsel %vm2437_vm12, %v3232_v42, %v2434_v1  ;;  %v3236_v54 = vpop.eup %3235 }
 0x2f7   : > { %v2443_v59 = vsel %vm2440_vm13, %v2442_v39, %v2438_v61  ;;  %v2246_v27 = vmul.f32 %v2245_v20, %v4829_v36  ;;  %v2446_v37 = vmul.f32 %v3236_v54, %v2387_v14  ;;  %vm2451_vm1 = vweird.f32 %v3236_v54 }
 0x2f8   : > { %v2254_v13 = vmul.f32 %v3234_v6, %v2253_v10  ;;  %v2444_v26 = vmul.f32 %v2443_v59, %v4739_v24  ;;  %v2456_v24 = vand.u32 2147483648, %v2387_v14  ;;  %vm2452_vm4 = vmor %vm2450_vm2, %vm2451_vm1 }
 0x2f9   : > { %v2248_v33 = vsel %vm2247_vm14, %v4829_v36, %v2246_v27  ;;  %v2447_v21 = vsub.f32 1.0, %v2446_v37  ;;  %v2262_v36 = vand.u32 2147483648, %v4835_v40 }
 0x2fa   : > { %v2255_v32 = vmul.f32 0.5, %v2254_v13  ;;  %2642 = vst.msk [vmem:[#allocation2 + $0x10] sm:$0xff] %vm436_vm0, %v2444_v26  ;;  %v2251_v50 = vsel %vm2249_vm15, %v2250_v25, %v2248_v33  ;;  %v2457_v2 = vor.u32 1.1754944e-38, %v2456_v24 }
 0x2fb   : > { %v2388_v22 = vmax.f32 %v2251_v50, 1e-12  ;;  %v2448_v44 = vmul.f32 %v3236_v54, %v2447_v21 }
 0x2fc   : > { %v2256_v56 = vsub.f32 1.5, %v2255_v32 }
 0x2fd   : > { %v2449_v62 = vadd.f32 %v3236_v54, %v2448_v44  ;;  %v2471_v7 = vand.u32 2147483648, %v2388_v22  ;;  %v2469_v53 = vand.u32 2147483647, %v2388_v22  ;;  %vm2465_vm8 = vweird.f32 %v2388_v22 }
 0x2fe   : > { %v2257_v5 = vmul.f32 %v3234_v6, %v2256_v56 }
 0x2ff   : > { %v2453_v63 = vsel %vm2452_vm4, %v3236_v54, %v2449_v62  ;;  %v2472_v41 = vor.u32 1.1754944e-38, %v2471_v7  ;;  %vm2470_vm11 = vcmp.eq.f32.partialorder %v2469_v53, 8.507059e+37 }
 0x300   : > { %v2258_v35 = vmul.f32 %v2257_v5, %v4835_v40  ;;  %v2458_v58 = vsel %vm2455_vm6, %v2457_v2, %v2453_v63 }
 0x301   : > { %v2459_v52 = vmul.f32 %v2458_v58, %v4746_v12 }
 0x302   : > { %v2260_v11 = vsel %vm2259_vm3, %v4835_v40, %v2258_v35 }
 0x303   : > { %v2263_v23 = vsel %vm2261_vm5, %v2262_v36, %v2260_v11  ;;  %2643 = vst.msk [vmem:[#allocation2 + $0x18] sm:$0xff] %vm436_vm0, %v2459_v52 }
 0x304   : > { %v4852_v16 = vpop.xlane.xlu0 %2163  ;;  %v2389_v9 = vmax.f32 %v2263_v23, 1e-12 }
 0x305   : > { %3237 = vrsqrt.f32 %v4852_v16  ;;  %vm2271_vm10 = vcmp.eq.f32.partialorder %v4852_v16, inf  ;;  %vm2273_vm12 = vcmp.eq.f32.partialorder %v4852_v16, 0.0  ;;  %v2274_v54 = vand.u32 2147483648, %v4852_v16 }
 0x306   : > { %3239 = vrcp.f32 %v2388_v22  ;;  %v2486_v27 = vand.u32 2147483648, %v2389_v9  ;;  %v2484_v32 = vand.u32 2147483647, %v2389_v9  ;;  %vm2480_vm14 = vweird.f32 %v2389_v9 }
 0x308   : > { %v2487_v21 = vor.u32 1.1754944e-38, %v2486_v27  ;;  %vm2485_vm1 = vcmp.eq.f32.partialorder %v2484_v32, 8.507059e+37 }
 0x30b   : > { %v3238_v28 = vpop.eup %3237 }
 0x30c   : > { %v2265_v18 = vmul.f32 %v3238_v28, %v4852_v16  ;;  %v4861_v47 = vpop.xlane.xlu1 %2166  ;;  %v3240_v42 = vpop.eup %3239 }
 0x30d   : > { %3241 = vrsqrt.f32 %v4861_v47  ;;  %v2461_v55 = vmul.f32 %v3240_v42, %v2388_v22  ;;  %vm2466_vm7 = vweird.f32 %v3240_v42  ;;  %vm2283_vm2 = vcmp.eq.f32.partialorder %v4861_v47, inf }
 0x30e   : > { %3243 = vrcp.f32 %v2389_v9  ;;  %v2266_v40 = vmul.f32 %v3238_v28, %v2265_v18  ;;  %vm2467_vm9 = vmor %vm2465_vm8, %vm2466_vm7  ;;  %vm2285_vm3 = vcmp.eq.f32.partialorder %v4861_v47, 0.0 }
 0x30f   : > { %v2462_v49 = vsub.f32 1.0, %v2461_v55 }
 0x310   : > { %v2267_v51 = vmul.f32 0.5, %v2266_v40 }
 0x311   : > { %v2463_v30 = vmul.f32 %v3240_v42, %v2462_v49 }
 0x312   : > { %v2268_v48 = vsub.f32 1.5, %v2267_v51 }
 0x313   : > { %v3242_v14 = vpop.eup %3241  ;;  %v2464_v46 = vadd.f32 %v3240_v42, %v2463_v30 }
 0x314   : > { %v3244_v8 = vpop.eup %3243  ;;  %v2277_v12 = vmul.f32 %v3242_v14, %v4861_v47  ;;  %v2269_v43 = vmul.f32 %v3238_v28, %v2268_v48  ;;  %v4869_v39 = vpop.xlane.xlu2 %2169 }
 0x315   : > { %v2476_v6 = vmul.f32 %v3244_v8, %v2389_v9  ;;  %v2468_v1 = vsel %vm2467_vm9, %v3240_v42, %v2464_v46  ;;  %3245 = vrsqrt.f32 %v4869_v39  ;;  %vm2481_vm13 = vweird.f32 %v3244_v8 }
 0x316   : > { %v2278_v10 = vmul.f32 %v3242_v14, %v2277_v12  ;;  %v2473_v20 = vsel %vm2470_vm11, %v2472_v41, %v2468_v1  ;;  %v2270_v13 = vmul.f32 %v2269_v43, %v4852_v16  ;;  %vm2482_vm15 = vmor %vm2480_vm14, %vm2481_vm13  ;;  %vm2295_vm5 = vcmp.eq.f32.partialorder %v4869_v39, inf }
 0x317   : > { %v2477_v61 = vsub.f32 1.0, %v2476_v6  ;;  %v2474_v59 = vmul.f32 %v2473_v20, %v4753_v38  ;;  %vm2297_vm7 = vcmp.eq.f32.partialorder %v4869_v39, 0.0  ;;  %v2298_v7 = vand.u32 2147483648, %v4869_v39 }
 0x318   : > { %v2279_v26 = vmul.f32 0.5, %v2278_v10  ;;  %v2272_v37 = vsel %vm2271_vm10, %v4852_v16, %v2270_v13  ;;  %v2286_v16 = vand.u32 2147483648, %v4861_v47 }
 0x319   : > { %v2478_v25 = vmul.f32 %v3244_v8, %v2477_v61  ;;  %2644 = vst.msk [vmem:[#allocation2 + $0x20] sm:$0xff] %vm436_vm0, %v2474_v59  ;;  %v2275_v33 = vsel %vm2273_vm12, %v2274_v54, %v2272_v37 }
 0x31a   : > { %v2280_v50 = vsub.f32 1.5, %v2279_v26  ;;  %v2390_v38 = vmax.f32 %v2275_v33, 1e-12 }
 0x31b   : > { %v2479_v56 = vadd.f32 %v3244_v8, %v2478_v25  ;;  %v3246_v24 = vpop.eup %3245 }
 0x31c   : > { %v2281_v22 = vmul.f32 %v3242_v14, %v2280_v50  ;;  %3247 = vrcp.f32 %v2390_v38  ;;  %v2289_v35 = vmul.f32 %v3246_v24, %v4869_v39  ;;  %v2499_v55 = vand.u32 2147483647, %v2390_v38 }
 0x31d   : > { %v2483_v5 = vsel %vm2482_vm15, %v3244_v8, %v2479_v56  ;;  %vm2495_vm6 = vweird.f32 %v2390_v38 }
 0x31e   : > { %v2488_v44 = vsel %vm2485_vm1, %v2487_v21, %v2483_v5  ;;  %v2282_v4 = vmul.f32 %v2281_v22, %v4861_v47  ;;  %v2290_v2 = vmul.f32 %v3246_v24, %v2289_v35  ;;  %vm2500_vm9 = vcmp.eq.f32.partialorder %v2499_v55, 8.507059e+37 }
 0x31f   : > { %v2489_v62 = vmul.f32 %v2488_v44, %v4759_v15  ;;  %v2501_v15 = vand.u32 2147483648, %v2390_v38 }
 0x320   : > { %v2284_v36 = vsel %vm2283_vm2, %v4861_v47, %v2282_v4  ;;  %v2291_v63 = vmul.f32 0.5, %v2290_v2 }
 0x321   : > { %2645 = vst.msk [vmem:[#allocation2 + $0x28] sm:$0xff] %vm436_vm0, %v2489_v62  ;;  %v2287_v11 = vsel %vm2285_vm3, %v2286_v16, %v2284_v36  ;;  %v2502_v30 = vor.u32 1.1754944e-38, %v2501_v15 }
 0x322   : > { %v2391_v28 = vmax.f32 %v2287_v11, 1e-12  ;;  %v3248_v23 = vpop.eup %3247  ;;  %v2292_v9 = vsub.f32 1.5, %v2291_v63  ;;  %v2173_v51 = vpop.xlane.xlu0 %2172 }
 0x323   : > { %v2491_v58 = vmul.f32 %v3248_v23, %v2390_v38  ;;  %vm2496_vm4 = vweird.f32 %v3248_v23  ;;  %vm2307_vm2 = vcmp.eq.f32.partialorder %v2173_v51, inf  ;;  %v2310_v4 = vand.u32 2147483648, %v2173_v51 }
 0x324   : > { %3249 = vrcp.f32 %v2391_v28  ;;  %v2293_v42 = vmul.f32 %v3246_v24, %v2292_v9  ;;  %vm2497_vm8 = vmor %vm2495_vm6, %vm2496_vm4  ;;  %v2516_v43 = vand.u32 2147483648, %v2391_v28  ;;  %v2514_v10 = vand.u32 2147483647, %v2391_v28 }
 0x325   : > { %v2492_v18 = vsub.f32 1.0, %v2491_v58  ;;  %3251 = vrsqrt.f32 %v2173_v51  ;;  %vm2510_vm11 = vweird.f32 %v2391_v28  ;;  %vm2309_vm4 = vcmp.eq.f32.partialorder %v2173_v51, 0.0 }
 0x326   : > { %v2294_v40 = vmul.f32 %v2293_v42, %v4869_v39  ;;  %vm2515_vm13 = vcmp.eq.f32.partialorder %v2514_v10, 8.507059e+37 }
 0x327   : > { %v2493_v52 = vmul.f32 %v3248_v23, %v2492_v18 }
 0x328   : > { %v2296_v14 = vsel %vm2295_vm5, %v4869_v39, %v2294_v40  ;;  %v2517_v39 = vor.u32 1.1754944e-38, %v2516_v43 }
 0x329   : > { %v2494_v49 = vadd.f32 %v3248_v23, %v2493_v52  ;;  %v2299_v8 = vsel %vm2297_vm7, %v2298_v7, %v2296_v14 }
 0x32a   : > { %v3250_v47 = vpop.eup %3249  ;;  %v2392_v41 = vmax.f32 %v2299_v8, 1e-12 }
 0x32b   : > { %v2506_v53 = vmul.f32 %v3250_v47, %v2391_v28  ;;  %v2498_v48 = vsel %vm2497_vm8, %v3248_v23, %v2494_v49  ;;  %vm2511_vm10 = vweird.f32 %v3250_v47  ;;  %v3252_v20 = vpop.eup %3251 }
 0x32c   : > { %v2503_v46 = vsel %vm2500_vm9, %v2502_v30, %v2498_v48  ;;  %3253 = vrcp.f32 %v2392_v41  ;;  %vm2512_vm12 = vmor %vm2510_vm11, %vm2511_vm10  ;;  %v2301_v13 = vmul.f32 %v3252_v20, %v2173_v51  ;;  %v2531_v56 = vand.u32 2147483648, %v2392_v41 }
 0x32d   : > { %v2507_v12 = vsub.f32 1.0, %v2506_v53  ;;  %v2504_v6 = vmul.f32 %v2503_v46, %v4765_v19  ;;  %v2529_v21 = vand.u32 2147483647, %v2392_v41  ;;  %vm2525_vm15 = vweird.f32 %v2392_v41 }
 0x32e   : > { %v2302_v54 = vmul.f32 %v3252_v20, %v2301_v13 }
 0x32f   : > { %v2508_v1 = vmul.f32 %v3250_v47, %v2507_v12  ;;  %2646 = vst.msk [vmem:[#allocation2 + $0x30] sm:$0xff] %vm436_vm0, %v2504_v6  ;;  %vm2530_vm3 = vcmp.eq.f32.partialorder %v2529_v21, 8.507059e+37 }
 0x330   : > { %v2303_v32 = vmul.f32 0.5, %v2302_v54 }
 0x331   : > { %v2509_v61 = vadd.f32 %v3250_v47, %v2508_v1 }
 0x332   : > { %v3254_v26 = vpop.eup %3253  ;;  %v2304_v50 = vsub.f32 1.5, %v2303_v32 }
 0x333   : > { %v2513_v59 = vsel %vm2512_vm12, %v3250_v47, %v2509_v61  ;;  %v2521_v25 = vmul.f32 %v3254_v26, %v2392_v41  ;;  %vm2526_vm14 = vweird.f32 %v3254_v26 }
 0x334   : > { %v2518_v27 = vsel %vm2515_vm13, %v2517_v39, %v2513_v59  ;;  %v2305_v22 = vmul.f32 %v3252_v20, %v2304_v50  ;;  %vm2527_vm1 = vmor %vm2525_vm15, %vm2526_vm14 }
 0x335   : > { %v2519_v19 = vmul.f32 %v2518_v27, %v4771_v0  ;;  %v2522_v33 = vsub.f32 1.0, %v2521_v25  ;;  %v2532_v0 = vor.u32 1.1754944e-38, %v2531_v56 }
 0x336   : > { %v2306_v44 = vmul.f32 %v2305_v22, %v2173_v51 }
 0x337   : > { %2647 = vst.msk [vmem:[#allocation2 + $0x38] sm:$0xff] %vm436_vm0, %v2519_v19  ;;  %v2523_v38 = vmul.f32 %v3254_v26, %v2522_v33 }
 0x338   : > { %v2182_v37 = vpop.xlane.xlu0 %2181  ;;  %v2308_v16 = vsel %vm2307_vm2, %v2173_v51, %v2306_v44 }
 0x339   : > { %3255 = vrsqrt.f32 %v2182_v37  ;;  %v2176_v24 = vpop.xlane.xlu1 %2175  ;;  %v2524_v5 = vadd.f32 %v3254_v26, %v2523_v38  ;;  %v2311_v2 = vsel %vm2309_vm4, %v2310_v4, %v2308_v16  ;;  %vm2343_vm5 = vcmp.eq.f32.partialorder %v2182_v37, inf }
 0x33a   : > { %3257 = vrsqrt.f32 %v2176_v24  ;;  %v2393_v63 = vmax.f32 %v2311_v2, 1e-12  ;;  %vm2345_vm6 = vcmp.eq.f32.partialorder %v2182_v37, 0.0  ;;  %vm2319_vm9 = vcmp.eq.f32.partialorder %v2176_v24, inf }
 0x33b   : > { %v2528_v62 = vsel %vm2527_vm1, %v3254_v26, %v2524_v5  ;;  %vm2321_vm10 = vcmp.eq.f32.partialorder %v2176_v24, 0.0  ;;  %v2322_v10 = vand.u32 2147483648, %v2176_v24 }
 0x33c   : > { %v2533_v36 = vsel %vm2530_vm3, %v2532_v0, %v2528_v62  ;;  %3259 = vrcp.f32 %v2393_v63  ;;  %v2544_v8 = vand.u32 2147483647, %v2393_v63  ;;  %v2546_v46 = vand.u32 2147483648, %v2393_v63 }
 0x33d   : > { %v2534_v28 = vmul.f32 %v2533_v36, %v4777_v60  ;;  %v2346_v60 = vand.u32 2147483648, %v2182_v37  ;;  %vm2540_vm8 = vweird.f32 %v2393_v63 }
 0x33e   : > { %v2547_v13 = vor.u32 1.1754944e-38, %v2546_v46  ;;  %vm2545_vm12 = vcmp.eq.f32.partialorder %v2544_v8, 8.507059e+37 }
 0x33f   : > { %v3256_v35 = vpop.eup %3255  ;;  %2648 = vst.msk [vmem:[#allocation2 + $0x40] sm:$0xff] %vm436_vm0, %v2534_v28 }
 0x340   : > { %v2337_v11 = vmul.f32 %v3256_v35, %v2182_v37  ;;  %v3258_v58 = vpop.eup %3257 }
 0x341   : > { %v2313_v9 = vmul.f32 %v3258_v58, %v2176_v24  ;;  %v2179_v42 = vpop.xlane.xlu2 %2178 }
 0x342   : > { %v2338_v23 = vmul.f32 %v3256_v35, %v2337_v11  ;;  %3261 = vrsqrt.f32 %v2179_v42  ;;  %v3260_v47 = vpop.eup %3259  ;;  %vm2331_vm13 = vcmp.eq.f32.partialorder %v2179_v42, inf  ;;  %vm2333_vm14 = vcmp.eq.f32.partialorder %v2179_v42, 0.0 }
 0x343   : > { %v2314_v15 = vmul.f32 %v3258_v58, %v2313_v9  ;;  %v2536_v49 = vmul.f32 %v3260_v47, %v2393_v63  ;;  %vm2541_vm7 = vweird.f32 %v3260_v47 }
 0x344   : > { %v2339_v18 = vmul.f32 0.5, %v2338_v23  ;;  %vm2542_vm11 = vmor %vm2540_vm8, %vm2541_vm7 }
 0x345   : > { %v2315_v55 = vmul.f32 0.5, %v2314_v15  ;;  %v2537_v30 = vsub.f32 1.0, %v2536_v49 }
 0x346   : > { %v2340_v52 = vsub.f32 1.5, %v2339_v18 }
 0x347   : > { %v2316_v7 = vsub.f32 1.5, %v2315_v55  ;;  %v2538_v41 = vmul.f32 %v3260_v47, %v2537_v30 }
 0x348   : > { %v2341_v40 = vmul.f32 %v3256_v35, %v2340_v52  ;;  %v3262_v48 = vpop.eup %3261 }
 0x349   : > { %v2317_v53 = vmul.f32 %v3258_v58, %v2316_v7  ;;  %v2325_v43 = vmul.f32 %v3262_v48, %v2179_v42  ;;  %v2539_v20 = vadd.f32 %v3260_v47, %v2538_v41 }
 0x34a   : > { %v2342_v51 = vmul.f32 %v2341_v40, %v2182_v37  ;;  %v4902_v32 = vpop.xlane.xlu1 %2184 }
 0x34b   : > { %v2318_v6 = vmul.f32 %v2317_v53, %v2176_v24  ;;  %v2326_v39 = vmul.f32 %v3262_v48, %v2325_v43  ;;  %v2543_v27 = vsel %vm2542_vm11, %v3260_v47, %v2539_v20  ;;  %vm2355_vm8 = vcmp.eq.f32.partialorder %v4902_v32, inf }
 0x34c   : > { %v2344_v14 = vsel %vm2343_vm5, %v2182_v37, %v2342_v51  ;;  %v2548_v19 = vsel %vm2545_vm12, %v2547_v13, %v2543_v27  ;;  %v2358_v41 = vand.u32 2147483648, %v4902_v32 }
 0x34d   : > { %v2347_v12 = vsel %vm2345_vm6, %v2346_v60, %v2344_v14  ;;  %v2320_v61 = vsel %vm2319_vm9, %v2176_v24, %v2318_v6  ;;  %v2327_v26 = vmul.f32 0.5, %v2326_v39  ;;  %v2549_v25 = vmul.f32 %v2548_v19, %v4783_v29 }
 0x34e   : > { %v2396_v1 = vmax.f32 %v2347_v12, 1e-12  ;;  %v2323_v59 = vsel %vm2321_vm10, %v2322_v10, %v2320_v61  ;;  %v2334_v24 = vand.u32 2147483648, %v2179_v42  ;;  %vm2357_vm9 = vcmp.eq.f32.partialorder %v4902_v32, 0.0 }
 0x34f   : > { %v2394_v54 = vmax.f32 %v2323_v59, 1e-12  ;;  %v2328_v37 = vsub.f32 1.5, %v2327_v26  ;;  %2649 = vst.msk [vmem:[#allocation2 + $0x48] sm:$0xff] %vm436_vm0, %v2549_v25 }
 0x350   : > { %3263 = vrcp.f32 %v2396_v1  ;;  %v2591_v5 = vand.u32 2147483648, %v2396_v1  ;;  %v2589_v62 = vand.u32 2147483647, %v2396_v1  ;;  %vm2585_vm1 = vweird.f32 %v2396_v1 }
 0x351   : > { %3265 = vrcp.f32 %v2394_v54  ;;  %v2329_v50 = vmul.f32 %v3262_v48, %v2328_v37  ;;  %v2561_v63 = vand.u32 2147483648, %v2394_v54  ;;  %v2559_v18 = vand.u32 2147483647, %v2394_v54 }
 0x352   : > { %3267 = vrsqrt.f32 %v4902_v32  ;;  %v2592_v23 = vor.u32 1.1754944e-38, %v2591_v5  ;;  %vm2590_vm4 = vcmp.eq.f32.partialorder %v2589_v62, 8.507059e+37  ;;  %vm2555_vm5 = vweird.f32 %v2394_v54 }
 0x353   : > { %v2330_v38 = vmul.f32 %v2329_v50, %v2179_v42  ;;  %v2562_v40 = vor.u32 1.1754944e-38, %v2561_v63  ;;  %vm2560_vm7 = vcmp.eq.f32.partialorder %v2559_v18, 8.507059e+37 }
 0x355   : > { %v2332_v29 = vsel %vm2331_vm13, %v2179_v42, %v2330_v38  ;;  %v4907_v36 = vpop.xlane.xlu2 %2187 }
 0x356   : > { %v3264_v33 = vpop.eup %3263  ;;  %v2335_v35 = vsel %vm2333_vm14, %v2334_v24, %v2332_v29  ;;  %3269 = vrsqrt.f32 %v4907_v36  ;;  %vm2367_vm14 = vcmp.eq.f32.partialorder %v4907_v36, inf }
 0x357   : > { %v2581_v56 = vmul.f32 %v3264_v33, %v2396_v1  ;;  %v3266_v22 = vpop.eup %3265  ;;  %vm2586_vm15 = vweird.f32 %v3264_v33  ;;  %v2395_v11 = vmax.f32 %v2335_v35, 1e-12 }
 0x358   : > { %v3268_v44 = vpop.eup %3267  ;;  %v2551_v0 = vmul.f32 %v3266_v22, %v2394_v54  ;;  %vm2556_vm2 = vweird.f32 %v3266_v22  ;;  %vm2587_vm3 = vmor %vm2585_vm1, %vm2586_vm15  ;;  %vm2369_vm15 = vcmp.eq.f32.partialorder %v4907_v36, 0.0 }
 0x359   : > { %v2582_v21 = vsub.f32 1.0, %v2581_v56  ;;  %v2349_v16 = vmul.f32 %v3268_v44, %v4902_v32  ;;  %3271 = vrcp.f32 %v2395_v11  ;;  %vm2557_vm6 = vmor %vm2555_vm5, %vm2556_vm2  ;;  %v2574_v10 = vand.u32 2147483647, %v2395_v11 }
 0x35a   : > { %v2552_v2 = vsub.f32 1.0, %v2551_v0  ;;  %vm2570_vm11 = vweird.f32 %v2395_v11  ;;  %v2370_v56 = vand.u32 2147483648, %v4907_v36 }
 0x35b   : > { %v2583_v4 = vmul.f32 %v3264_v33, %v2582_v21  ;;  %v2350_v58 = vmul.f32 %v3268_v44, %v2349_v16  ;;  %vm2575_vm13 = vcmp.eq.f32.partialorder %v2574_v10, 8.507059e+37 }
 0x35c   : > { %v2553_v9 = vmul.f32 %v3266_v22, %v2552_v2  ;;  %v3270_v7 = vpop.eup %3269 }
 0x35d   : > { %v2584_v28 = vadd.f32 %v3264_v33, %v2583_v4  ;;  %v2351_v42 = vmul.f32 0.5, %v2350_v58  ;;  %v2361_v53 = vmul.f32 %v3270_v7, %v4907_v36  ;;  %v4914_v14 = vpop.xlane.xlu0 %2190 }
 0x35e   : > { %v2554_v52 = vadd.f32 %v3266_v22, %v2553_v9  ;;  %3273 = vrsqrt.f32 %v4914_v14  ;;  %vm2381_vm5 = vcmp.eq.f32.partialorder %v4914_v14, 0.0 }
 0x35f   : > { %v2588_v15 = vsel %vm2587_vm3, %v3264_v33, %v2584_v28  ;;  %v2352_v49 = vsub.f32 1.5, %v2351_v42  ;;  %v3272_v48 = vpop.eup %3271  ;;  %v2362_v12 = vmul.f32 %v3270_v7, %v2361_v53  ;;  %vm2379_vm3 = vcmp.eq.f32.partialorder %v4914_v14, inf }
 0x360   : > { %v2593_v55 = vsel %vm2590_vm4, %v2592_v23, %v2588_v15  ;;  %v2558_v51 = vsel %vm2557_vm6, %v3266_v22, %v2554_v52  ;;  %v2566_v46 = vmul.f32 %v3272_v48, %v2395_v11  ;;  %vm2571_vm10 = vweird.f32 %v3272_v48 }
 0x361   : > { %v2594_v47 = vmul.f32 %v2593_v55, %v4789_v57  ;;  %v2563_v60 = vsel %vm2560_vm7, %v2562_v40, %v2558_v51  ;;  %v2353_v30 = vmul.f32 %v3268_v44, %v2352_v49  ;;  %v2363_v1 = vmul.f32 0.5, %v2362_v12  ;;  %vm2572_vm12 = vmor %vm2570_vm11, %vm2571_vm10 }
 0x362   : > { %v2564_v8 = vmul.f32 %v2563_v60, %v4794_v34  ;;  %v2567_v6 = vsub.f32 1.0, %v2566_v46  ;;  %v2576_v34 = vand.u32 2147483648, %v2395_v11 }
 0x363   : > { %2652 = vst.msk [vmem:[#allocation2 + $0x60] sm:$0xff] %vm436_vm0, %v2594_v47  ;;  %v2354_v57 = vmul.f32 %v2353_v30, %v4902_v32  ;;  %v2364_v13 = vsub.f32 1.5, %v2363_v1 }
 0x364   : > { %2650 = vst.msk [vmem:[#allocation2 + $0x50] sm:$0xff] %vm436_vm0, %v2564_v8  ;;  %v2568_v61 = vmul.f32 %v3272_v48, %v2567_v6  ;;  %v3274_v59 = vpop.eup %3273  ;;  %v2577_v54 = vor.u32 1.1754944e-38, %v2576_v34 }
 0x365   : > { %v2356_v43 = vsel %vm2355_vm8, %v4902_v32, %v2354_v57  ;;  %v2365_v26 = vmul.f32 %v3270_v7, %v2364_v13  ;;  %v2373_v19 = vmul.f32 %v3274_v59, %v4914_v14 }
 0x366   : > { %v2359_v20 = vsel %vm2357_vm9, %v2358_v41, %v2356_v43  ;;  %v2569_v27 = vadd.f32 %v3272_v48, %v2568_v61 }
 0x367   : > { %v2397_v39 = vmax.f32 %v2359_v20, 1e-12  ;;  %v2366_v37 = vmul.f32 %v2365_v26, %v4907_v36  ;;  %v2374_v33 = vmul.f32 %v3274_v59, %v2373_v19 }
 0x368   : > { %v2573_v25 = vsel %vm2572_vm12, %v3272_v48, %v2569_v27 }
 0x369   : > { %3275 = vrcp.f32 %v2397_v39  ;;  %v2578_v32 = vsel %vm2575_vm13, %v2577_v54, %v2573_v25  ;;  %v2368_v38 = vsel %vm2367_vm14, %v4907_v36, %v2366_v37  ;;  %v2375_v21 = vmul.f32 0.5, %v2374_v33 }
 0x36a   : > { %v2579_v50 = vmul.f32 %v2578_v32, %v4801_v31  ;;  %v2371_v24 = vsel %vm2369_vm15, %v2370_v56, %v2368_v38  ;;  %v2606_v4 = vand.u32 2147483648, %v2397_v39  ;;  %v2604_v62 = vand.u32 2147483647, %v2397_v39 }
 0x36b   : > { %v2398_v44 = vmax.f32 %v2371_v24, 1e-12  ;;  %v2376_v0 = vsub.f32 1.5, %v2375_v21  ;;  %vm2600_vm2 = vweird.f32 %v2397_v39  ;;  %v2382_v36 = vand.u32 2147483648, %v4914_v14 }
 0x36c   : > { %2651 = vst.msk [vmem:[#allocation2 + $0x58] sm:$0xff] %vm436_vm0, %v2579_v50  ;;  %v2607_v11 = vor.u32 1.1754944e-38, %v2606_v4  ;;  %vm2605_vm6 = vcmp.eq.f32.partialorder %v2604_v62, 8.507059e+37 }
 0x36d   : > { %3277 = vrcp.f32 %v2398_v44  ;;  %v2377_v31 = vmul.f32 %v3274_v59, %v2376_v0  ;;  %v2621_v55 = vand.u32 2147483648, %v2398_v44  ;;  %v2619_v47 = vand.u32 2147483647, %v2398_v44 }
 0x36e   : > { %vm2615_vm8 = vweird.f32 %v2398_v44 }
 0x36f   : > { %v3276_v22 = vpop.eup %3275  ;;  %v2378_v16 = vmul.f32 %v2377_v31, %v4914_v14  ;;  %v2622_v7 = vor.u32 1.1754944e-38, %v2621_v55  ;;  %vm2620_vm10 = vcmp.eq.f32.partialorder %v2619_v47, 8.507059e+37 }
 0x370   : > { %v2596_v5 = vmul.f32 %v3276_v22, %v2397_v39  ;;  %vm2601_vm1 = vweird.f32 %v3276_v22 }
 0x371   : > { %vm2602_vm4 = vmor %vm2600_vm2, %vm2601_vm1  ;;  %v2380_v28 = vsel %vm2379_vm3, %v4914_v14, %v2378_v16 }
 0x372   : > { %v2597_v29 = vsub.f32 1.0, %v2596_v5  ;;  %v2383_v58 = vsel %vm2381_vm5, %v2382_v36, %v2380_v28 }
 0x373   : > { %v3278_v63 = vpop.eup %3277  ;;  %v2399_v15 = vmax.f32 %v2383_v58, 1e-12 }
 0x374   : > { %v2598_v35 = vmul.f32 %v3276_v22, %v2597_v29  ;;  %v2611_v18 = vmul.f32 %v3278_v63, %v2398_v44  ;;  %vm2616_vm7 = vweird.f32 %v3278_v63 }
 0x375   : > { %3279 = vrcp.f32 %v2399_v15  ;;  %vm2617_vm9 = vmor %vm2615_vm8, %vm2616_vm7  ;;  %v2636_v48 = vand.u32 2147483648, %v2399_v15  ;;  %v2634_v46 = vand.u32 2147483647, %v2399_v15  ;;  %vm2630_vm12 = vweird.f32 %v2399_v15 }
 0x376   : > { %v2599_v2 = vadd.f32 %v3276_v22, %v2598_v35  ;;  %v2612_v52 = vsub.f32 1.0, %v2611_v18 }
 0x377   : > { %v2637_v12 = vor.u32 1.1754944e-38, %v2636_v48  ;;  %vm2635_vm14 = vcmp.eq.f32.partialorder %v2634_v46, 8.507059e+37 }
 0x378   : > { %v2603_v23 = vsel %vm2602_vm4, %v3276_v22, %v2599_v2  ;;  %v2613_v40 = vmul.f32 %v3278_v63, %v2612_v52 }
 0x379   : > { %v2608_v9 = vsel %vm2605_vm6, %v2607_v11, %v2603_v23 }
 0x37a   : > { %v2609_v42 = vmul.f32 %v2608_v9, %v4807_v3  ;;  %v2614_v49 = vadd.f32 %v3278_v63, %v2613_v40 }
 0x37b   : > { %v3280_v51 = vpop.eup %3279 }
 0x37c   : > { %2653 = vst.msk [vmem:[#allocation2 + $0x68] sm:$0xff] %vm436_vm0, %v2609_v42  ;;  %v2618_v60 = vsel %vm2617_vm9, %v3278_v63, %v2614_v49  ;;  %v2626_v53 = vmul.f32 %v3280_v51, %v2399_v15  ;;  %vm2631_vm11 = vweird.f32 %v3280_v51 }
 0x37d   : > { %v2623_v30 = vsel %vm2620_vm10, %v2622_v7, %v2618_v60  ;;  %vm2632_vm13 = vmor %vm2630_vm12, %vm2631_vm11 }
 0x37e   : > { %v2624_v14 = vmul.f32 %v2623_v30, %v4813_v45  ;;  %v2627_v3 = vsub.f32 1.0, %v2626_v53 }
 0x380   : > { %2654 = vst.msk [vmem:[#allocation2 + $0x70] sm:$0xff] %vm436_vm0, %v2624_v14  ;;  %v2628_v8 = vmul.f32 %v3280_v51, %v2627_v3 }
 0x382   : > { %v2629_v57 = vadd.f32 %v3280_v51, %v2628_v8 }
 0x384   : > { %v2633_v41 = vsel %vm2632_vm13, %v3280_v51, %v2629_v57 }
 0x385   : > { %v2638_v6 = vsel %vm2635_vm14, %v2637_v12, %v2633_v41 }
 0x386   : > { %v2639_v43 = vmul.f32 %v2638_v6, %v4822_v17 }
 0x388   : > { %2655 = vst.msk [vmem:[#allocation2 + $0x78] sm:$0xff] %vm436_vm0, %v2639_v43 }
 0x389 PF: > { %v2679_v45 = vld [vmem:[%s3553_s18 + $0x38] sm:$0xff]  ;;  %v2678_v1 = vld [vmem:[%s3553_s18 + $0x30] sm:$0xff]  ;;  %v2677_v10 = vld [vmem:[%s3553_s18 + $0x28] sm:$0xff]  ;;  %vm2680_vm0 = vcmask 523264   ;;  %s5066_s20 = sld [smem:[#allocation12_spill]]  ;;  %s2825_s16 = sshll.u32 %s3555_s13, 4  ;;  %s2826_s16 = int_to_ptr.vmem [resolvable:$true] %s2825_s16 }
 0x38a   : > { %3037 = vmatpush.msra.mxu2 %v2679_v45  ;;  %3038 = vmatpush.msra.mxu3 %v2679_v45  ;;  %v2676_v17 = vld [vmem:[%s3553_s18 + $0x20] sm:$0xff]  ;;  %v2675_v34 = vld [vmem:[%s3553_s18 + $0x18] sm:$0xff]  ;;  %v2674_v20 = vld [vmem:[%s3553_s18 + $0x10] sm:$0xff]  ;;  %s5067_s22 = sand.u32 1, %s3361_s28  }
 0x38b   : > { %2737 = vmatpush.msra.mxu0 %v2679_v45  ;;  %3036 = vmatpush.msra.mxu1 %v2679_v45  ;;  %v2673_v61 = vld [vmem:[%s3553_s18 + $0x8] sm:$0xff]  ;;  %v2672_v39 = vld [vmem:[%s3553_s18] sm:$0xff]  ;;  %v2666_v37 = vld [vmem:[#allocation2 + $0x50] sm:$0xff]  ;;  %s3003_s18 = sshll.u32 %s3381_s11, 5  ;;  %s2811_s12 = scalar_lea.sflag [#allocation5], %s5067_s22 }
 0x38c   : > { %3040 = vmatpush.msra.mxu2 %v2678_v1  ;;  %3041 = vmatpush.msra.mxu3 %v2678_v1  ;;  %v2664_v13 = vld [vmem:[#allocation2 + $0x40] sm:$0xff]  ;;  %v2665_v26 = vld [vmem:[#allocation2 + $0x48] sm:$0xff]  ;;  %v2670_v33 = vld [vmem:[#allocation2 + $0x70] sm:$0xff]  ;;  %s2822_s7 = sadd.s32 %s3377_s10, %s3003_s18 }
 0x38d   : > { %2738 = vmatpush.msra.mxu0 %v2678_v1  ;;  %3039 = vmatpush.msra.mxu1 %v2678_v1  ;;  %v2668_v59 = vld [vmem:[#allocation2 + $0x60] sm:$0xff]  ;;  %v2669_v19 = vld [vmem:[#allocation2 + $0x68] sm:$0xff]  ;;  %v2658_v50 = vld [vmem:[#allocation2 + $0x10] sm:$0xff]  ;;  %s3000_s24 = sshll.u32 %s2822_s7, 3 }
 0x38e   : > { %3043 = vmatpush.msra.mxu2 %v2677_v10  ;;  %3044 = vmatpush.msra.mxu3 %v2677_v10  ;;  %v2656_v27 = vld [vmem:[#allocation2] sm:$0xff]  ;;  %v2657_v25 = vld [vmem:[#allocation2 + $0x8] sm:$0xff]  ;;  %v2662_v56 = vld [vmem:[#allocation2 + $0x30] sm:$0xff] }
 0x38f   : > { %2739 = vmatpush.msra.mxu0 %v2677_v10  ;;  %3042 = vmatpush.msra.mxu1 %v2677_v10  ;;  %v2660_v54 = vld [vmem:[#allocation2 + $0x20] sm:$0xff]  ;;  %v2661_v32 = vld [vmem:[#allocation2 + $0x28] sm:$0xff]  ;;  %v2667_v38 = vld [vmem:[#allocation2 + $0x58] sm:$0xff]  ;;  %s2824_s11 = scalar_lea.hbm %s5066_s20, %s3000_s24  ;;  %s3303_s7 = scalar_lea.hbm %s5066_s20, 512 }
 0x390   : > { %3046 = vmatpush.msra.mxu2 %v2676_v17  ;;  %3047 = vmatpush.msra.mxu3 %v2676_v17  ;;  %v2671_v21 = vld [vmem:[#allocation2 + $0x78] sm:$0xff]  ;;  %s2827_s10 = sshll.u32 %s2824_s11, 4  ;;  %s2828_s10 = int_to_ptr.hbm [resolvable:$true] %s2827_s10 }
 0x391   : > { %2740 = vmatpush.msra.mxu0 %v2676_v17  ;;  %3045 = vmatpush.msra.mxu1 %v2676_v17  ;;  %v2659_v22 = vld [vmem:[#allocation2 + $0x18] sm:$0xff]  ;;  %s3297_s15 = sshra.s32 %s2828_s10, 4  ;;  %s3298_s15 = int_to_ptr.hbm [resolvable:$true] %s3297_s15 }
 0x392   : > { %3049 = vmatpush.msra.mxu2 %v2675_v34  ;;  %3050 = vmatpush.msra.mxu3 %v2675_v34  ;;  %v2663_v24 = vld [vmem:[#allocation2 + $0x38] sm:$0xff]  ;;  %s3299_s30 = scalar_lea.hbm %s3298_s15, 128  ;;  %p3304_p8 = scmp.lt.s32.totalorder %s3298_s15, %s5066_s20 }
 0x393   : > { %2741 = vmatpush.msra.mxu0 %v2675_v34  ;;  %3048 = vmatpush.msra.mxu1 %v2675_v34  ;;  %p3300_p5 = scmp.ne.s32.totalorder %s3298_s15, %s3299_s30  ;;  %p3305_p9 = scmp.lt.s32.totalorder %s3303_s7, %s3299_s30 }
 0x394   : > { %3052 = vmatpush.msra.mxu2 %v2674_v20  ;;  %3053 = vmatpush.msra.mxu3 %v2674_v20 }
 0x395   : > { %2742 = vmatpush.msra.mxu0 %v2674_v20  ;;  %3051 = vmatpush.msra.mxu1 %v2674_v20  ;;  %p3301_p6 = pnand %p3300_p5, %p3522_p10  ;;  %p3306_p11 = por %p3305_p9, %p3304_p8 }
 0x396   : > { %3055 = vmatpush.msra.mxu2 %v2673_v61  ;;  %3056 = vmatpush.msra.mxu3 %v2673_v61 }
 0x397   : > { %2743 = vmatpush.msra.mxu0 %v2673_v61  ;;  %3054 = vmatpush.msra.mxu1 %v2673_v61  ;;  %p3302_p7 = pneg %p3301_p6 }
 0x398   : > { %3058 = vmatpush.msra.mxu2 %v2672_v39  ;;  %3059 = vmatpush.msra.mxu3 %v2672_v39 }
 0x399   : > { %2989 = vmatmul.msk.f32.vlgmr.msra.gmra.mxu2 %vm2680_vm0, %v2664_v13  ;;  %2993 = vmatmul.msk.f32.vlgmr.msra.gmra.mxu3 %vm2680_vm0, %v2668_v59  ;;  %p3307_p13 = pnand %p3306_p11, %p3302_p7 }
 0x39a   : > { %2744 = vmatpush.msra.mxu0 %v2672_v39  ;;  %3057 = vmatpush.msra.mxu1 %v2672_v39 }
 0x39b   : > { %2981 = vmatmul.msk.f32.vlgmr.msra.gmra.mxu0 %vm2680_vm0, %v2656_v27  ;;  %2985 = vmatmul.msk.f32.vlgmr.msra.gmra.mxu1 %vm2680_vm0, %v2660_v54 }
 0x3a1   : > { %2990 = vmatmul.msk.f32.gmra.mxu2 %vm2680_vm0, %v2665_v26  ;;  %2994 = vmatmul.msk.f32.gmra.mxu3 %vm2680_vm0, %v2669_v19 }
 0x3a3   : > { %2982 = vmatmul.msk.f32.gmra.mxu0 %vm2680_vm0, %v2657_v25  ;;  %2986 = vmatmul.msk.f32.gmra.mxu1 %vm2680_vm0, %v2661_v32 }
 0x3a9   : > { %2991 = vmatmul.msk.f32.gmra.mxu2 %vm2680_vm0, %v2666_v37  ;;  %2995 = vmatmul.msk.f32.gmra.mxu3 %vm2680_vm0, %v2670_v33 }
 0x3ab   : > { %2983 = vmatmul.msk.f32.gmra.mxu0 %vm2680_vm0, %v2658_v50  ;;  %2987 = vmatmul.msk.f32.gmra.mxu1 %vm2680_vm0, %v2662_v56 }
 0x3b1   : > { %2992 = vmatmul.msk.f32.gmra.mxu2 %vm2680_vm0, %v2667_v38  ;;  %2996 = vmatmul.msk.f32.gmra.mxu3 %vm2680_vm0, %v2671_v21 }
 0x3b3   : > { %2984 = vmatmul.msk.f32.gmra.mxu0 %vm2680_vm0, %v2659_v22  ;;  %2988 = vmatmul.msk.f32.gmra.mxu1 %vm2680_vm0, %v2663_v24 }
 0x418   : > { %v2746_v5 = vpop.f32.mrf.mxu0  ;;  %v2758_v44 = vpop.f32.mrf.mxu1 }
 0x419   : > { %2794 = vst [vmem:[%s3555_s13] sm:$0xff] %v2746_v5 }
 0x41a   : > { %2798 = vst [vmem:[%s3555_s13 + $0x20] sm:$0xff] %v2758_v44 }
 0x41c   : > { %v2770_v0 = vpop.f32.mrf.mxu2  ;;  %v2782_v29 = vpop.f32.mrf.mxu3 }
 0x41d   : > { %2802 = vst [vmem:[%s3555_s13 + $0x40] sm:$0xff] %v2770_v0 }
 0x41e   : > { %2806 = vst [vmem:[%s3555_s13 + $0x60] sm:$0xff] %v2782_v29 }
 0x420   : > { %v2749_v4 = vpop.f32.mrf.mxu0  ;;  %v2761_v31 = vpop.f32.mrf.mxu1 }
 0x421   : > { %2795 = vst [vmem:[%s3555_s13 + $0x8] sm:$0xff] %v2749_v4 }
 0x422   : > { %2799 = vst [vmem:[%s3555_s13 + $0x28] sm:$0xff] %v2761_v31 }
 0x424   : > { %v2773_v35 = vpop.f32.mrf.mxu2  ;;  %v2785_v62 = vpop.f32.mrf.mxu3 }
 0x425   : > { %2803 = vst [vmem:[%s3555_s13 + $0x48] sm:$0xff] %v2773_v35 }
 0x426   : > { %2807 = vst [vmem:[%s3555_s13 + $0x68] sm:$0xff] %v2785_v62 }
 0x428   : > { %v2752_v16 = vpop.f32.mrf.mxu0  ;;  %v2764_v2 = vpop.f32.mrf.mxu1 }
 0x429   : > { %2796 = vst [vmem:[%s3555_s13 + $0x10] sm:$0xff] %v2752_v16 }
 0x42a   : > { %2800 = vst [vmem:[%s3555_s13 + $0x30] sm:$0xff] %v2764_v2 }
 0x42c   : > { %v2776_v36 = vpop.f32.mrf.mxu2  ;;  %v2788_v11 = vpop.f32.mrf.mxu3 }
 0x42d   : > { %2804 = vst [vmem:[%s3555_s13 + $0x50] sm:$0xff] %v2776_v36 }
 0x42e   : > { %2808 = vst [vmem:[%s3555_s13 + $0x70] sm:$0xff] %v2788_v11 }
 0x430   : > { %v2755_v28 = vpop.f32.mrf.mxu0  ;;  %v2767_v63 = vpop.f32.mrf.mxu1 }
 0x431   : > { %2797 = vst [vmem:[%s3555_s13 + $0x18] sm:$0xff] %v2755_v28 }
 0x432   : > { %2801 = vst [vmem:[%s3555_s13 + $0x38] sm:$0xff] %v2767_v63 }
 0x434   : > { %v2779_v23 = vpop.f32.mrf.mxu2  ;;  %v2791_v58 = vpop.f32.mrf.mxu3 }
 0x435   : > { %2805 = vst [vmem:[%s3555_s13 + $0x58] sm:$0xff] %v2779_v23 }
 0x436   : > { %2809 = vst [vmem:[%s3555_s13 + $0x78] sm:$0xff] %v2791_v58 }
 0x437   : > { %3310 = shalt.err (!%p3307_p13)
}
 0x438   : > { %s3395_s13 = smov 128   ;;  %s3396_s19 = smov 256  }
 0x439   : > { %s3397_s11 = smov 8  }
 0x43a   : > { %3060 = dma.vmem_to_hbm [thread:$0]  (%p3522_p10), %s2826_s16, 2048, %s2828_s10, %s2811_s12, %s3395_s13, %s3396_s19, %s3397_s11  }
 0x43b PF: > { %p3066_p0 = scmp.ge.s32.totalorder %s3393_s14, 2  ;;  %s2842_s22 = sand.u32 1, %s3357_s27  }
 0x43c   : > { %s2843_s15 = scalar_lea.sflag [#allocation5], %s2842_s22 }
 0x43d   : > { %p3063_p1 = pnand %p3066_p0, %p3529_p12 }
 0x43f   : > { %p3064_p2 = pneg %p3063_p1 }
 0x441   : > { %3352 = dma.done.wait (%p3064_p2), %s2843_s15, 2048  }
 0x442   : > { %3354 = vsyncadd (%p3064_p2), %s2843_s15, 4294965248  ;;  %s21_s14 = sadd.s32 1, %s3393_s14   ;;  %s5068_s10 = sld [smem:[#allocation7_spill]] }
 0x443   : > { %p18_p3 = scmp.ge.s32.totalorder %s21_s14, 6   ;;  %s5069_s11 = sld [smem:[#allocation8_spill]] }
 0x444   : > { %s5070_s12 = sld [smem:[#allocation9_spill]]  ;;  %s5072_s27 = smov %s3361_s28 }
 0x445   : > { %s5071_s13 = sld [smem:[#allocation10_spill]]  ;;  %s5073_s28 = smov %s3365_s29 }
 0x446   : > { %s5074_s29 = smov %s3527_s17  ;;  %s5075_s30 = smov %s3373_s9 }
 0x447   : > { %s5076_s9 = smov %s3516_s23  ;;  %20 = sbr.rel (!%p18_p3) target bundleno = 9 (0x9), region = 137 }
 0x44c   :  { %2849 = vsyncpa [#allocation5], 1 }
 0x44d   :  { %2851 = vsyncpa [#allocation5 + $0x1], 1 }

</bundles_post_ra>
